<compile_context>
chip_gen: v7x
topology: tpu7x:2x2x1
jax: 0.10.0
libtpu: 0.0.40
codegen_flags: <defaults>
</compile_context>

<pallas_src>
import jax
import jax.numpy as jnp
from jax.experimental import pallas as pl
from jax.experimental.pallas import tpu as pltpu

D_Z = 100
D_LAB = 10
H1, H2, H3 = 256, 512, 1024
D_OUT = 28 * 28          # 784


def _leaky_relu(x, negative_slope=0.2):
    # maximum(x, a*x) == LeakyReLU(a) for 0 < a < 1; cheaper than where().
    return jnp.maximum(x, negative_slope * x)


def generator_mlp_kernel(z_ref, lab_ref,
                         w1z_ref, w1l_ref, b1_ref,
                         w2_ref, b2_ref,
                         w3_ref, b3_ref,
                         w4_ref, b4_ref,
                         o_ref):
    """Fused 4-layer MLP on one (TB, .) batch tile.

    bf16 operands into the MXU, f32 accumulation, f32 bias add + activation,
    re-cast to bf16 between layers, final tanh in f32.
    """
    # Layer 1 is split z/label so no host-side concat / K-padding is needed.
    # TODO(synk): optionally merge into one K=128-padded dot (minor, small-batch only).
    h = (jnp.dot(z_ref[...], w1z_ref[...], preferred_element_type=jnp.float32)
         + jnp.dot(lab_ref[...], w1l_ref[...], preferred_element_type=jnp.float32)
         + b1_ref[...])
    h = _leaky_relu(h).astype(jnp.bfloat16)                               # (TB, 256)

    h = jnp.dot(h, w2_ref[...], preferred_element_type=jnp.float32) + b2_ref[...]
    h = _leaky_relu(h).astype(jnp.bfloat16)                               # (TB, 512)

    h = jnp.dot(h, w3_ref[...], preferred_element_type=jnp.float32) + b3_ref[...]
    h = _leaky_relu(h).astype(jnp.bfloat16)                               # (TB, 1024)

    h = jnp.dot(h, w4_ref[...], preferred_element_type=jnp.float32) + b4_ref[...]
    o_ref[...] = jnp.tanh(h)                                              # (TB, 784) f32


def _choose_tile(B):
    """Batch tile size TB and padded batch Bp."""
    if B <= 128:
        # Single tile; round rows to a multiple of 16 so bf16 vregs pack fully.
        TB = max(16, ((B + 15) // 16) * 16)
    elif B <= 1024:
        # Exactly 2 tiles so both v7x TensorCores get work on the "parallel"
        # batch axis (no-op on single-TC v5e/v6e).
        TB = ((((B + 1) // 2) + 15) // 16) * 16
    else:
        # Large batches: 512-row tiles keep per-grid-step overhead negligible.
        TB = 512
    Bp = ((B + TB - 1) // TB) * TB
    return TB, Bp


def generator_forward(z, label, params):
    """z: (B, 100), label: (B, 10) -> (B, 28, 28) float32."""
    B = z.shape[0]
    z = z.reshape(B, D_Z)

    TB, Bp = _choose_tile(B)
    num_tiles = Bp // TB
    pad = Bp - B

    z_p = jnp.pad(z.astype(jnp.bfloat16), ((0, pad), (0, 0)))
    lab_p = jnp.pad(label.astype(jnp.bfloat16), ((0, pad), (0, 0)))

    (w1z, w1l, b1), (w2, b2), (w3, b3), (w4, b4) = params

    def batch_spec(cols):
        # Tiles along the batch axis; lane dim is either the full array dim
        # (100 / 10 / 784) so all blocks are legal, sublane TB % 8 == 0.
        return pl.BlockSpec((TB, cols), lambda i: (i, 0))

    def resident_spec(arr):
        # Constant block index -> weight/bias fetched once and kept VMEM
        # resident; single buffer (no pointless double-buffering).
        return pl.BlockSpec(arr.shape, lambda i: (0, 0),
                            pipeline_mode=pl.Buffered(1))

    out_full = pl.pallas_call(
        generator_mlp_kernel,
        out_shape=jax.ShapeDtypeStruct((Bp, D_OUT), jnp.float32),
        grid_spec=pltpu.PrefetchScalarGridSpec(
            num_scalar_prefetch=0,
            grid=(num_tiles,),
            in_specs=[
                batch_spec(D_Z), batch_spec(D_LAB),
                resident_spec(w1z), resident_spec(w1l), resident_spec(b1),
                resident_spec(w2), resident_spec(b2),
                resident_spec(w3), resident_spec(b3),
                resident_spec(w4), resident_spec(b4),
            ],
            out_specs=batch_spec(D_OUT),
        ),
        compiler_params=pltpu.CompilerParams(
            dimension_semantics=("parallel",),
            vmem_limit_bytes=(48 << 20) if TB >= 512 else (32 << 20),
        ),
    )(z_p, lab_p, w1z, w1l, b1, w2, b2, w3, b3, w4, b4)

    out = out_full if pad == 0 else out_full[:B]
    return out.reshape(B, 28, 28)


def init_params(key):
    """PyTorch-style Linear init: U(-1/sqrt(fan_in), 1/sqrt(fan_in)).

    Weights stored (in_features, out_features) in bf16; layer-1 weight is
    split into the z part (100 rows) and label part (10 rows). Biases are
    (1, out_features) f32. No output padding (kernel writes exact 784 lanes).
    """
    keys = jax.random.split(key, 4)

    def linear(k, din, dout, fan_in):
        kw, kb = jax.random.split(k)
        bound = 1.0 / jnp.sqrt(float(fan_in))
        w = jax.random.uniform(kw, (din, dout), jnp.float32, -bound, bound)
        b = jax.random.uniform(kb, (dout,), jnp.float32, -bound, bound)
        return w, b

    # Layer 1: fan_in = 110 (full concat), split into z/label row blocks.
    w1, b1 = linear(keys[0], D_Z + D_LAB, H1, D_Z + D_LAB)
    w1z = w1[:D_Z].astype(jnp.bfloat16)
    w1l = w1[D_Z:].astype(jnp.bfloat16)

    w2, b2 = linear(keys[1], H1, H2, H1)
    w3, b3 = linear(keys[2], H2, H3, H2)
    w4, b4 = linear(keys[3], H3, D_OUT, H3)

    return [
        (w1z, w1l, b1.reshape(1, H1)),
        (w2.astype(jnp.bfloat16), b2.reshape(1, H2)),
        (w3.astype(jnp.bfloat16), b3.reshape(1, H3)),
        (w4.astype(jnp.bfloat16), b4.reshape(1, D_OUT)),
    ]


def _reference_forward_mixed(z, label, params):
    """Pure-JAX reference mirroring the kernel's bf16/f32 mixed precision."""
    (w1z, w1l, b1), (w2, b2), (w3, b3), (w4, b4) = params
    zb = z.reshape(z.shape[0], D_Z).astype(jnp.bfloat16)
    lb = label.astype(jnp.bfloat16)
    h = (jnp.dot(zb, w1z, preferred_element_type=jnp.float32)
         + jnp.dot(lb, w1l, preferred_element_type=jnp.float32) + b1)
    h = _leaky_relu(h).astype(jnp.bfloat16)
    h = _leaky_relu(jnp.dot(h, w2, preferred_element_type=jnp.float32) + b2).astype(jnp.bfloat16)
    h = _leaky_relu(jnp.dot(h, w3, preferred_element_type=jnp.float32) + b3).astype(jnp.bfloat16)
    h = jnp.tanh(jnp.dot(h, w4, preferred_element_type=jnp.float32) + b4)
    return h.reshape(-1, 28, 28)


def _reference_forward_f32(z, label, params):
    """Full-f32 reference (the PyTorch forward, modulo bf16 weight storage)."""
    (w1z, w1l, b1), (w2, b2), (w3, b3), (w4, b4) = params
    x = jnp.concatenate([z.reshape(z.shape[0], D_Z), label.astype(jnp.float32)], axis=1)
    w1 = jnp.concatenate([w1z.astype(jnp.float32), w1l.astype(jnp.float32)], axis=0)
    h = _leaky_relu(x @ w1 + b1)
    h = _leaky_relu(h @ w2.astype(jnp.float32) + b2)
    h = _leaky_relu(h @ w3.astype(jnp.float32) + b3)
    h = jnp.tanh(h @ w4.astype(jnp.float32) + b4)
    return h.reshape(-1, 28, 28)


if __name__ == "__main__":
    key = jax.random.PRNGKey(0)
    k_params, k_z, k_lab = jax.random.split(key, 3)

    params = init_params(k_params)

    B = 2
    z = jax.random.normal(k_z, (B, 100), jnp.float32)
    labels_int = jax.random.randint(k_lab, (B,), 0, 10)
    label = jax.nn.one_hot(labels_int, 10, dtype=jnp.float32)

    out = generator_forward(z, label, params)
    out = jax.block_until_ready(out)

    assert out.shape == (B, 28, 28), out.shape
    assert bool(jnp.all(jnp.isfinite(out)))
    assert bool(jnp.all(jnp.abs(out) <= 1.0 + 1e-6))  # tanh range

    # Kernel vs same-precision (bf16 activations, f32 accum) reference: tight.
    ref_mixed = _reference_forward_mixed(z, label, params)
    err_mixed = float(jnp.max(jnp.abs(out - ref_mixed)))
    assert err_mixed < 2e-2, err_mixed

    # Kernel vs full-f32 reference: bounds the bf16 activation error vs the
    # true f32 PyTorch forward.
    ref_f32 = _reference_forward_f32(z, label, params)
    err_f32 = float(jnp.max(jnp.abs(out - ref_f32)))
    assert err_f32 < 1e-1, err_f32

    print("KERNEL_OK")
</pallas_src>

<mosaic_0001>
module attributes {stable_mosaic.version = 11 : i64} {
  func.func @generator_mlp_kernel(%arg0: i32, %arg1: memref<16x100xbf16, #tpu.memory_space<vmem>>, %arg2: memref<16x10xbf16, #tpu.memory_space<vmem>>, %arg3: memref<100x256xbf16, #tpu.memory_space<vmem>>, %arg4: memref<10x256xbf16, #tpu.memory_space<vmem>>, %arg5: memref<1x256xf32, #tpu.memory_space<vmem>>, %arg6: memref<256x512xbf16, #tpu.memory_space<vmem>>, %arg7: memref<1x512xf32, #tpu.memory_space<vmem>>, %arg8: memref<512x1024xbf16, #tpu.memory_space<vmem>>, %arg9: memref<1x1024xf32, #tpu.memory_space<vmem>>, %arg10: memref<1024x784xbf16, #tpu.memory_space<vmem>>, %arg11: memref<1x784xf32, #tpu.memory_space<vmem>>, %arg12: memref<16x784xf32, #tpu.memory_space<vmem>>) attributes {dimension_semantics = [#tpu.dimension_semantics<parallel>], iteration_bounds = array<i64: 1>, scalar_prefetch = 0 : i64, scratch_operands = 0 : i64, tpu.core_type = #tpu.core_type<tc>, window_params = [{transform_indices = @transform_0, window_bounds = array<i64: 16, 100>}, {transform_indices = @transform_1, window_bounds = array<i64: 16, 10>}, {pipeline_mode = #tpu.pipeline_mode<synchronous>, transform_indices = @transform_2, window_bounds = array<i64: 100, 256>}, {pipeline_mode = #tpu.pipeline_mode<synchronous>, transform_indices = @transform_3, window_bounds = array<i64: 10, 256>}, {pipeline_mode = #tpu.pipeline_mode<synchronous>, transform_indices = @transform_4, window_bounds = array<i64: 1, 256>}, {pipeline_mode = #tpu.pipeline_mode<synchronous>, transform_indices = @transform_5, window_bounds = array<i64: 256, 512>}, {pipeline_mode = #tpu.pipeline_mode<synchronous>, transform_indices = @transform_6, window_bounds = array<i64: 1, 512>}, {pipeline_mode = #tpu.pipeline_mode<synchronous>, transform_indices = @transform_7, window_bounds = array<i64: 512, 1024>}, {pipeline_mode = #tpu.pipeline_mode<synchronous>, transform_indices = @transform_8, window_bounds = array<i64: 1, 1024>}, {pipeline_mode = #tpu.pipeline_mode<synchronous>, transform_indices = @transform_9, window_bounds = array<i64: 1024, 784>}, {pipeline_mode = #tpu.pipeline_mode<synchronous>, transform_indices = @transform_10, window_bounds = array<i64: 1, 784>}, {transform_indices = @transform_11, window_bounds = array<i64: 16, 784>}]} {
    %c0 = arith.constant 0 : index
    %c0_0 = arith.constant 0 : index
    %0 = vector.load %arg1[%c0, %c0_0] : memref<16x100xbf16, #tpu.memory_space<vmem>>, vector<16x100xbf16>
    %c0_1 = arith.constant 0 : index
    %c0_2 = arith.constant 0 : index
    %1 = vector.load %arg3[%c0_1, %c0_2] : memref<100x256xbf16, #tpu.memory_space<vmem>>, vector<100x256xbf16>
    %cst = arith.constant dense<0.000000e+00> : vector<16x256xf32>
    %2 = tpu.matmul %0, %1, %cst {dimension_numbers = #tpu.dot_dimension_numbers<[1], [0], [0], [1], [0, 0, 1, 1], [], []>} : vector<16x100xbf16>, vector<100x256xbf16>, vector<16x256xf32> -> vector<16x256xf32>
    %c0_3 = arith.constant 0 : index
    %c0_4 = arith.constant 0 : index
    %3 = vector.load %arg2[%c0_3, %c0_4] : memref<16x10xbf16, #tpu.memory_space<vmem>>, vector<16x10xbf16>
    %c0_5 = arith.constant 0 : index
    %c0_6 = arith.constant 0 : index
    %4 = vector.load %arg4[%c0_5, %c0_6] : memref<10x256xbf16, #tpu.memory_space<vmem>>, vector<10x256xbf16>
    %cst_7 = arith.constant dense<0.000000e+00> : vector<16x256xf32>
    %5 = tpu.matmul %3, %4, %cst_7 {dimension_numbers = #tpu.dot_dimension_numbers<[1], [0], [0], [1], [0, 0, 1, 1], [], []>} : vector<16x10xbf16>, vector<10x256xbf16>, vector<16x256xf32> -> vector<16x256xf32>
    %6 = arith.addf %2, %5 : vector<16x256xf32>
    %c0_8 = arith.constant 0 : index
    %c0_9 = arith.constant 0 : index
    %7 = vector.load %arg5[%c0_8, %c0_9] : memref<1x256xf32, #tpu.memory_space<vmem>>, vector<1x256xf32>
    %8 = vector.broadcast %7 : vector<1x256xf32> to vector<16x256xf32>
    %9 = arith.addf %6, %8 : vector<16x256xf32>
    %cst_10 = arith.constant 2.000000e-01 : f32
    %10 = vector.broadcast %cst_10 : f32 to vector<16x256xf32>
    %11 = arith.mulf %10, %9 : vector<16x256xf32>
    %12 = arith.maximumf %9, %11 : vector<16x256xf32>
    %13 = arith.truncf %12 : vector<16x256xf32> to vector<16x256xbf16>
    %c0_11 = arith.constant 0 : index
    %c0_12 = arith.constant 0 : index
    %14 = vector.load %arg6[%c0_11, %c0_12] : memref<256x512xbf16, #tpu.memory_space<vmem>>, vector<256x512xbf16>
    %cst_13 = arith.constant dense<0.000000e+00> : vector<16x512xf32>
    %15 = tpu.matmul %13, %14, %cst_13 {dimension_numbers = #tpu.dot_dimension_numbers<[1], [0], [0], [1], [0, 0, 1, 1], [], []>} : vector<16x256xbf16>, vector<256x512xbf16>, vector<16x512xf32> -> vector<16x512xf32>
    %c0_14 = arith.constant 0 : index
    %c0_15 = arith.constant 0 : index
    %16 = vector.load %arg7[%c0_14, %c0_15] : memref<1x512xf32, #tpu.memory_space<vmem>>, vector<1x512xf32>
    %17 = vector.broadcast %16 : vector<1x512xf32> to vector<16x512xf32>
    %18 = arith.addf %15, %17 : vector<16x512xf32>
    %cst_16 = arith.constant 2.000000e-01 : f32
    %19 = vector.broadcast %cst_16 : f32 to vector<16x512xf32>
    %20 = arith.mulf %19, %18 : vector<16x512xf32>
    %21 = arith.maximumf %18, %20 : vector<16x512xf32>
    %22 = arith.truncf %21 : vector<16x512xf32> to vector<16x512xbf16>
    %c0_17 = arith.constant 0 : index
    %c0_18 = arith.constant 0 : index
    %23 = vector.load %arg8[%c0_17, %c0_18] : memref<512x1024xbf16, #tpu.memory_space<vmem>>, vector<512x1024xbf16>
    %cst_19 = arith.constant dense<0.000000e+00> : vector<16x1024xf32>
    %24 = tpu.matmul %22, %23, %cst_19 {dimension_numbers = #tpu.dot_dimension_numbers<[1], [0], [0], [1], [0, 0, 1, 1], [], []>} : vector<16x512xbf16>, vector<512x1024xbf16>, vector<16x1024xf32> -> vector<16x1024xf32>
    %c0_20 = arith.constant 0 : index
    %c0_21 = arith.constant 0 : index
    %25 = vector.load %arg9[%c0_20, %c0_21] : memref<1x1024xf32, #tpu.memory_space<vmem>>, vector<1x1024xf32>
    %26 = vector.broadcast %25 : vector<1x1024xf32> to vector<16x1024xf32>
    %27 = arith.addf %24, %26 : vector<16x1024xf32>
    %cst_22 = arith.constant 2.000000e-01 : f32
    %28 = vector.broadcast %cst_22 : f32 to vector<16x1024xf32>
    %29 = arith.mulf %28, %27 : vector<16x1024xf32>
    %30 = arith.maximumf %27, %29 : vector<16x1024xf32>
    %31 = arith.truncf %30 : vector<16x1024xf32> to vector<16x1024xbf16>
    %c0_23 = arith.constant 0 : index
    %c0_24 = arith.constant 0 : index
    %32 = vector.load %arg10[%c0_23, %c0_24] : memref<1024x784xbf16, #tpu.memory_space<vmem>>, vector<1024x784xbf16>
    %cst_25 = arith.constant dense<0.000000e+00> : vector<16x784xf32>
    %33 = tpu.matmul %31, %32, %cst_25 {dimension_numbers = #tpu.dot_dimension_numbers<[1], [0], [0], [1], [0, 0, 1, 1], [], []>} : vector<16x1024xbf16>, vector<1024x784xbf16>, vector<16x784xf32> -> vector<16x784xf32>
    %c0_26 = arith.constant 0 : index
    %c0_27 = arith.constant 0 : index
    %34 = vector.load %arg11[%c0_26, %c0_27] : memref<1x784xf32, #tpu.memory_space<vmem>>, vector<1x784xf32>
    %35 = vector.broadcast %34 : vector<1x784xf32> to vector<16x784xf32>
    %36 = arith.addf %33, %35 : vector<16x784xf32>
    %37 = math.tanh %36 : vector<16x784xf32>
    %c0_28 = arith.constant 0 : index
    %c0_29 = arith.constant 0 : index
    %38 = vector.load %arg12[%c0_28, %c0_29] : memref<16x784xf32, #tpu.memory_space<vmem>>, vector<16x784xf32>
    tpu.vector_store %arg12[%c0_28, %c0_29], %37 {strides = array<i32>} : memref<16x784xf32, #tpu.memory_space<vmem>>, vector<16x784xf32>,
    return
  }
  func.func @transform_0(%arg0: i32) -> (i32, i32) {
    %c0_i32 = arith.constant 0 : i32
    %c0_i32_0 = arith.constant 0 : i32
    return %arg0, %c0_i32 : i32, i32
  }
  func.func @transform_1(%arg0: i32) -> (i32, i32) {
    %c0_i32 = arith.constant 0 : i32
    %c0_i32_0 = arith.constant 0 : i32
    return %arg0, %c0_i32 : i32, i32
  }
  func.func @transform_2(%arg0: i32) -> (i32, i32) {
    %c0_i32 = arith.constant 0 : i32
    %c0_i32_0 = arith.constant 0 : i32
    %c0_i32_1 = arith.constant 0 : i32
    return %c0_i32, %c0_i32_0 : i32, i32
  }
  func.func @transform_3(%arg0: i32) -> (i32, i32) {
    %c0_i32 = arith.constant 0 : i32
    %c0_i32_0 = arith.constant 0 : i32
    %c0_i32_1 = arith.constant 0 : i32
    return %c0_i32, %c0_i32_0 : i32, i32
  }
  func.func @transform_4(%arg0: i32) -> (i32, i32) {
    %c0_i32 = arith.constant 0 : i32
    %c0_i32_0 = arith.constant 0 : i32
    %c0_i32_1 = arith.constant 0 : i32
    return %c0_i32, %c0_i32_0 : i32, i32
  }
  func.func @transform_5(%arg0: i32) -> (i32, i32) {
    %c0_i32 = arith.constant 0 : i32
    %c0_i32_0 = arith.constant 0 : i32
    %c0_i32_1 = arith.constant 0 : i32
    return %c0_i32, %c0_i32_0 : i32, i32
  }
  func.func @transform_6(%arg0: i32) -> (i32, i32) {
    %c0_i32 = arith.constant 0 : i32
    %c0_i32_0 = arith.constant 0 : i32
    %c0_i32_1 = arith.constant 0 : i32
    return %c0_i32, %c0_i32_0 : i32, i32
  }
  func.func @transform_7(%arg0: i32) -> (i32, i32) {
    %c0_i32 = arith.constant 0 : i32
    %c0_i32_0 = arith.constant 0 : i32
    %c0_i32_1 = arith.constant 0 : i32
    return %c0_i32, %c0_i32_0 : i32, i32
  }
  func.func @transform_8(%arg0: i32) -> (i32, i32) {
    %c0_i32 = arith.constant 0 : i32
    %c0_i32_0 = arith.constant 0 : i32
    %c0_i32_1 = arith.constant 0 : i32
    return %c0_i32, %c0_i32_0 : i32, i32
  }
  func.func @transform_9(%arg0: i32) -> (i32, i32) {
    %c0_i32 = arith.constant 0 : i32
    %c0_i32_0 = arith.constant 0 : i32
    %c0_i32_1 = arith.constant 0 : i32
    return %c0_i32, %c0_i32_0 : i32, i32
  }
  func.func @transform_10(%arg0: i32) -> (i32, i32) {
    %c0_i32 = arith.constant 0 : i32
    %c0_i32_0 = arith.constant 0 : i32
    %c0_i32_1 = arith.constant 0 : i32
    return %c0_i32, %c0_i32_0 : i32, i32
  }
  func.func @transform_11(%arg0: i32) -> (i32, i32) {
    %c0_i32 = arith.constant 0 : i32
    %c0_i32_0 = arith.constant 0 : i32
    return %arg0, %c0_i32 : i32, i32
  }
}

</mosaic_0001>

<bundles_post_ra>
// kernel: tpu_custom_call.1
= control target key start
LH: loop header
LB: loop body
LE: loop exit
PB: predicated region body
PF: predicated region fallthrough
CT: control target
= control target key end

     0   :  { %v8107_v2 = vmov 0   ;;  %vm76_vm0 = vcmask 1044480   ;;  %vm72_vm1 = vcmask 80896   ;;  %vm200_vm2 = vcmask 1041408   ;;  %s10717_s0 = inlined_call_operand.vmem [shape: bf16[16,100], index: 0, kind: input, shape index: {}]   ;;  %s10718_s1 = inlined_call_operand.vmem [shape: bf16[16,10], index: 1, kind: input, shape index: {}]   ;;  %s10719_s2 = inlined_call_operand.vmem [shape: bf16[100,256], index: 2, kind: input, shape index: {}]   ;;  %s10720_s3 = inlined_call_operand.vmem [shape: bf16[10,256], index: 3, kind: input, shape index: {}]   ;;  %s10721_s4 = inlined_call_operand.vmem [shape: f32[1,256], index: 4, kind: input, shape index: {}]   ;;  %s10722_s5 = inlined_call_operand.vmem [shape: bf16[256,512], index: 5, kind: input, shape index: {}]   ;;  %s10723_s6 = inlined_call_operand.vmem [shape: f32[1,512], index: 6, kind: input, shape index: {}]   ;;  %s10724_s7 = inlined_call_operand.vmem [shape: bf16[512,1024], index: 7, kind: input, shape index: {}]   ;;  %s10725_s8 = inlined_call_operand.vmem [shape: f32[1,1024], index: 8, kind: input, shape index: {}]   ;;  %s10726_s9 = inlined_call_operand.vmem [shape: bf16[1024,784], index: 9, kind: input, shape index: {}]   ;;  %s10727_s10 = inlined_call_operand.vmem [shape: f32[1,784], index: 10, kind: input, shape index: {}]   ;;  %s10728_s11 = inlined_call_operand.hbm [shape: f32[16,784], index: 11, kind: output, shape index: {}]  }
   0x1   :  { %v7294_v0 = vld [vmem:[%s10719_s2 + $0x4] ss:$8 sps:$4 sm:$0xff]   ;;  %v7296_v1 = vld [vmem:[%s10719_s2] ss:$8 sps:$4 sm:$0xff]   ;;  %115 = vmatprep.mubr.bf16.mxu1 %v8107_v2  ;;  %239 = vmatprep.mubr.bf16.mxu0 %v8107_v2  ;;  %v7297_v3 = vld [vmem:[%s10719_s2 + $0x14] ss:$8 sps:$4 sm:$0xff]  }
   0x2   :  { %207 = vmatprep.subr.bf16.mxu0 %v7294_v0  ;;  %v7299_v4 = vld [vmem:[%s10719_s2 + $0x10] ss:$8 sps:$4 sm:$0xff]   ;;  %v7300_v5 = vld [vmem:[%s10719_s2 + $0x24] ss:$8 sps:$4 sm:$0xff]   ;;  %v7302_v6 = vld [vmem:[%s10719_s2 + $0x20] ss:$8 sps:$4 sm:$0xff]  }
   0x3   :  { %208 = vmatpush1.bf16.msra.mxu0 %v7296_v1  ;;  %v7303_v7 = vld [vmem:[%s10719_s2 + $0x34] ss:$8 sps:$4 sm:$0xff]   ;;  %v7311_v8 = vld [vmem:[%s10720_s3 + $0x4] ss:$8 sps:$4 sm:$0x1f]   ;;  %vm196_vm3 = vcmask 818176  }
   0x4   :  { %209 = vmatprep.subr.bf16.mxu0 %v7297_v3  ;;  %v7305_v9 = vld [vmem:[%s10719_s2 + $0x30] ss:$8 sps:$4 sm:$0xff]   ;;  %v7314_v10 = vld [vmem:[%s10720_s3] ss:$8 sps:$4 sm:$0x1f]   ;;  %6331 = vmatprep.subr.msk.bf16.mxu1 %vm76_vm0, %v7311_v8 }
   0x5   :  { %v7316_v11 = vld [vmem:[%s10718_s1] sm:$0xff]   ;;  %v78_v12 = vsel %vm76_vm0, %v7314_v10, 0  ;;  %v7309_v15 = vld [vmem:[%s10719_s2 + $0x54] ss:$8 sps:$4 sm:$0xff]   ;;  %v7313_v17 = vld [vmem:[%s10719_s2 + $0x50] ss:$8 sps:$4 sm:$0xff]  }
   0x6   :  { %v7306_v13 = vld [vmem:[%s10719_s2 + $0x44] ss:$8 sps:$4 sm:$0xff]   ;;  %84 = vmatpush1.bf16.msra.mxu1 %v78_v12  ;;  %v7308_v14 = vld [vmem:[%s10719_s2 + $0x40] ss:$8 sps:$4 sm:$0xff]  }
   0x7   :  { %210 = vmatpush1.bf16.msra.mxu0 %v7299_v4  ;;  %v54_v16 = vld [vmem:[%s10719_s2 + $0x60] sm:$0x33]  ;;  %v7369_v54 = vld [vmem:[%s10722_s5 + $0xc] ss:$16 sps:$4 sm:$0xff]  }
   0x8   :  { %211 = vmatprep.subr.bf16.mxu0 %v7300_v5  ;;  %v6347_v18 = vcombine.high %v54_v16, %v54_v16  ;;  %v6346_v19 = vcombine.low %v54_v16, %v54_v16  ;;  %v7321_v21 = vld [vmem:[%s10722_s5 + $0x4] ss:$16 sps:$4 sm:$0xff]   ;;  %v7319_v23 = vld [vmem:[%s10722_s5] ss:$16 sps:$4 sm:$0xff]  }
   0x9   :  { %6332 = vmatmul.mubr.msk.bf16.vlgmr.msra.gmra.mrb[0].mxu1 %vm72_vm1, %v7316_v11  ;;  %v7318_v22 = vld [vmem:[%s10717_s0] sm:$0xff]  }
   0xa   :  { %v202_v20 = vsel %vm200_vm2, %v6346_v19, 0  ;;  %v7324_v24 = vld [vmem:[%s10722_s5 + $0x24] ss:$16 sps:$4 sm:$0xff]   ;;  %v7322_v25 = vld [vmem:[%s10722_s5 + $0x20] ss:$16 sps:$4 sm:$0xff]  }
   0xb   :  { %212 = vmatpush1.bf16.msra.mxu0 %v7302_v6  ;;  %v7327_v26 = vld [vmem:[%s10722_s5 + $0x44] ss:$16 sps:$4 sm:$0xff]   ;;  %v7325_v27 = vld [vmem:[%s10722_s5 + $0x40] ss:$16 sps:$4 sm:$0xff]  }
   0xc   :  { %213 = vmatprep.subr.bf16.mxu0 %v7303_v7  ;;  %v7330_v28 = vld [vmem:[%s10722_s5 + $0x64] ss:$16 sps:$4 sm:$0xff]   ;;  %v7328_v29 = vld [vmem:[%s10722_s5 + $0x60] ss:$16 sps:$4 sm:$0xff]  }
   0xd   :  { %v7333_v30 = vld [vmem:[%s10722_s5 + $0x84] ss:$16 sps:$4 sm:$0xff]   ;;  %v7331_v31 = vld [vmem:[%s10722_s5 + $0x80] ss:$16 sps:$4 sm:$0xff]  }
   0xe   :  { %v7336_v32 = vld [vmem:[%s10722_s5 + $0xa4] ss:$16 sps:$4 sm:$0xff]   ;;  %v7334_v33 = vld [vmem:[%s10722_s5 + $0xa0] ss:$16 sps:$4 sm:$0xff]  }
   0xf   :  { %214 = vmatpush1.bf16.msra.mxu0 %v7305_v9  ;;  %v7339_v34 = vld [vmem:[%s10722_s5 + $0xc4] ss:$16 sps:$4 sm:$0xff]   ;;  %v7337_v35 = vld [vmem:[%s10722_s5 + $0xc0] ss:$16 sps:$4 sm:$0xff]  }
  0x10   :  { %215 = vmatprep.subr.bf16.mxu0 %v7306_v13  ;;  %v7342_v36 = vld [vmem:[%s10722_s5 + $0xe4] ss:$16 sps:$4 sm:$0xff]   ;;  %v7340_v37 = vld [vmem:[%s10722_s5 + $0xe0] ss:$16 sps:$4 sm:$0xff]  }
  0x11   :  { %v7345_v38 = vld [vmem:[%s10722_s5 + $0x104] ss:$16 sps:$4 sm:$0xff]   ;;  %v7343_v39 = vld [vmem:[%s10722_s5 + $0x100] ss:$16 sps:$4 sm:$0xff]  }
  0x12   :  { %v7348_v40 = vld [vmem:[%s10722_s5 + $0x124] ss:$16 sps:$4 sm:$0xff]   ;;  %v7346_v41 = vld [vmem:[%s10722_s5 + $0x120] ss:$16 sps:$4 sm:$0xff]  }
  0x13   :  { %216 = vmatpush1.bf16.msra.mxu0 %v7308_v14  ;;  %v7351_v42 = vld [vmem:[%s10722_s5 + $0x144] ss:$16 sps:$4 sm:$0xff]   ;;  %v7349_v43 = vld [vmem:[%s10722_s5 + $0x140] ss:$16 sps:$4 sm:$0xff]  }
  0x14   :  { %217 = vmatprep.subr.bf16.mxu0 %v7309_v15  ;;  %v7354_v44 = vld [vmem:[%s10722_s5 + $0x164] ss:$16 sps:$4 sm:$0xff]   ;;  %v7352_v45 = vld [vmem:[%s10722_s5 + $0x160] ss:$16 sps:$4 sm:$0xff]  }
  0x15   :  { %v7355_v46 = vld [vmem:[%s10722_s5 + $0x180] ss:$16 sps:$4 sm:$0xff]   ;;  %v7357_v47 = vld [vmem:[%s10722_s5 + $0x184] ss:$16 sps:$4 sm:$0xff]  }
  0x16   :  { %v7360_v48 = vld [vmem:[%s10722_s5 + $0x1a4] ss:$16 sps:$4 sm:$0xff]   ;;  %v7358_v49 = vld [vmem:[%s10722_s5 + $0x1a0] ss:$16 sps:$4 sm:$0xff]  }
  0x17   :  { %218 = vmatpush1.bf16.msra.mxu0 %v7313_v17  ;;  %v7363_v50 = vld [vmem:[%s10722_s5 + $0x1c4] ss:$16 sps:$4 sm:$0xff]   ;;  %v7361_v51 = vld [vmem:[%s10722_s5 + $0x1c0] ss:$16 sps:$4 sm:$0xff]  }
  0x18   :  { %6348 = vmatprep.subr.msk.bf16.mxu0 %vm200_vm2, %v6347_v18  ;;  %v7366_v52 = vld [vmem:[%s10722_s5 + $0x1e4] ss:$16 sps:$4 sm:$0xff]   ;;  %v7364_v53 = vld [vmem:[%s10722_s5 + $0x1e0] ss:$16 sps:$4 sm:$0xff]  }
  0x19   :  { %v788_v55 = vld [vmem:[%s10724_s7] sm:$0xff] }
  0x1a   :  { %v792_v56 = vld [vmem:[%s10724_s7 + $0x20] sm:$0xff] }
  0x1b   :  { %220 = vmatpush1.bf16.msra.mxu0 %v202_v20  ;;  %v6414_v57 = vcombine.low %v788_v55, %v792_v56  ;;  %v6415_v58 = vcombine.high %v788_v55, %v792_v56  ;;  %v796_v59 = vld [vmem:[%s10724_s7 + $0x40] sm:$0xff] }
  0x1c   :  { %682 = vmatprep.subr.bf16.mxu0 %v7321_v21  ;;  %v800_v60 = vld [vmem:[%s10724_s7 + $0x60] sm:$0xff] }
  0x1d   :  { %v6423_v61 = vcombine.high %v796_v59, %v800_v60  ;;  %2366 = vmatprep.subr.bf16.mxu1 %v6415_v58  ;;  %v6422_v62 = vcombine.low %v796_v59, %v800_v60  ;;  %v804_v63 = vld [vmem:[%s10724_s7 + $0x80] sm:$0xff] }
  0x1e   :  { %6349 = vmatmul.mubr.msk.bf16.vlgmr.msra.gmra.mrb[0].mxu0 %vm196_vm3, %v7318_v22  ;;  %2367 = vmatpush1.bf16.msra.mxu1 %v6414_v57  ;;  %v808_v0 = vld [vmem:[%s10724_s7 + $0xa0] sm:$0xff] }
  0x1f   :  { %683 = vmatpush1.bf16.msra.mxu0 %v7319_v23  ;;  %2368 = vmatprep.subr.bf16.mxu1 %v6423_v61  ;;  %v6431_v1 = vcombine.high %v804_v63, %v808_v0  ;;  %v6430_v2 = vcombine.low %v804_v63, %v808_v0  ;;  %v812_v3 = vld [vmem:[%s10724_s7 + $0xc0] sm:$0xff] }
  0x20   :  { %684 = vmatprep.subr.bf16.mxu0 %v7324_v24  ;;  %v816_v4 = vld [vmem:[%s10724_s7 + $0xe0] sm:$0xff] }
  0x21   :  { %v6439_v5 = vcombine.high %v812_v3, %v816_v4  ;;  %v6438_v6 = vcombine.low %v812_v3, %v816_v4  ;;  %v820_v7 = vld [vmem:[%s10724_s7 + $0x100] sm:$0xff] }
  0x22   :  { %2369 = vmatpush1.bf16.msra.mxu1 %v6422_v62  ;;  %v824_v8 = vld [vmem:[%s10724_s7 + $0x120] sm:$0xff] }
  0x23   :  { %685 = vmatpush1.bf16.msra.mxu0 %v7322_v25  ;;  %2370 = vmatprep.subr.bf16.mxu1 %v6431_v1  ;;  %v6447_v9 = vcombine.high %v820_v7, %v824_v8  ;;  %v6446_v10 = vcombine.low %v820_v7, %v824_v8  ;;  %v828_v11 = vld [vmem:[%s10724_s7 + $0x140] sm:$0xff] }
  0x24   :  { %686 = vmatprep.subr.bf16.mxu0 %v7327_v26  ;;  %v832_v12 = vld [vmem:[%s10724_s7 + $0x160] sm:$0xff] }
  0x25   :  { %v6455_v13 = vcombine.high %v828_v11, %v832_v12  ;;  %v6454_v14 = vcombine.low %v828_v11, %v832_v12  ;;  %v836_v15 = vld [vmem:[%s10724_s7 + $0x180] sm:$0xff] }
  0x26   :  { %2371 = vmatpush1.bf16.msra.mxu1 %v6430_v2  ;;  %v840_v16 = vld [vmem:[%s10724_s7 + $0x1a0] sm:$0xff] }
  0x27   :  { %687 = vmatpush1.bf16.msra.mxu0 %v7325_v27  ;;  %2372 = vmatprep.subr.bf16.mxu1 %v6439_v5  ;;  %v6463_v17 = vcombine.high %v836_v15, %v840_v16  ;;  %v6462_v18 = vcombine.low %v836_v15, %v840_v16  ;;  %v844_v19 = vld [vmem:[%s10724_s7 + $0x1c0] sm:$0xff] }
  0x28   :  { %688 = vmatprep.subr.bf16.mxu0 %v7330_v28  ;;  %v848_v20 = vld [vmem:[%s10724_s7 + $0x1e0] sm:$0xff] }
  0x29   :  { %v6471_v21 = vcombine.high %v844_v19, %v848_v20  ;;  %v6470_v22 = vcombine.low %v844_v19, %v848_v20  ;;  %v852_v23 = vld [vmem:[%s10724_s7 + $0x200] sm:$0xff] }
  0x2a   :  { %2373 = vmatpush1.bf16.msra.mxu1 %v6438_v6  ;;  %v856_v24 = vld [vmem:[%s10724_s7 + $0x220] sm:$0xff] }
  0x2b   :  { %689 = vmatpush1.bf16.msra.mxu0 %v7328_v29  ;;  %2374 = vmatprep.subr.bf16.mxu1 %v6447_v9  ;;  %v6479_v25 = vcombine.high %v852_v23, %v856_v24  ;;  %v6478_v26 = vcombine.low %v852_v23, %v856_v24  ;;  %v860_v27 = vld [vmem:[%s10724_s7 + $0x240] sm:$0xff] }
  0x2c   :  { %690 = vmatprep.subr.bf16.mxu0 %v7333_v30  ;;  %v864_v28 = vld [vmem:[%s10724_s7 + $0x260] sm:$0xff] }
  0x2d   :  { %v6487_v30 = vcombine.high %v860_v27, %v864_v28 }
  0x2e   :  { %2375 = vmatpush1.bf16.msra.mxu1 %v6446_v10 }
  0x2f   :  { %691 = vmatpush1.bf16.msra.mxu0 %v7331_v31  ;;  %2376 = vmatprep.subr.bf16.mxu1 %v6455_v13 }
  0x30   :  { %692 = vmatprep.subr.bf16.mxu0 %v7336_v32 }
  0x32   :  { %2377 = vmatpush1.bf16.msra.mxu1 %v6454_v14 }
  0x33   :  { %693 = vmatpush1.bf16.msra.mxu0 %v7334_v33  ;;  %2378 = vmatprep.subr.bf16.mxu1 %v6463_v17  ;;  %v252_v33 = vlaneseq }
  0x34   :  { %694 = vmatprep.subr.bf16.mxu0 %v7339_v34  ;;  %v6486_v34 = vcombine.low %v860_v27, %v864_v28 }
  0x36   :  { %2379 = vmatpush1.bf16.msra.mxu1 %v6462_v18 }
  0x37   :  { %695 = vmatpush1.bf16.msra.mxu0 %v7337_v35  ;;  %2380 = vmatprep.subr.bf16.mxu1 %v6471_v21 }
  0x38   :  { %696 = vmatprep.subr.bf16.mxu0 %v7342_v36  ;;  %v868_v36 = vld [vmem:[%s10724_s7 + $0x280] sm:$0xff] }
  0x3a   :  { %2381 = vmatpush1.bf16.msra.mxu1 %v6470_v22 }
  0x3b   :  { %697 = vmatpush1.bf16.msra.mxu0 %v7340_v37  ;;  %2382 = vmatprep.subr.bf16.mxu1 %v6479_v25  ;;  %v872_v37 = vld [vmem:[%s10724_s7 + $0x2a0] sm:$0xff] }
  0x3c   :  { %698 = vmatprep.subr.bf16.mxu0 %v7345_v38  ;;  %v6495_v38 = vcombine.high %v868_v36, %v872_v37 }
  0x3e   :  { %2383 = vmatpush1.bf16.msra.mxu1 %v6478_v26 }
  0x3f   :  { %699 = vmatpush1.bf16.msra.mxu0 %v7343_v39  ;;  %2384 = vmatprep.subr.bf16.mxu1 %v6487_v30  ;;  %v8387_v39 = vshrl.u32 %v252_v33, 7 }
  0x40   :  { %700 = vmatprep.subr.bf16.mxu0 %v7348_v40  ;;  %v6494_v40 = vcombine.low %v868_v36, %v872_v37 }
  0x42   :  { %2385 = vmatpush1.bf16.msra.mxu1 %v6486_v34 }
  0x43   :  { %701 = vmatpush1.bf16.msra.mxu0 %v7346_v41  ;;  %2386 = vmatprep.subr.bf16.mxu1 %v6495_v38  ;;  %v876_v41 = vld [vmem:[%s10724_s7 + $0x2c0] sm:$0xff] }
  0x44   :  { %702 = vmatprep.subr.bf16.mxu0 %v7351_v42  ;;  %v880_v42 = vld [vmem:[%s10724_s7 + $0x2e0] sm:$0xff] }
  0x46   :  { %2387 = vmatpush1.bf16.msra.mxu1 %v6494_v40 }
  0x47   :  { %703 = vmatpush1.bf16.msra.mxu0 %v7349_v43  ;;  %v6503_v43 = vcombine.high %v876_v41, %v880_v42 }
  0x48   :  { %704 = vmatprep.subr.bf16.mxu0 %v7354_v44  ;;  %v8396_v44 = vsub.s32 0, %v8387_v39 }
  0x49   :  { %2388 = vmatprep.subr.bf16.mxu1 %v6503_v43 }
  0x4b   :  { %705 = vmatpush1.bf16.msra.mxu0 %v7352_v45  ;;  %v6502_v45 = vcombine.low %v876_v41, %v880_v42 }
  0x4c   :  { %706 = vmatprep.subr.bf16.mxu0 %v7357_v47  ;;  %v8402_v47 = vsub.s32 1, %v8387_v39 }
  0x4d   :  { %2389 = vmatpush1.bf16.msra.mxu1 %v6502_v45 }
  0x4f   :  { %707 = vmatpush1.bf16.msra.mxu0 %v7355_v46  ;;  %v250_v46 = vld [vmem:[%s10721_s4] sm:$0x3] }
  0x50   :  { %708 = vmatprep.subr.bf16.mxu0 %v7360_v48  ;;  %v884_v48 = vld [vmem:[%s10724_s7 + $0x300] sm:$0xff] }
  0x53   :  { %709 = vmatpush1.bf16.msra.mxu0 %v7358_v49  ;;  %v888_v49 = vld [vmem:[%s10724_s7 + $0x320] sm:$0xff] }
  0x54   :  { %710 = vmatprep.subr.bf16.mxu0 %v7363_v50  ;;  %v6511_v50 = vcombine.high %v884_v48, %v888_v49 }
  0x56   :  { %2390 = vmatprep.subr.bf16.mxu1 %v6511_v50 }
  0x57   :  { %711 = vmatpush1.bf16.msra.mxu0 %v7361_v51  ;;  %v255_v51 = vrot.slane %v250_v46, %v8396_v44 }
  0x58   :  { %712 = vmatprep.subr.bf16.mxu0 %v7366_v52  ;;  %v6510_v52 = vcombine.low %v884_v48, %v888_v49 }
  0x5b   :  { %713 = vmatpush1.bf16.msra.mxu0 %v7364_v53 }
  0x5c   :  { %725 = vmatprep.subr.bf16.mxu0 %v7369_v54  ;;  %v259_v54 = vrot.slane %v250_v46, %v8402_v47 }
  0xdc   :  { %v117_v29 = vpop.f32.mrb[0].mxu1 }
  0xdd   :  { %v119_v31 = vpop.f32.mrb[1].mxu1 }
  0xde   :  { %v121_v32 = vpop.f32.mrb[2].mxu1 }
  0xdf   :  { %v123_v35 = vpop.f32.mrb[3].mxu1 }
  0xf1   :  { %v241_v53 = vpop.f32.mrb[0].mxu0 }
  0xf2   :  { %v242_v55 = vadd.f32 %v241_v53, %v117_v29  ;;  %v243_v56 = vpop.f32.mrb[1].mxu0 }
  0xf3   :  { %v244_v57 = vadd.f32 %v243_v56, %v119_v31  ;;  %v245_v58 = vpop.f32.mrb[2].mxu0 }
  0xf4   :  { %16 = vsyncpa [#allocation3], 0  ;;  %v262_v59 = vadd.f32 %v255_v51, %v242_v55  ;;  %v246_v60 = vadd.f32 %v245_v58, %v121_v32  ;;  %v247_v61 = vpop.f32.mrb[3].mxu0  ;;  %2391 = vmatpush1.bf16.msra.mxu1 %v6510_v52  ;;  %v7367_v12 = vld [vmem:[%s10722_s5 + $0x8] ss:$16 sps:$4 sm:$0xff]   ;;  %vm6303_vm4 = vcmask 130048  }
  0xf5   :  { %v263_v62 = vadd.f32 %v259_v54, %v244_v57  ;;  %v248_v63 = vadd.f32 %v247_v61, %v123_v35  ;;  %v7372_v13 = vld [vmem:[%s10722_s5 + $0x2c] ss:$16 sps:$4 sm:$0xff]   ;;  %v7370_v14 = vld [vmem:[%s10722_s5 + $0x28] ss:$16 sps:$4 sm:$0xff]  }
  0xf6   :  { %v266_v0 = vmul.f32 0.2, %v262_v59  ;;  %v264_v1 = vadd.f32 %v255_v51, %v246_v60  ;;  %v7375_v15 = vld [vmem:[%s10722_s5 + $0x4c] ss:$16 sps:$4 sm:$0xff]   ;;  %v7373_v16 = vld [vmem:[%s10722_s5 + $0x48] ss:$16 sps:$4 sm:$0xff]  }
  0xf7   :  { %v267_v2 = vmul.f32 0.2, %v263_v62  ;;  %v265_v3 = vadd.f32 %v259_v54, %v248_v63  ;;  %v7378_v17 = vld [vmem:[%s10722_s5 + $0x6c] ss:$16 sps:$4 sm:$0xff]   ;;  %v7376_v18 = vld [vmem:[%s10722_s5 + $0x68] ss:$16 sps:$4 sm:$0xff]  }
  0xf8   :  { %v268_v4 = vmul.f32 0.2, %v264_v1  ;;  %v270_v6 = vmax.f32 %v262_v59, %v266_v0  ;;  %v7381_v19 = vld [vmem:[%s10722_s5 + $0x8c] ss:$16 sps:$4 sm:$0xff]   ;;  %v7379_v20 = vld [vmem:[%s10722_s5 + $0x88] ss:$16 sps:$4 sm:$0xff]  }
  0xf9   :  { %v269_v5 = vmul.f32 0.2, %v265_v3  ;;  %v271_v8 = vmax.f32 %v263_v62, %v267_v2  ;;  %v7384_v21 = vld [vmem:[%s10722_s5 + $0xac] ss:$16 sps:$4 sm:$0xff]   ;;  %v7382_v22 = vld [vmem:[%s10722_s5 + $0xa8] ss:$16 sps:$4 sm:$0xff]  }
  0xfa   :  { %v272_v7 = vmax.f32 %v264_v1, %v268_v4  ;;  %v7387_v23 = vld [vmem:[%s10722_s5 + $0xcc] ss:$16 sps:$4 sm:$0xff]   ;;  %v7385_v24 = vld [vmem:[%s10722_s5 + $0xc8] ss:$16 sps:$4 sm:$0xff]  }
  0xfb   :  { %v273_v9 = vmax.f32 %v265_v3, %v269_v5  ;;  %v7390_v25 = vld [vmem:[%s10722_s5 + $0xec] ss:$16 sps:$4 sm:$0xff]   ;;  %v7388_v26 = vld [vmem:[%s10722_s5 + $0xe8] ss:$16 sps:$4 sm:$0xff]  }
  0xfc   :  { %v8412_v10 = vpack.c.bf16 %v272_v7, %v270_v6  ;;  %v7393_v27 = vld [vmem:[%s10722_s5 + $0x10c] ss:$16 sps:$4 sm:$0xff]   ;;  %v7391_v28 = vld [vmem:[%s10722_s5 + $0x108] ss:$16 sps:$4 sm:$0xff]  }
  0xfd   :  { %v275_v11 = vpack.c.bf16 %v273_v9, %v271_v8  ;;  %v7396_v29 = vld [vmem:[%s10722_s5 + $0x12c] ss:$16 sps:$4 sm:$0xff]   ;;  %v7394_v30 = vld [vmem:[%s10722_s5 + $0x128] ss:$16 sps:$4 sm:$0xff]   ;;  %v892_v8 = vld [vmem:[%s10724_s7 + $0x340] sm:$0xff] }
  0xfe   :  { %v7399_v31 = vld [vmem:[%s10722_s5 + $0x14c] ss:$16 sps:$4 sm:$0xff]   ;;  %v7397_v32 = vld [vmem:[%s10722_s5 + $0x148] ss:$16 sps:$4 sm:$0xff]   ;;  %v896_v9 = vld [vmem:[%s10724_s7 + $0x360] sm:$0xff] }
  0xff   :  { %714 = vmatprep.mubr.bf16.mxu0 %v275_v11  ;;  %v7402_v33 = vld [vmem:[%s10722_s5 + $0x16c] ss:$16 sps:$4 sm:$0xff]   ;;  %v7400_v34 = vld [vmem:[%s10722_s5 + $0x168] ss:$16 sps:$4 sm:$0xff]  }
 0x100   :  { %715 = vmatmul.mubr.bf16.vlgmr.msra.gmra.mrb[4].mxu0 %v8412_v10  ;;  %v7405_v35 = vld [vmem:[%s10722_s5 + $0x18c] ss:$16 sps:$4 sm:$0xff]   ;;  %v7403_v36 = vld [vmem:[%s10722_s5 + $0x188] ss:$16 sps:$4 sm:$0xff]  }
 0x101   :  { %726 = vmatpush1.bf16.msra.mxu0 %v7367_v12  ;;  %757 = vmatprep.mubr.bf16.mxu0 %v275_v11  ;;  %v7408_v37 = vld [vmem:[%s10722_s5 + $0x1ac] ss:$16 sps:$4 sm:$0xff]   ;;  %v7406_v38 = vld [vmem:[%s10722_s5 + $0x1a8] ss:$16 sps:$4 sm:$0xff]   ;;  %v6519_v11 = vcombine.high %v892_v8, %v896_v9 }
 0x102   :  { %727 = vmatprep.subr.bf16.mxu0 %v7372_v13  ;;  %v7411_v40 = vld [vmem:[%s10722_s5 + $0x1cc] ss:$16 sps:$4 sm:$0xff]   ;;  %v7409_v41 = vld [vmem:[%s10722_s5 + $0x1c8] ss:$16 sps:$4 sm:$0xff]  }
 0x103   :  { %v7414_v42 = vld [vmem:[%s10722_s5 + $0x1ec] ss:$16 sps:$4 sm:$0xff]   ;;  %v7412_v46 = vld [vmem:[%s10722_s5 + $0x1e8] ss:$16 sps:$4 sm:$0xff]   ;;  %2392 = vmatprep.subr.bf16.mxu1 %v6519_v11 }
 0x104   :  { %v789_v43 = vld [vmem:[%s10724_s7 + $0x8] sm:$0xff] }
 0x105   :  { %728 = vmatpush1.bf16.msra.mxu0 %v7370_v14  ;;  %v793_v45 = vld [vmem:[%s10724_s7 + $0x28] sm:$0xff]  ;;  %v6518_v14 = vcombine.low %v892_v8, %v896_v9 }
 0x106   :  { %729 = vmatprep.subr.bf16.mxu0 %v7375_v15  ;;  %v6417_v48 = vcombine.high %v789_v43, %v793_v45  ;;  %v797_v49 = vld [vmem:[%s10724_s7 + $0x48] sm:$0xff]  ;;  %v6416_v51 = vcombine.low %v789_v43, %v793_v45 }
 0x107   :  { %v801_v50 = vld [vmem:[%s10724_s7 + $0x68] sm:$0xff]  ;;  %2393 = vmatpush1.bf16.msra.mxu1 %v6518_v14 }
 0x108   :  { %v6425_v52 = vcombine.high %v797_v49, %v801_v50  ;;  %v805_v53 = vld [vmem:[%s10724_s7 + $0x88] sm:$0xff]  ;;  %v6424_v55 = vcombine.low %v797_v49, %v801_v50 }
 0x109   :  { %730 = vmatpush1.bf16.msra.mxu0 %v7373_v16  ;;  %v809_v54 = vld [vmem:[%s10724_s7 + $0xa8] sm:$0xff]  ;;  %v900_v16 = vld [vmem:[%s10724_s7 + $0x380] sm:$0xff] }
 0x10a   :  { %731 = vmatprep.subr.bf16.mxu0 %v7378_v17  ;;  %v6433_v56 = vcombine.high %v805_v53, %v809_v54  ;;  %v813_v57 = vld [vmem:[%s10724_s7 + $0xc8] sm:$0xff]  ;;  %v6432_v59 = vcombine.low %v805_v53, %v809_v54  ;;  %v904_v17 = vld [vmem:[%s10724_s7 + $0x3a0] sm:$0xff] }
 0x10b   :  { %v817_v58 = vld [vmem:[%s10724_s7 + $0xe8] sm:$0xff] }
 0x10c   :  { %v6441_v60 = vcombine.high %v813_v57, %v817_v58  ;;  %v821_v61 = vld [vmem:[%s10724_s7 + $0x108] sm:$0xff]  ;;  %v6440_v63 = vcombine.low %v813_v57, %v817_v58 }
 0x10d   :  { %732 = vmatpush1.bf16.msra.mxu0 %v7376_v18  ;;  %v825_v62 = vld [vmem:[%s10724_s7 + $0x128] sm:$0xff] }
 0x10e   :  { %733 = vmatprep.subr.bf16.mxu0 %v7381_v19  ;;  %v6449_v0 = vcombine.high %v821_v61, %v825_v62  ;;  %v829_v1 = vld [vmem:[%s10724_s7 + $0x148] sm:$0xff]  ;;  %v6448_v3 = vcombine.low %v821_v61, %v825_v62  ;;  %v6527_v19 = vcombine.high %v900_v16, %v904_v17 }
 0x10f   :  { %v833_v2 = vld [vmem:[%s10724_s7 + $0x168] sm:$0xff] }
 0x110   :  { %v6457_v4 = vcombine.high %v829_v1, %v833_v2  ;;  %v837_v5 = vld [vmem:[%s10724_s7 + $0x188] sm:$0xff]  ;;  %v6456_v7 = vcombine.low %v829_v1, %v833_v2  ;;  %2394 = vmatprep.subr.bf16.mxu1 %v6527_v19 }
 0x111   :  { %734 = vmatpush1.bf16.msra.mxu0 %v7379_v20  ;;  %v841_v6 = vld [vmem:[%s10724_s7 + $0x1a8] sm:$0xff] }
 0x112   :  { %735 = vmatprep.subr.bf16.mxu0 %v7384_v21  ;;  %v845_v12 = vld [vmem:[%s10724_s7 + $0x1c8] sm:$0xff]  ;;  %v6464_v15 = vcombine.low %v837_v5, %v841_v6 }
 0x113   :  { %v849_v13 = vld [vmem:[%s10724_s7 + $0x1e8] sm:$0xff] }
 0x114   :  { %v6473_v18 = vcombine.high %v845_v12, %v849_v13  ;;  %v853_v20 = vld [vmem:[%s10724_s7 + $0x208] sm:$0xff] }
 0x115   :  { %736 = vmatpush1.bf16.msra.mxu0 %v7382_v22  ;;  %v857_v21 = vld [vmem:[%s10724_s7 + $0x228] sm:$0xff]  ;;  %v6526_v22 = vcombine.low %v900_v16, %v904_v17 }
 0x116   :  { %737 = vmatprep.subr.bf16.mxu0 %v7387_v23  ;;  %v6472_v23 = vcombine.low %v845_v12, %v849_v13 }
 0x117   :  { %2395 = vmatpush1.bf16.msra.mxu1 %v6526_v22  ;;  %v924_v22 = vld [vmem:[%s10724_s7 + $0x440] sm:$0xff] }
 0x119   :  { %738 = vmatpush1.bf16.msra.mxu0 %v7385_v24  ;;  %v908_v24 = vld [vmem:[%s10724_s7 + $0x3c0] sm:$0xff] }
 0x11a   :  { %739 = vmatprep.subr.bf16.mxu0 %v7390_v25  ;;  %v912_v25 = vld [vmem:[%s10724_s7 + $0x3e0] sm:$0xff] }
 0x11d   :  { %740 = vmatpush1.bf16.msra.mxu0 %v7388_v26  ;;  %v6481_v26 = vcombine.high %v853_v20, %v857_v21 }
 0x11e   :  { %741 = vmatprep.subr.bf16.mxu0 %v7393_v27  ;;  %v6535_v27 = vcombine.high %v908_v24, %v912_v25 }
 0x120   :  { %2396 = vmatprep.subr.bf16.mxu1 %v6535_v27  ;;  %v929_v27 = vld [vmem:[%s10724_s7 + $0x468] sm:$0xff] }
 0x121   :  { %742 = vmatpush1.bf16.msra.mxu0 %v7391_v28  ;;  %v861_v28 = vld [vmem:[%s10724_s7 + $0x248] sm:$0xff] }
 0x122   :  { %743 = vmatprep.subr.bf16.mxu0 %v7396_v29  ;;  %v865_v29 = vld [vmem:[%s10724_s7 + $0x268] sm:$0xff] }
 0x123   :  { %v6488_v43 = vcombine.low %v861_v28, %v865_v29 }
 0x125   :  { %744 = vmatpush1.bf16.msra.mxu0 %v7394_v30  ;;  %v6534_v30 = vcombine.low %v908_v24, %v912_v25  ;;  %v928_v25 = vld [vmem:[%s10724_s7 + $0x460] sm:$0xff] }
 0x126   :  { %745 = vmatprep.subr.bf16.mxu0 %v7399_v31  ;;  %v6480_v31 = vcombine.low %v853_v20, %v857_v21 }
 0x127   :  { %2397 = vmatpush1.bf16.msra.mxu1 %v6534_v30  ;;  %v6551_v30 = vcombine.high %v924_v22, %v928_v25 }
 0x129   :  { %746 = vmatpush1.bf16.msra.mxu0 %v7397_v32  ;;  %v8590_v32 = vld [vmem:[%s10724_s7 + $0x400] sm:$0xff] }
 0x12a   :  { %747 = vmatprep.subr.bf16.mxu0 %v7402_v33  ;;  %v8595_v33 = vld [vmem:[%s10724_s7 + $0x420] sm:$0xff] }
 0x12d   :  { %748 = vmatpush1.bf16.msra.mxu0 %v7400_v34  ;;  %v8600_v34 = vld [vmem:[%s10724_s7 + $0x408] sm:$0xff] }
 0x12e   :  { %749 = vmatprep.subr.bf16.mxu0 %v7405_v35  ;;  %v6489_v35 = vcombine.high %v861_v28, %v865_v29 }
 0x131   :  { %750 = vmatpush1.bf16.msra.mxu0 %v7403_v36  ;;  %v6543_v36 = vcombine.high %v8590_v32, %v8595_v33 }
 0x132   :  { %751 = vmatprep.subr.bf16.mxu0 %v7408_v37  ;;  %v8607_v37 = vld [vmem:[%s10724_s7 + $0x428] sm:$0xff] }
 0x133   :  { %2409 = vmatprep.subr.bf16.mxu1 %v6543_v36  ;;  %v936_v36 = vld [vmem:[%s10724_s7 + $0x4a0] sm:$0xff] }
 0x135   :  { %752 = vmatpush1.bf16.msra.mxu0 %v7406_v38  ;;  %v869_v38 = vld [vmem:[%s10724_s7 + $0x288] sm:$0xff] }
 0x136   :  { %753 = vmatprep.subr.bf16.mxu0 %v7411_v40  ;;  %v873_v40 = vld [vmem:[%s10724_s7 + $0x2a8] sm:$0xff] }
 0x137   :  { %v6497_v45 = vcombine.high %v869_v38, %v873_v40  ;;  %v6496_v49 = vcombine.low %v869_v38, %v873_v40  ;;  %v933_v38 = vld [vmem:[%s10724_s7 + $0x488] sm:$0xff] }
 0x138   :  { %v937_v40 = vld [vmem:[%s10724_s7 + $0x4a8] sm:$0xff] }
 0x139   :  { %754 = vmatpush1.bf16.msra.mxu0 %v7409_v41  ;;  %v6542_v41 = vcombine.low %v8590_v32, %v8595_v33  ;;  %v941_v32 = vld [vmem:[%s10724_s7 + $0x4c8] sm:$0xff] }
 0x13a   :  { %755 = vmatprep.subr.bf16.mxu0 %v7414_v42  ;;  %v6544_v42 = vcombine.low %v8600_v34, %v8607_v37  ;;  %v945_v33 = vld [vmem:[%s10724_s7 + $0x4e8] sm:$0xff] }
 0x13d   :  { %756 = vmatpush1.bf16.msra.mxu0 %v7412_v46  ;;  %v877_v46 = vld [vmem:[%s10724_s7 + $0x2c8] sm:$0xff] }
 0x13e   :  { %2452 = vmatprep.subr.bf16.mxu0 %v6417_v48  ;;  %v881_v48 = vld [vmem:[%s10724_s7 + $0x2e8] sm:$0xff] }
 0x13f   :  { %v6505_v50 = vcombine.high %v877_v46, %v881_v48  ;;  %v6504_v53 = vcombine.low %v877_v46, %v881_v48  ;;  %v6561_v48 = vcombine.high %v933_v38, %v937_v40 }
 0x140   :  { %758 = vmatmul.mubr.bf16.vlgmr.msra.gmra.mrb[8].mxu0 %v8412_v10  ;;  %v6465_v10 = vcombine.high %v837_v5, %v841_v6  ;;  %v8654_v5 = vld [vmem:[%s10723_s6] sm:$0xf] }
 0x141   :  { %2453 = vmatpush1.bf16.msra.mxu0 %v6416_v51  ;;  %v885_v51 = vld [vmem:[%s10724_s7 + $0x308] sm:$0xff]  ;;  %v345_v6 = vrot.slane %v8654_v5, %v8396_v44 }
 0x142   :  { %2454 = vmatprep.subr.bf16.mxu0 %v6425_v52  ;;  %v889_v52 = vld [vmem:[%s10724_s7 + $0x328] sm:$0xff] }
 0x143   :  { %v6513_v54 = vcombine.high %v885_v51, %v889_v52  ;;  %v6512_v57 = vcombine.low %v885_v51, %v889_v52  ;;  %v948_v51 = vld [vmem:[%s10724_s7 + $0x500] sm:$0xff] }
 0x144   :  { %v952_v52 = vld [vmem:[%s10724_s7 + $0x520] sm:$0xff] }
 0x145   :  { %2455 = vmatpush1.bf16.msra.mxu0 %v6424_v55  ;;  %v893_v55 = vld [vmem:[%s10724_s7 + $0x348] sm:$0xff] }
 0x146   :  { %2456 = vmatprep.subr.bf16.mxu0 %v6433_v56  ;;  %v897_v56 = vld [vmem:[%s10724_s7 + $0x368] sm:$0xff] }
 0x147   :  { %v6521_v58 = vcombine.high %v893_v55, %v897_v56  ;;  %v6520_v61 = vcombine.low %v893_v55, %v897_v56  ;;  %v6568_v56 = vcombine.low %v941_v32, %v945_v33 }
 0x149   :  { %2457 = vmatpush1.bf16.msra.mxu0 %v6432_v59  ;;  %v901_v59 = vld [vmem:[%s10724_s7 + $0x388] sm:$0xff] }
 0x14a   :  { %2458 = vmatprep.subr.bf16.mxu0 %v6441_v60  ;;  %v905_v60 = vld [vmem:[%s10724_s7 + $0x3a8] sm:$0xff] }
 0x14b   :  { %v6529_v62 = vcombine.high %v901_v59, %v905_v60  ;;  %v6528_v1 = vcombine.low %v901_v59, %v905_v60  ;;  %v956_v59 = vld [vmem:[%s10724_s7 + $0x540] sm:$0xff] }
 0x14c   :  { %v960_v60 = vld [vmem:[%s10724_s7 + $0x560] sm:$0xff] }
 0x14d   :  { %2459 = vmatpush1.bf16.msra.mxu0 %v6440_v63  ;;  %v909_v63 = vld [vmem:[%s10724_s7 + $0x3c8] sm:$0xff] }
 0x14e   :  { %2460 = vmatprep.subr.bf16.mxu0 %v6449_v0  ;;  %v913_v0 = vld [vmem:[%s10724_s7 + $0x3e8] sm:$0xff] }
 0x14f   :  { %v6537_v2 = vcombine.high %v909_v63, %v913_v0 }
 0x151   :  { %2461 = vmatpush1.bf16.msra.mxu0 %v6448_v3  ;;  %v6536_v3 = vcombine.low %v909_v63, %v913_v0  ;;  %v6574_v63 = vcombine.low %v948_v51, %v952_v52 }
 0x152   :  { %2462 = vmatprep.subr.bf16.mxu0 %v6457_v4  ;;  %v6545_v4 = vcombine.high %v8600_v34, %v8607_v37  ;;  %v6560_v37 = vcombine.low %v933_v38, %v937_v40 }
 0x155   :  { %2463 = vmatpush1.bf16.msra.mxu0 %v6456_v7  ;;  %v349_v7 = vrot.slane %v8654_v5, %v8402_v47 }
 0x156   :  { %2464 = vmatprep.subr.bf16.mxu0 %v6465_v10 }
 0x159   :  { %2465 = vmatpush1.bf16.msra.mxu0 %v6464_v15 }
 0x15a   :  { %2466 = vmatprep.subr.bf16.mxu0 %v6473_v18 }
 0x15d   :  { %2467 = vmatpush1.bf16.msra.mxu0 %v6472_v23 }
 0x15e   :  { %2468 = vmatprep.subr.bf16.mxu0 %v6481_v26  ;;  %v925_v26 = vld [vmem:[%s10724_s7 + $0x448] sm:$0xff] }
 0x161   :  { %2469 = vmatpush1.bf16.msra.mxu0 %v6480_v31  ;;  %v6553_v31 = vcombine.high %v925_v26, %v929_v27 }
 0x162   :  { %2470 = vmatprep.subr.bf16.mxu0 %v6489_v35  ;;  %v932_v35 = vld [vmem:[%s10724_s7 + $0x480] sm:$0xff] }
 0x163   :  { %v6559_v46 = vcombine.high %v932_v35, %v936_v36  ;;  %v6558_v34 = vcombine.low %v932_v35, %v936_v36  ;;  %v989_v35 = vld [vmem:[%s10724_s7 + $0x648] sm:$0xff] }
 0x164   :  { %v993_v36 = vld [vmem:[%s10724_s7 + $0x668] sm:$0xff] }
 0x165   :  { %2471 = vmatpush1.bf16.msra.mxu0 %v6488_v43  ;;  %v6550_v43 = vcombine.low %v924_v22, %v928_v25  ;;  %v981_v22 = vld [vmem:[%s10724_s7 + $0x608] sm:$0xff] }
 0x166   :  { %2472 = vmatprep.subr.bf16.mxu0 %v6497_v45  ;;  %v6552_v45 = vcombine.low %v925_v26, %v929_v27 }
 0x169   :  { %2473 = vmatpush1.bf16.msra.mxu0 %v6496_v49  ;;  %v940_v49 = vld [vmem:[%s10724_s7 + $0x4c0] sm:$0xff] }
 0x16a   :  { %2474 = vmatprep.subr.bf16.mxu0 %v6505_v50  ;;  %v944_v50 = vld [vmem:[%s10724_s7 + $0x4e0] sm:$0xff] }
 0x16b   :  { %v6566_v55 = vcombine.low %v940_v49, %v944_v50 }
 0x16d   :  { %2475 = vmatpush1.bf16.msra.mxu0 %v6504_v53  ;;  %v949_v53 = vld [vmem:[%s10724_s7 + $0x508] sm:$0xff] }
 0x16e   :  { %2476 = vmatprep.subr.bf16.mxu0 %v6513_v54  ;;  %v953_v54 = vld [vmem:[%s10724_s7 + $0x528] sm:$0xff] }
 0x16f   :  { %v6576_v0 = vcombine.low %v949_v53, %v953_v54 }
 0x171   :  { %2477 = vmatpush1.bf16.msra.mxu0 %v6512_v57  ;;  %v6575_v57 = vcombine.high %v948_v51, %v952_v52  ;;  %v1005_v51 = vld [vmem:[%s10724_s7 + $0x6c8] sm:$0xff] }
 0x172   :  { %2478 = vmatprep.subr.bf16.mxu0 %v6521_v58  ;;  %v6577_v58 = vcombine.high %v949_v53, %v953_v54  ;;  %v1009_v52 = vld [vmem:[%s10724_s7 + $0x6e8] sm:$0xff] }
 0x175   :  { %2479 = vmatpush1.bf16.msra.mxu0 %v6520_v61  ;;  %v957_v61 = vld [vmem:[%s10724_s7 + $0x548] sm:$0xff] }
 0x176   :  { %2480 = vmatprep.subr.bf16.mxu0 %v6529_v62  ;;  %v961_v62 = vld [vmem:[%s10724_s7 + $0x568] sm:$0xff] }
 0x179   :  { %2481 = vmatpush1.bf16.msra.mxu0 %v6528_v1  ;;  %v6583_v1 = vcombine.high %v956_v59, %v960_v60 }
 0x17a   :  { %2482 = vmatprep.subr.bf16.mxu0 %v6537_v2  ;;  %v6585_v2 = vcombine.high %v957_v61, %v961_v62 }
 0x17d   :  { %2483 = vmatpush1.bf16.msra.mxu0 %v6536_v3  ;;  %v964_v3 = vld [vmem:[%s10724_s7 + $0x580] sm:$0xff] }
 0x17e   :  { %2495 = vmatprep.subr.bf16.mxu0 %v6545_v4  ;;  %v968_v4 = vld [vmem:[%s10724_s7 + $0x5a0] sm:$0xff] }
 0x1d3   :  { %v716_v8 = vpop.f32.mrb[4].mxu0 }
 0x1d4   :  { %v717_v9 = vadd.f32 %v716_v8, %v345_v6  ;;  %v718_v10 = vpop.f32.mrb[5].mxu0  ;;  %v6582_v8 = vcombine.low %v956_v59, %v960_v60  ;;  %v1013_v59 = vld [vmem:[%s10724_s7 + $0x708] sm:$0xff] }
 0x1d5   :  { %v719_v11 = vadd.f32 %v718_v10, %v349_v7  ;;  %v720_v12 = vpop.f32.mrb[6].mxu0  ;;  %v6591_v10 = vcombine.high %v964_v3, %v968_v4  ;;  %v1017_v60 = vld [vmem:[%s10724_s7 + $0x728] sm:$0xff] }
 0x1d6   :  { %v768_v13 = vmul.f32 0.2, %v717_v9  ;;  %v721_v14 = vadd.f32 %v720_v12, %v345_v6  ;;  %v722_v15 = vpop.f32.mrb[7].mxu0  ;;  %v965_v6 = vld [vmem:[%s10724_s7 + $0x588] sm:$0xff]  ;;  %v972_v12 = vld [vmem:[%s10724_s7 + $0x5c0] sm:$0xff] }
 0x1d7   :  { %v769_v16 = vmul.f32 0.2, %v719_v11  ;;  %v723_v17 = vadd.f32 %v722_v15, %v349_v7  ;;  %v969_v7 = vld [vmem:[%s10724_s7 + $0x5a8] sm:$0xff] }
 0x1d8   :  { %v772_v18 = vmul.f32 0.2, %v721_v14  ;;  %v776_v20 = vmax.f32 %v717_v9, %v768_v13  ;;  %v6584_v9 = vcombine.low %v957_v61, %v961_v62  ;;  %v976_v13 = vld [vmem:[%s10724_s7 + $0x5e0] sm:$0xff]  ;;  %v977_v15 = vld [vmem:[%s10724_s7 + $0x5e8] sm:$0xff]  ;;  %v6632_v62 = vcombine.low %v1005_v51, %v1009_v52 }
 0x1d9   :  { %v773_v19 = vmul.f32 0.2, %v723_v17  ;;  %v777_v23 = vmax.f32 %v719_v11, %v769_v16  ;;  %v6593_v11 = vcombine.high %v965_v6, %v969_v7  ;;  %v6590_v16 = vcombine.low %v964_v3, %v968_v4  ;;  %v1021_v3 = vld [vmem:[%s10724_s7 + $0x748] sm:$0xff] }
 0x1da   :  { %v780_v21 = vmax.f32 %v721_v14, %v772_v18  ;;  %v973_v14 = vld [vmem:[%s10724_s7 + $0x5c8] sm:$0xff]  ;;  %v6599_v18 = vcombine.high %v972_v12, %v976_v13 }
 0x1db   :  { %v781_v24 = vmax.f32 %v723_v17, %v773_v19  ;;  %v6592_v17 = vcombine.low %v965_v6, %v969_v7  ;;  %v6601_v19 = vcombine.high %v973_v14, %v977_v15  ;;  %v6600_v25 = vcombine.low %v973_v14, %v977_v15  ;;  %v1025_v4 = vld [vmem:[%s10724_s7 + $0x768] sm:$0xff] }
 0x1dc   :  { %v8672_v28 = vpack.c.bf16 %v780_v21, %v776_v20  ;;  %v980_v20 = vld [vmem:[%s10724_s7 + $0x600] sm:$0xff]  ;;  %v8831_v6 = vsub.s32 2, %v8387_v39  ;;  %v1029_v14 = vld [vmem:[%s10724_s7 + $0x788] sm:$0xff] }
 0x1dd   :  { %v8674_v29 = vpack.c.bf16 %v781_v24, %v777_v23  ;;  %v984_v21 = vld [vmem:[%s10724_s7 + $0x620] sm:$0xff]  ;;  %v985_v23 = vld [vmem:[%s10724_s7 + $0x628] sm:$0xff]  ;;  %v6598_v24 = vcombine.low %v972_v12, %v976_v13 }
 0x1de   :  { %v6607_v26 = vcombine.high %v980_v20, %v984_v21  ;;  %v6609_v27 = vcombine.high %v981_v22, %v985_v23  ;;  %v6606_v38 = vcombine.low %v980_v20, %v984_v21  ;;  %v6608_v40 = vcombine.low %v981_v22, %v985_v23  ;;  %v1028_v12 = vld [vmem:[%s10724_s7 + $0x780] sm:$0xff]  ;;  %v1033_v15 = vld [vmem:[%s10724_s7 + $0x7a8] sm:$0xff] }
 0x1df   :  { %2398 = vmatprep.mubr.bf16.mxu1 %v8674_v29  ;;  %2484 = vmatprep.mubr.bf16.mxu0 %v8674_v29  ;;  %v1032_v13 = vld [vmem:[%s10724_s7 + $0x7a0] sm:$0xff]  ;;  %v6657_v21 = vcombine.high %v1029_v14, %v1033_v15 }
 0x1e0   :  { %2399 = vmatmul.mubr.bf16.vlgmr.msra.gmra.mrb[4].mxu1 %v8672_v28  ;;  %2485 = vmatmul.mubr.bf16.vlgmr.msra.gmra.mrb[12].mxu0 %v8672_v28  ;;  %v6655_v20 = vcombine.high %v1028_v12, %v1032_v13  ;;  %v1036_v22 = vld [vmem:[%s10724_s7 + $0x7c0] sm:$0xff] }
 0x1e1   :  { %2410 = vmatpush1.bf16.msra.mxu1 %v6542_v41  ;;  %2496 = vmatpush1.bf16.msra.mxu0 %v6544_v42  ;;  %v6567_v41 = vcombine.high %v940_v49, %v944_v50  ;;  %v6569_v42 = vcombine.high %v941_v32, %v945_v33  ;;  %v997_v49 = vld [vmem:[%s10724_s7 + $0x688] sm:$0xff]  ;;  %v6616_v33 = vcombine.low %v989_v35, %v993_v36 }
 0x1e2   :  { %2411 = vmatprep.subr.bf16.mxu1 %v6551_v30  ;;  %2497 = vmatprep.subr.bf16.mxu0 %v6553_v31  ;;  %v988_v30 = vld [vmem:[%s10724_s7 + $0x640] sm:$0xff]  ;;  %v1001_v50 = vld [vmem:[%s10724_s7 + $0x6a8] sm:$0xff] }
 0x1e3   :  { %v992_v31 = vld [vmem:[%s10724_s7 + $0x660] sm:$0xff]  ;;  %v6624_v54 = vcombine.low %v997_v49, %v1001_v50 }
 0x1e4   :  { %v6614_v32 = vcombine.low %v988_v30, %v992_v31 }
 0x1e5   :  { %2412 = vmatpush1.bf16.msra.mxu1 %v6550_v43  ;;  %2498 = vmatpush1.bf16.msra.mxu0 %v6552_v45  ;;  %v6615_v43 = vcombine.high %v988_v30, %v992_v31  ;;  %v6617_v45 = vcombine.high %v989_v35, %v993_v36  ;;  %v6654_v35 = vcombine.low %v1028_v12, %v1032_v13 }
 0x1e6   :  { %2413 = vmatprep.subr.bf16.mxu1 %v6559_v46  ;;  %2499 = vmatprep.subr.bf16.mxu0 %v6561_v48  ;;  %v996_v46 = vld [vmem:[%s10724_s7 + $0x680] sm:$0xff]  ;;  %v6656_v36 = vcombine.low %v1029_v14, %v1033_v15  ;;  %v814_v15 = vld [vmem:[%s10724_s7 + $0xd0] sm:$0xff] }
 0x1e7   :  { %v1000_v48 = vld [vmem:[%s10724_s7 + $0x6a0] sm:$0xff] }
 0x1e8   :  { %v6622_v53 = vcombine.low %v996_v46, %v1000_v48 }
 0x1e9   :  { %2414 = vmatpush1.bf16.msra.mxu1 %v6558_v34  ;;  %2500 = vmatpush1.bf16.msra.mxu0 %v6560_v37  ;;  %v6623_v34 = vcombine.high %v996_v46, %v1000_v48  ;;  %v6625_v37 = vcombine.high %v997_v49, %v1001_v50  ;;  %v790_v48 = vld [vmem:[%s10724_s7 + $0x10] sm:$0xff] }
 0x1ea   :  { %2415 = vmatprep.subr.bf16.mxu1 %v6567_v41  ;;  %2501 = vmatprep.subr.bf16.mxu0 %v6569_v42  ;;  %v1004_v41 = vld [vmem:[%s10724_s7 + $0x6c0] sm:$0xff]  ;;  %v794_v49 = vld [vmem:[%s10724_s7 + $0x30] sm:$0xff] }
 0x1eb   :  { %v1008_v42 = vld [vmem:[%s10724_s7 + $0x6e0] sm:$0xff] }
 0x1ec   :  { %v6630_v61 = vcombine.low %v1004_v41, %v1008_v42 }
 0x1ed   :  { %2416 = vmatpush1.bf16.msra.mxu1 %v6566_v55  ;;  %2502 = vmatpush1.bf16.msra.mxu0 %v6568_v56  ;;  %v6631_v55 = vcombine.high %v1004_v41, %v1008_v42  ;;  %v6633_v56 = vcombine.high %v1005_v51, %v1009_v52  ;;  %v6419_v52 = vcombine.high %v790_v48, %v794_v49 }
 0x1ee   :  { %2417 = vmatprep.subr.bf16.mxu1 %v6575_v57  ;;  %2503 = vmatprep.subr.bf16.mxu0 %v6577_v58  ;;  %v1012_v57 = vld [vmem:[%s10724_s7 + $0x700] sm:$0xff] }
 0x1ef   :  { %v1016_v58 = vld [vmem:[%s10724_s7 + $0x720] sm:$0xff] }
 0x1f0   :  { %v6638_v7 = vcombine.low %v1012_v57, %v1016_v58 }
 0x1f1   :  { %2418 = vmatpush1.bf16.msra.mxu1 %v6574_v63  ;;  %2504 = vmatpush1.bf16.msra.mxu0 %v6576_v0  ;;  %v6639_v63 = vcombine.high %v1012_v57, %v1016_v58  ;;  %v6641_v0 = vcombine.high %v1013_v59, %v1017_v60  ;;  %v798_v58 = vld [vmem:[%s10724_s7 + $0x50] sm:$0xff] }
 0x1f2   :  { %2419 = vmatprep.subr.bf16.mxu1 %v6583_v1  ;;  %2505 = vmatprep.subr.bf16.mxu0 %v6585_v2  ;;  %v1020_v1 = vld [vmem:[%s10724_s7 + $0x740] sm:$0xff] }
 0x1f3   :  { %v1024_v2 = vld [vmem:[%s10724_s7 + $0x760] sm:$0xff] }
 0x1f5   :  { %2420 = vmatpush1.bf16.msra.mxu1 %v6582_v8  ;;  %2506 = vmatpush1.bf16.msra.mxu0 %v6584_v9  ;;  %v6640_v8 = vcombine.low %v1013_v59, %v1017_v60  ;;  %v8834_v9 = vsub.s32 3, %v8387_v39  ;;  %v802_v60 = vld [vmem:[%s10724_s7 + $0x70] sm:$0xff] }
 0x1f6   :  { %2421 = vmatprep.subr.bf16.mxu1 %v6591_v10  ;;  %2507 = vmatprep.subr.bf16.mxu0 %v6593_v11  ;;  %v6647_v10 = vcombine.high %v1020_v1, %v1024_v2  ;;  %v6649_v11 = vcombine.high %v1021_v3, %v1025_v4 }
 0x1f9   :  { %2422 = vmatpush1.bf16.msra.mxu1 %v6590_v16  ;;  %2508 = vmatpush1.bf16.msra.mxu0 %v6592_v17  ;;  %v353_v16 = vrot.slane %v8654_v5, %v8831_v6  ;;  %v357_v17 = vrot.slane %v8654_v5, %v8834_v9  ;;  %v1041_v5 = vld [vmem:[%s10724_s7 + $0x7e8] sm:$0xff] }
 0x1fa   :  { %2423 = vmatprep.subr.bf16.mxu1 %v6599_v18  ;;  %2509 = vmatprep.subr.bf16.mxu0 %v6601_v19  ;;  %v6646_v18 = vcombine.low %v1020_v1, %v1024_v2  ;;  %v6648_v19 = vcombine.low %v1021_v3, %v1025_v4  ;;  %v6427_v2 = vcombine.high %v798_v58, %v802_v60  ;;  %v806_v4 = vld [vmem:[%s10724_s7 + $0x90] sm:$0xff] }
 0x1fd   :  { %2424 = vmatpush1.bf16.msra.mxu1 %v6598_v24  ;;  %2510 = vmatpush1.bf16.msra.mxu0 %v6600_v25  ;;  %v1040_v24 = vld [vmem:[%s10724_s7 + $0x7e0] sm:$0xff]  ;;  %v1037_v25 = vld [vmem:[%s10724_s7 + $0x7c8] sm:$0xff] }
 0x1fe   :  { %2425 = vmatprep.subr.bf16.mxu1 %v6607_v26  ;;  %2511 = vmatprep.subr.bf16.mxu0 %v6609_v27  ;;  %v6665_v46 = vcombine.high %v1037_v25, %v1041_v5  ;;  %v6662_v42 = vcombine.low %v1036_v22, %v1040_v24  ;;  %v6664_v51 = vcombine.low %v1037_v25, %v1041_v5  ;;  %v827_v25 = vld [vmem:[%s10724_s7 + $0x138] sm:$0xff] }
 0x201   :  { %2426 = vmatpush1.bf16.msra.mxu1 %v6606_v38  ;;  %2512 = vmatpush1.bf16.msra.mxu0 %v6608_v40 }
 0x202   :  { %2427 = vmatprep.subr.bf16.mxu1 %v6615_v43  ;;  %2513 = vmatprep.subr.bf16.mxu0 %v6617_v45  ;;  %v6663_v45 = vcombine.high %v1036_v22, %v1040_v24  ;;  %v822_v22 = vld [vmem:[%s10724_s7 + $0x110] sm:$0xff]  ;;  %v823_v24 = vld [vmem:[%s10724_s7 + $0x118] sm:$0xff] }
 0x205   :  { %2428 = vmatpush1.bf16.msra.mxu1 %v6614_v32  ;;  %2514 = vmatpush1.bf16.msra.mxu0 %v6616_v33  ;;  %v791_v33 = vld [vmem:[%s10724_s7 + $0x18] sm:$0xff] }
 0x206   :  { %2429 = vmatprep.subr.bf16.mxu1 %v6623_v34  ;;  %2515 = vmatprep.subr.bf16.mxu0 %v6625_v37  ;;  %v795_v34 = vld [vmem:[%s10724_s7 + $0x38] sm:$0xff] }
 0x207   :  { %v6420_v1 = vcombine.low %v791_v33, %v795_v34 }
 0x209   :  { %2430 = vmatpush1.bf16.msra.mxu1 %v6622_v53  ;;  %2516 = vmatpush1.bf16.msra.mxu0 %v6624_v54 }
 0x20a   :  { %2431 = vmatprep.subr.bf16.mxu1 %v6631_v55  ;;  %2517 = vmatprep.subr.bf16.mxu0 %v6633_v56  ;;  %v6421_v55 = vcombine.high %v791_v33, %v795_v34 }
 0x20d   :  { %2432 = vmatpush1.bf16.msra.mxu1 %v6630_v61  ;;  %2518 = vmatpush1.bf16.msra.mxu0 %v6632_v62  ;;  %v799_v61 = vld [vmem:[%s10724_s7 + $0x58] sm:$0xff] }
 0x20e   :  { %2433 = vmatprep.subr.bf16.mxu1 %v6639_v63  ;;  %2519 = vmatprep.subr.bf16.mxu0 %v6641_v0  ;;  %v803_v62 = vld [vmem:[%s10724_s7 + $0x78] sm:$0xff]  ;;  %v6418_v0 = vcombine.low %v790_v48, %v794_v49  ;;  %v838_v48 = vld [vmem:[%s10724_s7 + $0x190] sm:$0xff] }
 0x20f   :  { %v6429_v3 = vcombine.high %v799_v61, %v803_v62  ;;  %v6428_v12 = vcombine.low %v799_v61, %v803_v62  ;;  %v842_v49 = vld [vmem:[%s10724_s7 + $0x1b0] sm:$0xff]  ;;  %v855_v61 = vld [vmem:[%s10724_s7 + $0x218] sm:$0xff] }
 0x210   :  { %v859_v62 = vld [vmem:[%s10724_s7 + $0x238] sm:$0xff] }
 0x211   :  { %2434 = vmatpush1.bf16.msra.mxu1 %v6638_v7  ;;  %2520 = vmatpush1.bf16.msra.mxu0 %v6640_v8  ;;  %v810_v7 = vld [vmem:[%s10724_s7 + $0xb0] sm:$0xff]  ;;  %v807_v8 = vld [vmem:[%s10724_s7 + $0x98] sm:$0xff] }
 0x212   :  { %2435 = vmatprep.subr.bf16.mxu1 %v6647_v10  ;;  %2521 = vmatprep.subr.bf16.mxu0 %v6649_v11  ;;  %v811_v10 = vld [vmem:[%s10724_s7 + $0xb8] sm:$0xff]  ;;  %v6426_v11 = vcombine.low %v798_v58, %v802_v60  ;;  %v6435_v13 = vcombine.high %v806_v4, %v810_v7  ;;  %v854_v58 = vld [vmem:[%s10724_s7 + $0x210] sm:$0xff] }
 0x213   :  { %v759_v23 = vpop.f32.mrb[8].mxu0  ;;  %v6437_v14 = vcombine.high %v807_v8, %v811_v10  ;;  %v858_v60 = vld [vmem:[%s10724_s7 + $0x230] sm:$0xff] }
 0x214   :  { %v760_v26 = vadd.f32 %v759_v23, %v353_v16  ;;  %v761_v27 = vpop.f32.mrb[9].mxu0  ;;  %v826_v23 = vld [vmem:[%s10724_s7 + $0x130] sm:$0xff] }
 0x215   :  { %v762_v30 = vadd.f32 %v761_v27, %v357_v17  ;;  %v763_v31 = vpop.f32.mrb[10].mxu0  ;;  %2436 = vmatpush1.bf16.msra.mxu1 %v6646_v18  ;;  %2522 = vmatpush1.bf16.msra.mxu0 %v6648_v19  ;;  %v6434_v18 = vcombine.low %v806_v4, %v810_v7  ;;  %v6436_v19 = vcombine.low %v807_v8, %v811_v10  ;;  %v862_v4 = vld [vmem:[%s10724_s7 + $0x250] sm:$0xff]  ;;  %v863_v8 = vld [vmem:[%s10724_s7 + $0x258] sm:$0xff] }
 0x216   :  { %v770_v38 = vmul.f32 0.2, %v760_v26  ;;  %v764_v40 = vadd.f32 %v763_v31, %v353_v16  ;;  %v765_v43 = vpop.f32.mrb[11].mxu0  ;;  %2437 = vmatprep.subr.bf16.mxu1 %v6655_v20  ;;  %2523 = vmatprep.subr.bf16.mxu0 %v6657_v21  ;;  %v818_v16 = vld [vmem:[%s10724_s7 + $0xf0] sm:$0xff]  ;;  %v6451_v27 = vcombine.high %v822_v22, %v826_v23  ;;  %v867_v10 = vld [vmem:[%s10724_s7 + $0x278] sm:$0xff] }
 0x217   :  { %v771_v50 = vmul.f32 0.2, %v762_v30  ;;  %v766_v32 = vadd.f32 %v765_v43, %v357_v17  ;;  %v815_v17 = vld [vmem:[%s10724_s7 + $0xd8] sm:$0xff]  ;;  %v6443_v20 = vcombine.high %v814_v15, %v818_v16  ;;  %v6442_v5 = vcombine.low %v814_v15, %v818_v16  ;;  %v830_v31 = vld [vmem:[%s10724_s7 + $0x150] sm:$0xff] }
 0x218   :  { %v774_v37 = vmul.f32 0.2, %v764_v40  ;;  %v778_v53 = vmax.f32 %v760_v26, %v770_v38  ;;  %v835_v38 = vld [vmem:[%s10724_s7 + $0x178] sm:$0xff]  ;;  %v6452_v43 = vcombine.low %v823_v24, %v827_v25  ;;  %v866_v7 = vld [vmem:[%s10724_s7 + $0x270] sm:$0xff] }
 0x219   :  { %v775_v41 = vmul.f32 0.2, %v766_v32  ;;  %2438 = vmatpush1.bf16.msra.mxu1 %v6654_v35  ;;  %2524 = vmatpush1.bf16.msra.mxu0 %v6656_v36  ;;  %v779_v56 = vmax.f32 %v762_v30, %v771_v50  ;;  %v6453_v30 = vcombine.high %v823_v24, %v827_v25  ;;  %v834_v35 = vld [vmem:[%s10724_s7 + $0x170] sm:$0xff]  ;;  %v831_v36 = vld [vmem:[%s10724_s7 + $0x158] sm:$0xff] }
 0x21a   :  { %v782_v54 = vmax.f32 %v764_v40, %v774_v37  ;;  %2439 = vmatprep.subr.bf16.mxu1 %v6663_v45  ;;  %2525 = vmatprep.subr.bf16.mxu0 %v6665_v46  ;;  %v6450_v40 = vcombine.low %v822_v22, %v826_v23  ;;  %v6459_v45 = vcombine.high %v830_v31, %v834_v35  ;;  %v839_v50 = vld [vmem:[%s10724_s7 + $0x198] sm:$0xff]  ;;  %v870_v15 = vld [vmem:[%s10724_s7 + $0x290] sm:$0xff] }
 0x21b   :  { %v783_v57 = vmax.f32 %v766_v32, %v775_v41  ;;  %v6461_v46 = vcombine.high %v831_v36, %v835_v38  ;;  %v843_v32 = vld [vmem:[%s10724_s7 + $0x1b8] sm:$0xff]  ;;  %v6458_v33 = vcombine.low %v830_v31, %v834_v35  ;;  %v6460_v34 = vcombine.low %v831_v36, %v835_v38  ;;  %v874_v16 = vld [vmem:[%s10724_s7 + $0x2b0] sm:$0xff] }
 0x21c   :  { %v8879_v59 = vpack.c.bf16 %v782_v54, %v778_v53  ;;  %v6467_v37 = vcombine.high %v838_v48, %v842_v49  ;;  %v6469_v41 = vcombine.high %v839_v50, %v843_v32  ;;  %v851_v53 = vld [vmem:[%s10724_s7 + $0x1f8] sm:$0xff]  ;;  %v6466_v54 = vcombine.low %v838_v48, %v842_v49  ;;  %v878_v22 = vld [vmem:[%s10724_s7 + $0x2d0] sm:$0xff] }
 0x21d   :  { %v8890_v63 = vpack.c.bf16 %v783_v57, %v779_v56  ;;  %2440 = vmatpush1.bf16.msra.mxu1 %v6662_v42  ;;  %2526 = vmatpush1.bf16.msra.mxu0 %v6664_v51  ;;  %v846_v42 = vld [vmem:[%s10724_s7 + $0x1d0] sm:$0xff]  ;;  %v879_v24 = vld [vmem:[%s10724_s7 + $0x2d8] sm:$0xff] }
 0x21e   :  { %2538 = vmatprep.subr.bf16.mxu1 %v6419_v52  ;;  %2624 = vmatprep.subr.bf16.mxu0 %v6421_v55  ;;  %v850_v51 = vld [vmem:[%s10724_s7 + $0x1f0] sm:$0xff]  ;;  %v847_v52 = vld [vmem:[%s10724_s7 + $0x1d8] sm:$0xff]  ;;  %v6468_v55 = vcombine.low %v839_v50, %v843_v32 }
 0x21f   :  { %2441 = vmatprep.mubr.bf16.mxu1 %v8890_v63  ;;  %2527 = vmatprep.mubr.bf16.mxu0 %v8890_v63  ;;  %v6475_v56 = vcombine.high %v846_v42, %v850_v51  ;;  %v6477_v57 = vcombine.high %v847_v52, %v851_v53  ;;  %v882_v23 = vld [vmem:[%s10724_s7 + $0x2f0] sm:$0xff]  ;;  %v883_v25 = vld [vmem:[%s10724_s7 + $0x2f8] sm:$0xff] }
 0x220   :  { %2442 = vmatmul.mubr.bf16.vlgmr.msra.gmra.mrb[4].mxu1 %v8879_v59  ;;  %2528 = vmatmul.mubr.bf16.vlgmr.msra.gmra.mrb[12].mxu0 %v8879_v59  ;;  %v886_v31 = vld [vmem:[%s10724_s7 + $0x310] sm:$0xff]  ;;  %v887_v36 = vld [vmem:[%s10724_s7 + $0x318] sm:$0xff] }
 0x221   :  { %2539 = vmatpush1.bf16.msra.mxu1 %v6418_v0  ;;  %2570 = vmatprep.mubr.bf16.mxu1 %v8674_v29  ;;  %v6474_v0 = vcombine.low %v846_v42, %v850_v51  ;;  %v890_v35 = vld [vmem:[%s10724_s7 + $0x330] sm:$0xff]  ;;  %v891_v38 = vld [vmem:[%s10724_s7 + $0x338] sm:$0xff] }
 0x222   :  { %2625 = vmatpush1.bf16.msra.mxu0 %v6420_v1  ;;  %2656 = vmatprep.mubr.bf16.mxu0 %v8674_v29  ;;  %v819_v29 = vld [vmem:[%s10724_s7 + $0xf8] sm:$0xff]  ;;  %v6476_v1 = vcombine.low %v847_v52, %v851_v53  ;;  %v894_v48 = vld [vmem:[%s10724_s7 + $0x350] sm:$0xff] }
 0x223   :  { %2540 = vmatprep.subr.bf16.mxu1 %v6427_v2  ;;  %2626 = vmatprep.subr.bf16.mxu0 %v6429_v3  ;;  %v6445_v21 = vcombine.high %v815_v17, %v819_v29  ;;  %v6444_v26 = vcombine.low %v815_v17, %v819_v29  ;;  %v6483_v2 = vcombine.high %v854_v58, %v858_v60  ;;  %v871_v17 = vld [vmem:[%s10724_s7 + $0x298] sm:$0xff]  ;;  %v898_v49 = vld [vmem:[%s10724_s7 + $0x370] sm:$0xff] }
 0x224   :  { %v6485_v3 = vcombine.high %v855_v61, %v859_v62  ;;  %v875_v29 = vld [vmem:[%s10724_s7 + $0x2b8] sm:$0xff]  ;;  %v902_v42 = vld [vmem:[%s10724_s7 + $0x390] sm:$0xff] }
 0x225   :  { %2541 = vmatpush1.bf16.msra.mxu1 %v6426_v11  ;;  %v6482_v11 = vcombine.low %v854_v58, %v858_v60  ;;  %v895_v50 = vld [vmem:[%s10724_s7 + $0x358] sm:$0xff]  ;;  %v906_v51 = vld [vmem:[%s10724_s7 + $0x3b0] sm:$0xff] }
 0x226   :  { %2627 = vmatpush1.bf16.msra.mxu0 %v6428_v12  ;;  %2542 = vmatprep.subr.bf16.mxu1 %v6435_v13  ;;  %v6484_v12 = vcombine.low %v855_v61, %v859_v62  ;;  %v6491_v13 = vcombine.high %v862_v4, %v866_v7  ;;  %v899_v32 = vld [vmem:[%s10724_s7 + $0x378] sm:$0xff]  ;;  %v910_v58 = vld [vmem:[%s10724_s7 + $0x3d0] sm:$0xff] }
 0x227   :  { %2628 = vmatprep.subr.bf16.mxu0 %v6437_v14  ;;  %v6493_v14 = vcombine.high %v863_v8, %v867_v10  ;;  %v903_v52 = vld [vmem:[%s10724_s7 + $0x398] sm:$0xff]  ;;  %v914_v60 = vld [vmem:[%s10724_s7 + $0x3f0] sm:$0xff] }
 0x228   :  { %v907_v53 = vld [vmem:[%s10724_s7 + $0x3b8] sm:$0xff] }
 0x229   :  { %2543 = vmatpush1.bf16.msra.mxu1 %v6434_v18  ;;  %v6490_v18 = vcombine.low %v862_v4, %v866_v7  ;;  %v911_v61 = vld [vmem:[%s10724_s7 + $0x3d8] sm:$0xff]  ;;  %v918_v4 = vld [vmem:[%s10724_s7 + $0x410] sm:$0xff] }
 0x22a   :  { %2629 = vmatpush1.bf16.msra.mxu0 %v6436_v19  ;;  %2544 = vmatprep.subr.bf16.mxu1 %v6443_v20  ;;  %v6492_v19 = vcombine.low %v863_v8, %v867_v10  ;;  %v6499_v20 = vcombine.high %v870_v15, %v874_v16  ;;  %v915_v62 = vld [vmem:[%s10724_s7 + $0x3f8] sm:$0xff]  ;;  %v922_v7 = vld [vmem:[%s10724_s7 + $0x430] sm:$0xff] }
 0x22b   :  { %2630 = vmatprep.subr.bf16.mxu0 %v6445_v21  ;;  %v6501_v21 = vcombine.high %v871_v17, %v875_v29  ;;  %v919_v8 = vld [vmem:[%s10724_s7 + $0x418] sm:$0xff] }
 0x22c   :  { %v923_v10 = vld [vmem:[%s10724_s7 + $0x438] sm:$0xff] }
 0x22d   :  { %2545 = vmatpush1.bf16.msra.mxu1 %v6442_v5  ;;  %v6498_v5 = vcombine.low %v870_v15, %v874_v16  ;;  %v926_v15 = vld [vmem:[%s10724_s7 + $0x450] sm:$0xff] }
 0x22e   :  { %2631 = vmatpush1.bf16.msra.mxu0 %v6444_v26  ;;  %2546 = vmatprep.subr.bf16.mxu1 %v6451_v27  ;;  %v6500_v26 = vcombine.low %v871_v17, %v875_v29  ;;  %v6507_v27 = vcombine.high %v878_v22, %v882_v23  ;;  %v930_v16 = vld [vmem:[%s10724_s7 + $0x470] sm:$0xff]  ;;  %v6546_v17 = vcombine.low %v918_v4, %v922_v7  ;;  %v927_v29 = vld [vmem:[%s10724_s7 + $0x458] sm:$0xff] }
 0x22f   :  { %2632 = vmatprep.subr.bf16.mxu0 %v6453_v30  ;;  %v6509_v30 = vcombine.high %v879_v24, %v883_v25 }
 0x231   :  { %2547 = vmatpush1.bf16.msra.mxu1 %v6450_v40  ;;  %v6506_v40 = vcombine.low %v878_v22, %v882_v23  ;;  %v938_v22 = vld [vmem:[%s10724_s7 + $0x4b0] sm:$0xff] }
 0x232   :  { %2633 = vmatpush1.bf16.msra.mxu0 %v6452_v43  ;;  %2548 = vmatprep.subr.bf16.mxu1 %v6459_v45  ;;  %v6508_v43 = vcombine.low %v879_v24, %v883_v25  ;;  %v6515_v45 = vcombine.high %v886_v31, %v890_v35  ;;  %v935_v24 = vld [vmem:[%s10724_s7 + $0x498] sm:$0xff] }
 0x233   :  { %2634 = vmatprep.subr.bf16.mxu0 %v6461_v46  ;;  %v6517_v46 = vcombine.high %v887_v36, %v891_v38  ;;  %v939_v25 = vld [vmem:[%s10724_s7 + $0x4b8] sm:$0xff] }
 0x235   :  { %2549 = vmatpush1.bf16.msra.mxu1 %v6458_v33  ;;  %v6514_v33 = vcombine.low %v886_v31, %v890_v35  ;;  %v942_v31 = vld [vmem:[%s10724_s7 + $0x4d0] sm:$0xff] }
 0x236   :  { %2635 = vmatpush1.bf16.msra.mxu0 %v6460_v34  ;;  %2550 = vmatprep.subr.bf16.mxu1 %v6467_v37  ;;  %v6516_v34 = vcombine.low %v887_v36, %v891_v38  ;;  %v6523_v37 = vcombine.high %v894_v48, %v898_v49  ;;  %v946_v35 = vld [vmem:[%s10724_s7 + $0x4f0] sm:$0xff]  ;;  %v947_v36 = vld [vmem:[%s10724_s7 + $0x4f8] sm:$0xff]  ;;  %v6564_v38 = vcombine.low %v935_v24, %v939_v25 }
 0x237   :  { %2636 = vmatprep.subr.bf16.mxu0 %v6469_v41  ;;  %v6525_v41 = vcombine.high %v895_v50, %v899_v32 }
 0x239   :  { %2551 = vmatpush1.bf16.msra.mxu1 %v6466_v54  ;;  %v6522_v54 = vcombine.low %v894_v48, %v898_v49  ;;  %v951_v48 = vld [vmem:[%s10724_s7 + $0x518] sm:$0xff] }
 0x23a   :  { %2637 = vmatpush1.bf16.msra.mxu0 %v6468_v55  ;;  %2552 = vmatprep.subr.bf16.mxu1 %v6475_v56  ;;  %v6524_v55 = vcombine.low %v895_v50, %v899_v32  ;;  %v6531_v56 = vcombine.high %v902_v42, %v906_v51  ;;  %v955_v49 = vld [vmem:[%s10724_s7 + $0x538] sm:$0xff]  ;;  %v6570_v50 = vcombine.low %v942_v31, %v946_v35 }
 0x23b   :  { %2638 = vmatprep.subr.bf16.mxu0 %v6477_v57  ;;  %v6533_v57 = vcombine.high %v903_v52, %v907_v53 }
 0x23d   :  { %2553 = vmatpush1.bf16.msra.mxu1 %v6474_v0  ;;  %v6530_v0 = vcombine.low %v902_v42, %v906_v51  ;;  %v959_v42 = vld [vmem:[%s10724_s7 + $0x558] sm:$0xff] }
 0x23e   :  { %2639 = vmatpush1.bf16.msra.mxu0 %v6476_v1  ;;  %2554 = vmatprep.subr.bf16.mxu1 %v6483_v2  ;;  %v6532_v1 = vcombine.low %v903_v52, %v907_v53  ;;  %v6539_v2 = vcombine.high %v910_v58, %v914_v60  ;;  %v963_v51 = vld [vmem:[%s10724_s7 + $0x578] sm:$0xff]  ;;  %v6580_v53 = vcombine.low %v951_v48, %v955_v49 }
 0x23f   :  { %2640 = vmatprep.subr.bf16.mxu0 %v6485_v3  ;;  %v6541_v3 = vcombine.high %v911_v61, %v915_v62 }
 0x241   :  { %2555 = vmatpush1.bf16.msra.mxu1 %v6482_v11  ;;  %v6538_v11 = vcombine.low %v910_v58, %v914_v60  ;;  %v967_v58 = vld [vmem:[%s10724_s7 + $0x598] sm:$0xff] }
 0x242   :  { %2641 = vmatpush1.bf16.msra.mxu0 %v6484_v12  ;;  %2556 = vmatprep.subr.bf16.mxu1 %v6491_v13  ;;  %v6540_v12 = vcombine.low %v911_v61, %v915_v62  ;;  %v6547_v13 = vcombine.high %v918_v4, %v922_v7  ;;  %v971_v60 = vld [vmem:[%s10724_s7 + $0x5b8] sm:$0xff]  ;;  %v6588_v62 = vcombine.low %v959_v42, %v963_v51 }
 0x243   :  { %2642 = vmatprep.subr.bf16.mxu0 %v6493_v14  ;;  %v6549_v14 = vcombine.high %v919_v8, %v923_v10  ;;  %v975_v4 = vld [vmem:[%s10724_s7 + $0x5d8] sm:$0xff] }
 0x244   :  { %v979_v7 = vld [vmem:[%s10724_s7 + $0x5f8] sm:$0xff] }
 0x245   :  { %2557 = vmatpush1.bf16.msra.mxu1 %v6490_v18  ;;  %v931_v18 = vld [vmem:[%s10724_s7 + $0x478] sm:$0xff] }
 0x246   :  { %2643 = vmatpush1.bf16.msra.mxu0 %v6492_v19  ;;  %2558 = vmatprep.subr.bf16.mxu1 %v6499_v20  ;;  %v6548_v19 = vcombine.low %v919_v8, %v923_v10  ;;  %v6555_v20 = vcombine.high %v926_v15, %v930_v16  ;;  %v6557_v23 = vcombine.high %v927_v29, %v931_v18 }
 0x247   :  { %2644 = vmatprep.subr.bf16.mxu0 %v6501_v21  ;;  %v934_v21 = vld [vmem:[%s10724_s7 + $0x490] sm:$0xff]  ;;  %v6596_v10 = vcombine.low %v967_v58, %v971_v60 }
 0x249   :  { %2559 = vmatpush1.bf16.msra.mxu1 %v6498_v5  ;;  %v6554_v5 = vcombine.low %v926_v15, %v930_v16  ;;  %v983_v15 = vld [vmem:[%s10724_s7 + $0x618] sm:$0xff] }
 0x24a   :  { %2645 = vmatpush1.bf16.msra.mxu0 %v6500_v26  ;;  %2560 = vmatprep.subr.bf16.mxu1 %v6507_v27  ;;  %v6556_v26 = vcombine.low %v927_v29, %v931_v18  ;;  %v6563_v27 = vcombine.high %v934_v21, %v938_v22  ;;  %v987_v16 = vld [vmem:[%s10724_s7 + $0x638] sm:$0xff]  ;;  %v6604_v29 = vcombine.low %v975_v4, %v979_v7 }
 0x24b   :  { %2646 = vmatprep.subr.bf16.mxu0 %v6509_v30  ;;  %v6565_v30 = vcombine.high %v935_v24, %v939_v25  ;;  %v6612_v25 = vcombine.low %v983_v15, %v987_v16 }
 0x24d   :  { %2561 = vmatpush1.bf16.msra.mxu1 %v6506_v40  ;;  %v6571_v40 = vcombine.high %v942_v31, %v946_v35  ;;  %v999_v31 = vld [vmem:[%s10724_s7 + $0x698] sm:$0xff] }
 0x24e   :  { %2647 = vmatpush1.bf16.msra.mxu0 %v6508_v43  ;;  %2562 = vmatprep.subr.bf16.mxu1 %v6515_v45  ;;  %v950_v45 = vld [vmem:[%s10724_s7 + $0x510] sm:$0xff]  ;;  %v1003_v35 = vld [vmem:[%s10724_s7 + $0x6b8] sm:$0xff] }
 0x24f   :  { %2648 = vmatprep.subr.bf16.mxu0 %v6517_v46  ;;  %v954_v46 = vld [vmem:[%s10724_s7 + $0x530] sm:$0xff] }
 0x250   :  { %v6578_v52 = vcombine.low %v950_v45, %v954_v46 }
 0x251   :  { %2563 = vmatpush1.bf16.msra.mxu1 %v6514_v33  ;;  %v6579_v33 = vcombine.high %v950_v45, %v954_v46  ;;  %v1007_v45 = vld [vmem:[%s10724_s7 + $0x6d8] sm:$0xff] }
 0x252   :  { %2649 = vmatpush1.bf16.msra.mxu0 %v6516_v34  ;;  %2564 = vmatprep.subr.bf16.mxu1 %v6523_v37  ;;  %v6581_v34 = vcombine.high %v951_v48, %v955_v49  ;;  %v958_v37 = vld [vmem:[%s10724_s7 + $0x550] sm:$0xff]  ;;  %v1011_v46 = vld [vmem:[%s10724_s7 + $0x6f8] sm:$0xff]  ;;  %v6628_v49 = vcombine.low %v999_v31, %v1003_v35 }
 0x253   :  { %2650 = vmatprep.subr.bf16.mxu0 %v6525_v41  ;;  %v962_v41 = vld [vmem:[%s10724_s7 + $0x570] sm:$0xff] }
 0x254   :  { %v6586_v61 = vcombine.low %v958_v37, %v962_v41 }
 0x255   :  { %2565 = vmatpush1.bf16.msra.mxu1 %v6522_v54  ;;  %v6587_v54 = vcombine.high %v958_v37, %v962_v41  ;;  %v1015_v37 = vld [vmem:[%s10724_s7 + $0x718] sm:$0xff] }
 0x256   :  { %2651 = vmatpush1.bf16.msra.mxu0 %v6524_v55  ;;  %2566 = vmatprep.subr.bf16.mxu1 %v6531_v56  ;;  %v6589_v55 = vcombine.high %v959_v42, %v963_v51  ;;  %v966_v56 = vld [vmem:[%s10724_s7 + $0x590] sm:$0xff]  ;;  %v1019_v41 = vld [vmem:[%s10724_s7 + $0x738] sm:$0xff]  ;;  %v6636_v51 = vcombine.low %v1007_v45, %v1011_v46 }
 0x257   :  { %2652 = vmatprep.subr.bf16.mxu0 %v6533_v57  ;;  %v970_v57 = vld [vmem:[%s10724_s7 + $0x5b0] sm:$0xff] }
 0x258   :  { %v6594_v8 = vcombine.low %v966_v56, %v970_v57 }
 0x259   :  { %2567 = vmatpush1.bf16.msra.mxu1 %v6530_v0  ;;  %v6595_v0 = vcombine.high %v966_v56, %v970_v57  ;;  %v1023_v56 = vld [vmem:[%s10724_s7 + $0x758] sm:$0xff] }
 0x25a   :  { %2653 = vmatpush1.bf16.msra.mxu0 %v6532_v1  ;;  %2568 = vmatprep.subr.bf16.mxu1 %v6539_v2  ;;  %v6597_v1 = vcombine.high %v967_v58, %v971_v60  ;;  %v974_v2 = vld [vmem:[%s10724_s7 + $0x5d0] sm:$0xff]  ;;  %v1027_v57 = vld [vmem:[%s10724_s7 + $0x778] sm:$0xff]  ;;  %v6644_v60 = vcombine.low %v1015_v37, %v1019_v41 }
 0x25b   :  { %2654 = vmatprep.subr.bf16.mxu0 %v6541_v3  ;;  %v978_v3 = vld [vmem:[%s10724_s7 + $0x5f0] sm:$0xff] }
 0x25d   :  { %2569 = vmatpush1.bf16.msra.mxu1 %v6538_v11  ;;  %v6603_v11 = vcombine.high %v974_v2, %v978_v3 }
 0x25e   :  { %2655 = vmatpush1.bf16.msra.mxu0 %v6540_v12  ;;  %2581 = vmatprep.subr.bf16.mxu1 %v6547_v13  ;;  %v6605_v12 = vcombine.high %v975_v4, %v979_v7  ;;  %v982_v13 = vld [vmem:[%s10724_s7 + $0x610] sm:$0xff]  ;;  %v6652_v7 = vcombine.low %v1023_v56, %v1027_v57 }
 0x25f   :  { %2667 = vmatprep.subr.bf16.mxu0 %v6549_v14  ;;  %v986_v14 = vld [vmem:[%s10724_s7 + $0x630] sm:$0xff] }
 0x260   :  { %2571 = vmatmul.mubr.bf16.vlgmr.msra.gmra.mrb[8].mxu1 %v8672_v28  ;;  %v6611_v18 = vcombine.high %v982_v13, %v986_v14  ;;  %v6610_v24 = vcombine.low %v982_v13, %v986_v14  ;;  %v1039_v13 = vld [vmem:[%s10724_s7 + $0x7d8] sm:$0xff] }
 0x261   :  { %2657 = vmatmul.mubr.bf16.vlgmr.msra.gmra.mrb[16].mxu0 %v8672_v28  ;;  %2582 = vmatpush1.bf16.msra.mxu1 %v6546_v17  ;;  %v943_v28 = vld [vmem:[%s10724_s7 + $0x4d8] sm:$0xff]  ;;  %v6602_v17 = vcombine.low %v974_v2, %v978_v3 }
 0x262   :  { %2613 = vmatprep.mubr.bf16.mxu1 %v8890_v63  ;;  %2668 = vmatpush1.bf16.msra.mxu0 %v6548_v19  ;;  %v6573_v43 = vcombine.high %v943_v28, %v947_v36  ;;  %v6572_v32 = vcombine.low %v943_v28, %v947_v36  ;;  %v6613_v19 = vcombine.high %v983_v15, %v987_v16  ;;  %v1031_v2 = vld [vmem:[%s10724_s7 + $0x798] sm:$0xff] }
 0x263   :  { %2699 = vmatprep.mubr.bf16.mxu0 %v8890_v63  ;;  %2583 = vmatprep.subr.bf16.mxu1 %v6555_v20  ;;  %v6562_v63 = vcombine.low %v934_v21, %v938_v22  ;;  %v990_v20 = vld [vmem:[%s10724_s7 + $0x650] sm:$0xff]  ;;  %v991_v22 = vld [vmem:[%s10724_s7 + $0x658] sm:$0xff] }
 0x264   :  { %2669 = vmatprep.subr.bf16.mxu0 %v6557_v23  ;;  %v994_v21 = vld [vmem:[%s10724_s7 + $0x670] sm:$0xff]  ;;  %v995_v23 = vld [vmem:[%s10724_s7 + $0x678] sm:$0xff] }
 0x265   :  { %2584 = vmatpush1.bf16.msra.mxu1 %v6554_v5  ;;  %v6619_v5 = vcombine.high %v990_v20, %v994_v21  ;;  %v6618_v28 = vcombine.low %v990_v20, %v994_v21  ;;  %v6620_v36 = vcombine.low %v991_v22, %v995_v23  ;;  %v1035_v3 = vld [vmem:[%s10724_s7 + $0x7b8] sm:$0xff]  ;;  %v7417_v20 = vld [vmem:[%s10726_s9 + $0x4] ss:$28 sps:$4 sm:$0xff]   ;;  %v7420_v21 = vld [vmem:[%s10726_s9 + $0xc] ss:$28 sps:$4 sm:$0xff]  }
 0x266   :  { %2670 = vmatpush1.bf16.msra.mxu0 %v6556_v26  ;;  %2585 = vmatprep.subr.bf16.mxu1 %v6563_v27  ;;  %v6621_v26 = vcombine.high %v991_v22, %v995_v23  ;;  %v998_v27 = vld [vmem:[%s10724_s7 + $0x690] sm:$0xff]  ;;  %v1043_v14 = vld [vmem:[%s10724_s7 + $0x7f8] sm:$0xff]  ;;  %v6660_v16 = vcombine.low %v1031_v2, %v1035_v3  ;;  %v7418_v23 = vld [vmem:[%s10726_s9 + $0x8] ss:$28 sps:$4 sm:$0xff]  }
 0x267   :  { %2671 = vmatprep.subr.bf16.mxu0 %v6565_v30  ;;  %v1002_v30 = vld [vmem:[%s10724_s7 + $0x6b0] sm:$0xff]  ;;  %v7415_v22 = vld [vmem:[%s10726_s9] ss:$28 sps:$4 sm:$0xff]  }
 0x268   :  { %v6626_v48 = vcombine.low %v998_v27, %v1002_v30 }
 0x269   :  { %2586 = vmatpush1.bf16.msra.mxu1 %v6562_v63  ;;  %v6627_v63 = vcombine.high %v998_v27, %v1002_v30  ;;  %v7429_v27 = vld [vmem:[%s10726_s9 + $0x74] ss:$28 sps:$4 sm:$0xff]  }
 0x26a   :  { %2672 = vmatpush1.bf16.msra.mxu0 %v6564_v38  ;;  %2587 = vmatprep.subr.bf16.mxu1 %v6571_v40  ;;  %v6629_v38 = vcombine.high %v999_v31, %v1003_v35  ;;  %v1006_v40 = vld [vmem:[%s10724_s7 + $0x6d0] sm:$0xff]  ;;  %v7435_v35 = vld [vmem:[%s10726_s9 + $0xac] ss:$28 sps:$4 sm:$0xff]  }
 0x26b   :  { %2673 = vmatprep.subr.bf16.mxu0 %v6573_v43  ;;  %v1010_v43 = vld [vmem:[%s10724_s7 + $0x6f0] sm:$0xff] }
 0x26c   :  { %v6634_v42 = vcombine.low %v1006_v40, %v1010_v43  ;;  %v7427_v30 = vld [vmem:[%s10726_s9 + $0x70] ss:$28 sps:$4 sm:$0xff]   ;;  %v7430_v31 = vld [vmem:[%s10726_s9 + $0x78] ss:$28 sps:$4 sm:$0xff]  }
 0x26d   :  { %2588 = vmatpush1.bf16.msra.mxu1 %v6570_v50  ;;  %v6635_v50 = vcombine.high %v1006_v40, %v1010_v43  ;;  %v7444_v40 = vld [vmem:[%s10726_s9 + $0xec] ss:$28 sps:$4 sm:$0xff]   ;;  %v7439_v43 = vld [vmem:[%s10726_s9 + $0xe0] ss:$28 sps:$4 sm:$0xff]  }
 0x26e   :  { %2674 = vmatpush1.bf16.msra.mxu0 %v6572_v32  ;;  %2589 = vmatprep.subr.bf16.mxu1 %v6579_v33  ;;  %v6637_v32 = vcombine.high %v1007_v45, %v1011_v46  ;;  %v1014_v33 = vld [vmem:[%s10724_s7 + $0x710] sm:$0xff]  ;;  %v7442_v45 = vld [vmem:[%s10726_s9 + $0xe8] ss:$28 sps:$4 sm:$0xff]   ;;  %v7447_v46 = vld [vmem:[%s10726_s9 + $0x11c] ss:$28 sps:$4 sm:$0xff]  }
 0x26f   :  { %2675 = vmatprep.subr.bf16.mxu0 %v6581_v34  ;;  %v1018_v34 = vld [vmem:[%s10724_s7 + $0x730] sm:$0xff] }
 0x270   :  { %v6642_v58 = vcombine.low %v1014_v33, %v1018_v34 }
 0x271   :  { %2590 = vmatpush1.bf16.msra.mxu1 %v6578_v52  ;;  %v6643_v52 = vcombine.high %v1014_v33, %v1018_v34  ;;  %v7456_v33 = vld [vmem:[%s10726_s9 + $0x15c] ss:$28 sps:$4 sm:$0xff]   ;;  %v7451_v34 = vld [vmem:[%s10726_s9 + $0x150] ss:$28 sps:$4 sm:$0xff]  }
 0x272   :  { %2676 = vmatpush1.bf16.msra.mxu0 %v6580_v53  ;;  %2591 = vmatprep.subr.bf16.mxu1 %v6587_v54  ;;  %v6645_v53 = vcombine.high %v1015_v37, %v1019_v41  ;;  %v1022_v54 = vld [vmem:[%s10724_s7 + $0x750] sm:$0xff]  ;;  %v7459_v41 = vld [vmem:[%s10726_s9 + $0x18c] ss:$28 sps:$4 sm:$0xff]  }
 0x273   :  { %2677 = vmatprep.subr.bf16.mxu0 %v6589_v55  ;;  %v1026_v55 = vld [vmem:[%s10724_s7 + $0x770] sm:$0xff] }
 0x274   :  { %v6650_v4 = vcombine.low %v1022_v54, %v1026_v55  ;;  %v7454_v37 = vld [vmem:[%s10726_s9 + $0x158] ss:$28 sps:$4 sm:$0xff]  }
 0x275   :  { %2592 = vmatpush1.bf16.msra.mxu1 %v6586_v61  ;;  %v6651_v61 = vcombine.high %v1022_v54, %v1026_v55  ;;  %v7468_v54 = vld [vmem:[%s10726_s9 + $0x1cc] ss:$28 sps:$4 sm:$0xff]   ;;  %v7463_v55 = vld [vmem:[%s10726_s9 + $0x1c0] ss:$28 sps:$4 sm:$0xff]  }
 0x276   :  { %2678 = vmatpush1.bf16.msra.mxu0 %v6588_v62  ;;  %2593 = vmatprep.subr.bf16.mxu1 %v6595_v0  ;;  %v6653_v62 = vcombine.high %v1023_v56, %v1027_v57  ;;  %v1030_v0 = vld [vmem:[%s10724_s7 + $0x790] sm:$0xff]  ;;  %v7466_v56 = vld [vmem:[%s10726_s9 + $0x1c8] ss:$28 sps:$4 sm:$0xff]   ;;  %v7471_v57 = vld [vmem:[%s10726_s9 + $0x1fc] ss:$28 sps:$4 sm:$0xff]  }
 0x277   :  { %2679 = vmatprep.subr.bf16.mxu0 %v6597_v1  ;;  %v1034_v1 = vld [vmem:[%s10724_s7 + $0x7b0] sm:$0xff] }
 0x278   :  { %v6658_v15 = vcombine.low %v1030_v0, %v1034_v1 }
 0x279   :  { %2594 = vmatpush1.bf16.msra.mxu1 %v6594_v8  ;;  %v6659_v8 = vcombine.high %v1030_v0, %v1034_v1  ;;  %v7480_v0 = vld [vmem:[%s10726_s9 + $0x23c] ss:$28 sps:$4 sm:$0xff]   ;;  %v7475_v1 = vld [vmem:[%s10726_s9 + $0x230] ss:$28 sps:$4 sm:$0xff]  }
 0x27a   :  { %2680 = vmatpush1.bf16.msra.mxu0 %v6596_v10  ;;  %2595 = vmatprep.subr.bf16.mxu1 %v6603_v11  ;;  %v6661_v10 = vcombine.high %v1031_v2, %v1035_v3  ;;  %v1038_v11 = vld [vmem:[%s10724_s7 + $0x7d0] sm:$0xff]  ;;  %v7483_v3 = vld [vmem:[%s10726_s9 + $0x26c] ss:$28 sps:$4 sm:$0xff]  }
 0x27b   :  { %2681 = vmatprep.subr.bf16.mxu0 %v6605_v12  ;;  %v1042_v12 = vld [vmem:[%s10724_s7 + $0x7f0] sm:$0xff] }
 0x27c   :  { %v7478_v2 = vld [vmem:[%s10726_s9 + $0x238] ss:$28 sps:$4 sm:$0xff]  }
 0x27d   :  { %2596 = vmatpush1.bf16.msra.mxu1 %v6602_v17  ;;  %v6667_v17 = vcombine.high %v1038_v11, %v1042_v12 }
 0x27e   :  { %2682 = vmatpush1.bf16.msra.mxu0 %v6604_v29  ;;  %2597 = vmatprep.subr.bf16.mxu1 %v6611_v18  ;;  %v6669_v29 = vcombine.high %v1039_v13, %v1043_v14  ;;  %v6666_v18 = vcombine.low %v1038_v11, %v1042_v12  ;;  %v7492_v11 = vld [vmem:[%s10726_s9 + $0x2ac] ss:$28 sps:$4 sm:$0xff]   ;;  %v7487_v12 = vld [vmem:[%s10726_s9 + $0x2a0] ss:$28 sps:$4 sm:$0xff]  }
 0x27f   :  { %2683 = vmatprep.subr.bf16.mxu0 %v6613_v19  ;;  %v6668_v19 = vcombine.low %v1039_v13, %v1043_v14  ;;  %v7490_v13 = vld [vmem:[%s10726_s9 + $0x2a8] ss:$28 sps:$4 sm:$0xff]   ;;  %v7495_v14 = vld [vmem:[%s10726_s9 + $0x2dc] ss:$28 sps:$4 sm:$0xff]  }
 0x281   :  { %2598 = vmatpush1.bf16.msra.mxu1 %v6610_v24  ;;  %v7423_v24 = vld [vmem:[%s10726_s9 + $0x3c] ss:$28 sps:$4 sm:$0xff]  }
 0x282   :  { %2684 = vmatpush1.bf16.msra.mxu0 %v6612_v25  ;;  %2599 = vmatprep.subr.bf16.mxu1 %v6619_v5  ;;  %v7426_v25 = vld [vmem:[%s10726_s9 + $0x44] ss:$28 sps:$4 sm:$0xff]   ;;  %v7421_v5 = vld [vmem:[%s10726_s9 + $0x38] ss:$28 sps:$4 sm:$0xff]  }
 0x283   :  { %2685 = vmatprep.subr.bf16.mxu0 %v6621_v26  ;;  %v7424_v26 = vld [vmem:[%s10726_s9 + $0x40] ss:$28 sps:$4 sm:$0xff]  }
 0x285   :  { %2600 = vmatpush1.bf16.msra.mxu1 %v6618_v28  ;;  %v7438_v28 = vld [vmem:[%s10726_s9 + $0xb4] ss:$28 sps:$4 sm:$0xff]  }
 0x286   :  { %2686 = vmatpush1.bf16.msra.mxu0 %v6620_v36  ;;  %2601 = vmatprep.subr.bf16.mxu1 %v6627_v63  ;;  %v7433_v36 = vld [vmem:[%s10726_s9 + $0xa8] ss:$28 sps:$4 sm:$0xff]   ;;  %v7436_v63 = vld [vmem:[%s10726_s9 + $0xb0] ss:$28 sps:$4 sm:$0xff]  }
 0x287   :  { %2687 = vmatprep.subr.bf16.mxu0 %v6629_v38  ;;  %v7441_v38 = vld [vmem:[%s10726_s9 + $0xe4] ss:$28 sps:$4 sm:$0xff]  }
 0x289   :  { %2602 = vmatpush1.bf16.msra.mxu1 %v6626_v48  ;;  %v7450_v48 = vld [vmem:[%s10726_s9 + $0x124] ss:$28 sps:$4 sm:$0xff]  }
 0x28a   :  { %2688 = vmatpush1.bf16.msra.mxu0 %v6628_v49  ;;  %2603 = vmatprep.subr.bf16.mxu1 %v6635_v50  ;;  %v7445_v49 = vld [vmem:[%s10726_s9 + $0x118] ss:$28 sps:$4 sm:$0xff]   ;;  %v7448_v50 = vld [vmem:[%s10726_s9 + $0x120] ss:$28 sps:$4 sm:$0xff]  }
 0x28b   :  { %2689 = vmatprep.subr.bf16.mxu0 %v6637_v32  ;;  %v7453_v32 = vld [vmem:[%s10726_s9 + $0x154] ss:$28 sps:$4 sm:$0xff]  }
 0x28d   :  { %2604 = vmatpush1.bf16.msra.mxu1 %v6634_v42  ;;  %v7462_v42 = vld [vmem:[%s10726_s9 + $0x194] ss:$28 sps:$4 sm:$0xff]  }
 0x28e   :  { %2690 = vmatpush1.bf16.msra.mxu0 %v6636_v51  ;;  %2605 = vmatprep.subr.bf16.mxu1 %v6643_v52  ;;  %v7457_v51 = vld [vmem:[%s10726_s9 + $0x188] ss:$28 sps:$4 sm:$0xff]   ;;  %v7460_v52 = vld [vmem:[%s10726_s9 + $0x190] ss:$28 sps:$4 sm:$0xff]  }
 0x28f   :  { %2691 = vmatprep.subr.bf16.mxu0 %v6645_v53  ;;  %v7465_v53 = vld [vmem:[%s10726_s9 + $0x1c4] ss:$28 sps:$4 sm:$0xff]  }
 0x291   :  { %2606 = vmatpush1.bf16.msra.mxu1 %v6642_v58  ;;  %v7474_v58 = vld [vmem:[%s10726_s9 + $0x204] ss:$28 sps:$4 sm:$0xff]  }
 0x292   :  { %2692 = vmatpush1.bf16.msra.mxu0 %v6644_v60  ;;  %2607 = vmatprep.subr.bf16.mxu1 %v6651_v61  ;;  %v7469_v60 = vld [vmem:[%s10726_s9 + $0x1f8] ss:$28 sps:$4 sm:$0xff]   ;;  %v7472_v61 = vld [vmem:[%s10726_s9 + $0x200] ss:$28 sps:$4 sm:$0xff]  }
 0x293   :  { %2693 = vmatprep.subr.bf16.mxu0 %v6653_v62  ;;  %v7477_v62 = vld [vmem:[%s10726_s9 + $0x234] ss:$28 sps:$4 sm:$0xff]  }
 0x295   :  { %2608 = vmatpush1.bf16.msra.mxu1 %v6650_v4  ;;  %v7486_v4 = vld [vmem:[%s10726_s9 + $0x274] ss:$28 sps:$4 sm:$0xff]  }
 0x296   :  { %2694 = vmatpush1.bf16.msra.mxu0 %v6652_v7  ;;  %2609 = vmatprep.subr.bf16.mxu1 %v6659_v8  ;;  %v7481_v7 = vld [vmem:[%s10726_s9 + $0x268] ss:$28 sps:$4 sm:$0xff]   ;;  %v7484_v8 = vld [vmem:[%s10726_s9 + $0x270] ss:$28 sps:$4 sm:$0xff]  }
 0x297   :  { %2695 = vmatprep.subr.bf16.mxu0 %v6661_v10  ;;  %v7489_v10 = vld [vmem:[%s10726_s9 + $0x2a4] ss:$28 sps:$4 sm:$0xff]  }
 0x299   :  { %2610 = vmatpush1.bf16.msra.mxu1 %v6658_v15  ;;  %v7498_v15 = vld [vmem:[%s10726_s9 + $0x2e4] ss:$28 sps:$4 sm:$0xff]  }
 0x29a   :  { %2696 = vmatpush1.bf16.msra.mxu0 %v6660_v16  ;;  %2611 = vmatprep.subr.bf16.mxu1 %v6667_v17  ;;  %v7493_v16 = vld [vmem:[%s10726_s9 + $0x2d8] ss:$28 sps:$4 sm:$0xff]   ;;  %v7496_v17 = vld [vmem:[%s10726_s9 + $0x2e0] ss:$28 sps:$4 sm:$0xff]  }
 0x29b   :  { %2697 = vmatprep.subr.bf16.mxu0 %v6669_v29  ;;  %v7501_v29 = vld [vmem:[%s10726_s9 + $0x314] ss:$28 sps:$4 sm:$0xff]  }
 0x29d   :  { %2612 = vmatpush1.bf16.msra.mxu1 %v6666_v18  ;;  %v7504_v18 = vld [vmem:[%s10726_s9 + $0x31c] ss:$28 sps:$4 sm:$0xff]  }
 0x29e   :  { %2698 = vmatpush1.bf16.msra.mxu0 %v6668_v19  ;;  %5603 = vmatprep.subr.bf16.mxu1 %v7417_v20  ;;  %v7499_v19 = vld [vmem:[%s10726_s9 + $0x310] ss:$28 sps:$4 sm:$0xff]   ;;  %v7502_v20 = vld [vmem:[%s10726_s9 + $0x318] ss:$28 sps:$4 sm:$0xff]  }
 0x29f   :  { %5775 = vmatprep.subr.bf16.mxu0 %v7420_v21  ;;  %v7507_v21 = vld [vmem:[%s10726_s9 + $0x34c] ss:$28 sps:$4 sm:$0xff]  }
 0x2a0   :  { %2614 = vmatmul.mubr.bf16.vlgmr.msra.gmra.mrb[8].mxu1 %v8879_v59 }
 0x2a1   :  { %2700 = vmatmul.mubr.bf16.vlgmr.msra.gmra.mrb[16].mxu0 %v8879_v59  ;;  %5604 = vmatpush1.bf16.msra.mxu1 %v7415_v22  ;;  %v7432_v59 = vld [vmem:[%s10726_s9 + $0x7c] ss:$28 sps:$4 sm:$0xff]   ;;  %v7510_v22 = vld [vmem:[%s10726_s9 + $0x354] ss:$28 sps:$4 sm:$0xff]  }
 0x2a2   :  { %5776 = vmatpush1.bf16.msra.mxu0 %v7418_v23  ;;  %5605 = vmatprep.subr.bf16.mxu1 %v7423_v24  ;;  %v7505_v23 = vld [vmem:[%s10726_s9 + $0x348] ss:$28 sps:$4 sm:$0xff]   ;;  %v7508_v24 = vld [vmem:[%s10726_s9 + $0x350] ss:$28 sps:$4 sm:$0xff]  }
 0x2a3   :  { %5777 = vmatprep.subr.bf16.mxu0 %v7426_v25  ;;  %v7513_v25 = vld [vmem:[%s10726_s9 + $0x384] ss:$28 sps:$4 sm:$0xff]  }
 0x2a5   :  { %5606 = vmatpush1.bf16.msra.mxu1 %v7421_v5  ;;  %v7516_v5 = vld [vmem:[%s10726_s9 + $0x38c] ss:$28 sps:$4 sm:$0xff]  }
 0x2a6   :  { %5778 = vmatpush1.bf16.msra.mxu0 %v7424_v26  ;;  %5607 = vmatprep.subr.bf16.mxu1 %v7429_v27  ;;  %v9465_v26 = vld [vmem:[%s10725_s8] sm:$0xff] }
 0x2a7   :  { %5779 = vmatprep.subr.bf16.mxu0 %v7432_v59  ;;  %v1049_v27 = vrot.slane %v9465_v26, %v8396_v44  ;;  %v1057_v59 = vrot.slane %v9465_v26, %v8831_v6 }
 0x2a9   :  { %5608 = vmatpush1.bf16.msra.mxu1 %v7427_v30  ;;  %v1053_v30 = vrot.slane %v9465_v26, %v8402_v47 }
 0x2aa   :  { %5780 = vmatpush1.bf16.msra.mxu0 %v7430_v31  ;;  %5609 = vmatprep.subr.bf16.mxu1 %v7435_v35  ;;  %v1061_v31 = vrot.slane %v9465_v26, %v8834_v9 }
 0x2ab   :  { %5781 = vmatprep.subr.bf16.mxu0 %v7438_v28 }
 0x2ad   :  { %5610 = vmatpush1.bf16.msra.mxu1 %v7433_v36 }
 0x2ae   :  { %5782 = vmatpush1.bf16.msra.mxu0 %v7436_v63  ;;  %5611 = vmatprep.subr.bf16.mxu1 %v7441_v38 }
 0x2af   :  { %5783 = vmatprep.subr.bf16.mxu0 %v7444_v40 }
 0x2b1   :  { %5612 = vmatpush1.bf16.msra.mxu1 %v7439_v43 }
 0x2b2   :  { %5784 = vmatpush1.bf16.msra.mxu0 %v7442_v45  ;;  %5613 = vmatprep.subr.bf16.mxu1 %v7447_v46 }
 0x2b3   :  { %5785 = vmatprep.subr.bf16.mxu0 %v7450_v48 }
 0x2b5   :  { %5614 = vmatpush1.bf16.msra.mxu1 %v7445_v49 }
 0x2b6   :  { %5786 = vmatpush1.bf16.msra.mxu0 %v7448_v50  ;;  %5615 = vmatprep.subr.bf16.mxu1 %v7453_v32 }
 0x2b7   :  { %5787 = vmatprep.subr.bf16.mxu0 %v7456_v33 }
 0x2b9   :  { %5616 = vmatpush1.bf16.msra.mxu1 %v7451_v34 }
 0x2ba   :  { %5788 = vmatpush1.bf16.msra.mxu0 %v7454_v37  ;;  %5617 = vmatprep.subr.bf16.mxu1 %v7459_v41 }
 0x2bb   :  { %5789 = vmatprep.subr.bf16.mxu0 %v7462_v42 }
 0x2bd   :  { %5618 = vmatpush1.bf16.msra.mxu1 %v7457_v51 }
 0x2be   :  { %5790 = vmatpush1.bf16.msra.mxu0 %v7460_v52  ;;  %5619 = vmatprep.subr.bf16.mxu1 %v7465_v53 }
 0x2bf   :  { %5791 = vmatprep.subr.bf16.mxu0 %v7468_v54 }
 0x2c1   :  { %5620 = vmatpush1.bf16.msra.mxu1 %v7463_v55 }
 0x2c2   :  { %5792 = vmatpush1.bf16.msra.mxu0 %v7466_v56  ;;  %5621 = vmatprep.subr.bf16.mxu1 %v7471_v57 }
 0x2c3   :  { %5793 = vmatprep.subr.bf16.mxu0 %v7474_v58 }
 0x2c5   :  { %5622 = vmatpush1.bf16.msra.mxu1 %v7469_v60 }
 0x2c6   :  { %5794 = vmatpush1.bf16.msra.mxu0 %v7472_v61  ;;  %5623 = vmatprep.subr.bf16.mxu1 %v7477_v62 }
 0x2c7   :  { %5795 = vmatprep.subr.bf16.mxu0 %v7480_v0 }
 0x2c9   :  { %5624 = vmatpush1.bf16.msra.mxu1 %v7475_v1 }
 0x2ca   :  { %5796 = vmatpush1.bf16.msra.mxu0 %v7478_v2  ;;  %5625 = vmatprep.subr.bf16.mxu1 %v7483_v3 }
 0x2cb   :  { %5797 = vmatprep.subr.bf16.mxu0 %v7486_v4 }
 0x2cd   :  { %5626 = vmatpush1.bf16.msra.mxu1 %v7481_v7 }
 0x2ce   :  { %5798 = vmatpush1.bf16.msra.mxu0 %v7484_v8  ;;  %5627 = vmatprep.subr.bf16.mxu1 %v7489_v10  ;;  %v7511_v10 = vld [vmem:[%s10726_s9 + $0x380] ss:$28 sps:$4 sm:$0xff]  }
 0x2cf   :  { %5799 = vmatprep.subr.bf16.mxu0 %v7492_v11  ;;  %v7514_v11 = vld [vmem:[%s10726_s9 + $0x388] ss:$28 sps:$4 sm:$0xff]  }
 0x2d1   :  { %5628 = vmatpush1.bf16.msra.mxu1 %v7487_v12  ;;  %v7519_v12 = vld [vmem:[%s10726_s9 + $0x3bc] ss:$28 sps:$4 sm:$0xff]  }
 0x2d2   :  { %5800 = vmatpush1.bf16.msra.mxu0 %v7490_v13  ;;  %5629 = vmatprep.subr.bf16.mxu1 %v7495_v14  ;;  %v7522_v13 = vld [vmem:[%s10726_s9 + $0x3c4] ss:$28 sps:$4 sm:$0xff]   ;;  %v7517_v14 = vld [vmem:[%s10726_s9 + $0x3b8] ss:$28 sps:$4 sm:$0xff]  }
 0x2d3   :  { %5801 = vmatprep.subr.bf16.mxu0 %v7498_v15  ;;  %v7520_v15 = vld [vmem:[%s10726_s9 + $0x3c0] ss:$28 sps:$4 sm:$0xff]  }
 0x2d5   :  { %5630 = vmatpush1.bf16.msra.mxu1 %v7493_v16  ;;  %v7525_v16 = vld [vmem:[%s10726_s9 + $0x3f4] ss:$28 sps:$4 sm:$0xff]  }
 0x2d6   :  { %5802 = vmatpush1.bf16.msra.mxu0 %v7496_v17  ;;  %5631 = vmatprep.subr.bf16.mxu1 %v7501_v29  ;;  %v7528_v17 = vld [vmem:[%s10726_s9 + $0x3fc] ss:$28 sps:$4 sm:$0xff]   ;;  %v7523_v29 = vld [vmem:[%s10726_s9 + $0x3f0] ss:$28 sps:$4 sm:$0xff]  }
 0x2d7   :  { %5803 = vmatprep.subr.bf16.mxu0 %v7504_v18  ;;  %v7526_v18 = vld [vmem:[%s10726_s9 + $0x3f8] ss:$28 sps:$4 sm:$0xff]  }
 0x2d9   :  { %5632 = vmatpush1.bf16.msra.mxu1 %v7499_v19  ;;  %v7531_v19 = vld [vmem:[%s10726_s9 + $0x42c] ss:$28 sps:$4 sm:$0xff]  }
 0x2da   :  { %5804 = vmatpush1.bf16.msra.mxu0 %v7502_v20  ;;  %5633 = vmatprep.subr.bf16.mxu1 %v7507_v21  ;;  %v7534_v20 = vld [vmem:[%s10726_s9 + $0x434] ss:$28 sps:$4 sm:$0xff]   ;;  %v7529_v21 = vld [vmem:[%s10726_s9 + $0x428] ss:$28 sps:$4 sm:$0xff]  }
 0x2db   :  { %5805 = vmatprep.subr.bf16.mxu0 %v7510_v22  ;;  %v7532_v22 = vld [vmem:[%s10726_s9 + $0x430] ss:$28 sps:$4 sm:$0xff]  }
 0x2dd   :  { %5634 = vmatpush1.bf16.msra.mxu1 %v7505_v23  ;;  %v7537_v23 = vld [vmem:[%s10726_s9 + $0x464] ss:$28 sps:$4 sm:$0xff]  }
 0x2de   :  { %5806 = vmatpush1.bf16.msra.mxu0 %v7508_v24  ;;  %5646 = vmatprep.subr.bf16.mxu1 %v7513_v25  ;;  %v7540_v24 = vld [vmem:[%s10726_s9 + $0x46c] ss:$28 sps:$4 sm:$0xff]   ;;  %v7535_v25 = vld [vmem:[%s10726_s9 + $0x460] ss:$28 sps:$4 sm:$0xff]  }
 0x2df   :  { %5818 = vmatprep.subr.bf16.mxu0 %v7516_v5  ;;  %v7538_v5 = vld [vmem:[%s10726_s9 + $0x468] ss:$28 sps:$4 sm:$0xff]  }
 0x2f3   :  { %v2443_v35 = vpop.f32.mrb[4].mxu1  ;;  %v2529_v28 = vpop.f32.mrb[12].mxu0 }
 0x2f4   :  { %v7210_v36 = vadd.f32 %v2443_v35, %v1049_v27  ;;  %v7214_v63 = vadd.f32 %v2529_v28, %v1057_v59  ;;  %v2445_v38 = vpop.f32.mrb[5].mxu1  ;;  %v2531_v40 = vpop.f32.mrb[13].mxu0  ;;  %v7549_v35 = vld [vmem:[%s10726_s9 + $0x4d4] ss:$28 sps:$4 sm:$0xff]   ;;  %v7552_v28 = vld [vmem:[%s10726_s9 + $0x4dc] ss:$28 sps:$4 sm:$0xff]  }
 0x2f5   :  { %v7211_v43 = vadd.f32 %v2445_v38, %v1053_v30  ;;  %v7215_v45 = vadd.f32 %v2531_v40, %v1061_v31  ;;  %v2447_v46 = vpop.f32.mrb[6].mxu1  ;;  %v2533_v48 = vpop.f32.mrb[14].mxu0  ;;  %v7555_v38 = vld [vmem:[%s10726_s9 + $0x50c] ss:$28 sps:$4 sm:$0xff]   ;;  %v7558_v40 = vld [vmem:[%s10726_s9 + $0x514] ss:$28 sps:$4 sm:$0xff]  }
 0x2f6   :  { %v2710_v49 = vmul.f32 0.2, %v7210_v36  ;;  %v2712_v50 = vmul.f32 0.2, %v7214_v63  ;;  %v7212_v32 = vadd.f32 %v2447_v46, %v1049_v27  ;;  %v7216_v33 = vadd.f32 %v2533_v48, %v1057_v59  ;;  %v2449_v34 = vpop.f32.mrb[7].mxu1  ;;  %v2535_v37 = vpop.f32.mrb[15].mxu0 }
 0x2f7   :  { %v2711_v41 = vmul.f32 0.2, %v7211_v43  ;;  %v2713_v42 = vmul.f32 0.2, %v7215_v45  ;;  %v7213_v51 = vadd.f32 %v2449_v34, %v1053_v30  ;;  %v7217_v52 = vadd.f32 %v2535_v37, %v1061_v31  ;;  %v7543_v27 = vld [vmem:[%s10726_s9 + $0x49c] ss:$28 sps:$4 sm:$0xff]  }
 0x2f8   :  { %v2718_v53 = vmul.f32 0.2, %v7212_v32  ;;  %v2720_v54 = vmul.f32 0.2, %v7216_v33  ;;  %v2726_v57 = vmax.f32 %v7210_v36, %v2710_v49  ;;  %v2728_v58 = vmax.f32 %v7214_v63, %v2712_v50  ;;  %v7546_v59 = vld [vmem:[%s10726_s9 + $0x4a4] ss:$28 sps:$4 sm:$0xff]  }
 0x2f9   :  { %v2719_v55 = vmul.f32 0.2, %v7213_v51  ;;  %v2721_v56 = vmul.f32 0.2, %v7217_v52  ;;  %v2727_v62 = vmax.f32 %v7211_v43, %v2711_v41  ;;  %v2729_v0 = vmax.f32 %v7215_v45, %v2713_v42  ;;  %v7541_v30 = vld [vmem:[%s10726_s9 + $0x498] ss:$28 sps:$4 sm:$0xff]  }
 0x2fa   :  { %v2734_v60 = vmax.f32 %v7212_v32, %v2718_v53  ;;  %v2736_v61 = vmax.f32 %v7216_v33, %v2720_v54  ;;  %v7544_v31 = vld [vmem:[%s10726_s9 + $0x4a0] ss:$28 sps:$4 sm:$0xff]   ;;  %v7547_v36 = vld [vmem:[%s10726_s9 + $0x4d0] ss:$28 sps:$4 sm:$0xff]   ;;  %v7550_v63 = vld [vmem:[%s10726_s9 + $0x4d8] ss:$28 sps:$4 sm:$0xff]  }
 0x2fb   :  { %v2735_v1 = vmax.f32 %v7213_v51, %v2719_v55  ;;  %v2737_v2 = vmax.f32 %v7217_v52, %v2721_v56  ;;  %v7553_v43 = vld [vmem:[%s10726_s9 + $0x508] ss:$28 sps:$4 sm:$0xff]   ;;  %v7556_v45 = vld [vmem:[%s10726_s9 + $0x510] ss:$28 sps:$4 sm:$0xff]   ;;  %v7559_v49 = vld [vmem:[%s10726_s9 + $0x540] ss:$28 sps:$4 sm:$0xff]  }
 0x2fc   :  { %v9475_v3 = vpack.c.bf16 %v2734_v60, %v2726_v57  ;;  %v9477_v4 = vpack.c.bf16 %v2736_v61, %v2728_v58  ;;  %v7561_v46 = vld [vmem:[%s10726_s9 + $0x544] ss:$28 sps:$4 sm:$0xff]   ;;  %v7564_v48 = vld [vmem:[%s10726_s9 + $0x54c] ss:$28 sps:$4 sm:$0xff]   ;;  %v7567_v32 = vld [vmem:[%s10726_s9 + $0x57c] ss:$28 sps:$4 sm:$0xff]  }
 0x2fd   :  { %v9479_v7 = vpack.c.bf16 %v2735_v1, %v2727_v62  ;;  %v9481_v8 = vpack.c.bf16 %v2737_v2, %v2729_v0  ;;  %v7562_v50 = vld [vmem:[%s10726_s9 + $0x548] ss:$28 sps:$4 sm:$0xff]   ;;  %v7565_v34 = vld [vmem:[%s10726_s9 + $0x578] ss:$28 sps:$4 sm:$0xff]   ;;  %v7568_v37 = vld [vmem:[%s10726_s9 + $0x580] ss:$28 sps:$4 sm:$0xff]  }
 0x2fe   :  { %v7570_v33 = vld [vmem:[%s10726_s9 + $0x584] ss:$28 sps:$4 sm:$0xff]   ;;  %v7573_v41 = vld [vmem:[%s10726_s9 + $0x5b4] ss:$28 sps:$4 sm:$0xff]   ;;  %v7576_v42 = vld [vmem:[%s10726_s9 + $0x5bc] ss:$28 sps:$4 sm:$0xff]  }
 0x2ff   :  { %5635 = vmatprep.mubr.bf16.mxu1 %v9479_v7  ;;  %5807 = vmatprep.mubr.bf16.mxu0 %v9479_v7  ;;  %v7571_v51 = vld [vmem:[%s10726_s9 + $0x5b0] ss:$28 sps:$4 sm:$0xff]   ;;  %v7574_v52 = vld [vmem:[%s10726_s9 + $0x5b8] ss:$28 sps:$4 sm:$0xff]   ;;  %v7577_v55 = vld [vmem:[%s10726_s9 + $0x5e8] ss:$28 sps:$4 sm:$0xff]  }
 0x300   :  { %5636 = vmatmul.mubr.bf16.vlgmr.msra.gmra.mrb[12].mxu1 %v9475_v3  ;;  %5808 = vmatmul.mubr.bf16.vlgmr.msra.gmra.mrb[20].mxu0 %v9475_v3  ;;  %v7579_v53 = vld [vmem:[%s10726_s9 + $0x5ec] ss:$28 sps:$4 sm:$0xff]   ;;  %v7582_v54 = vld [vmem:[%s10726_s9 + $0x5f4] ss:$28 sps:$4 sm:$0xff]   ;;  %v7585_v57 = vld [vmem:[%s10726_s9 + $0x624] ss:$28 sps:$4 sm:$0xff]  }
 0x301   :  { %5647 = vmatpush1.bf16.msra.mxu1 %v7511_v10  ;;  %5819 = vmatpush1.bf16.msra.mxu0 %v7514_v11  ;;  %v7580_v56 = vld [vmem:[%s10726_s9 + $0x5f0] ss:$28 sps:$4 sm:$0xff]   ;;  %v7583_v60 = vld [vmem:[%s10726_s9 + $0x620] ss:$28 sps:$4 sm:$0xff]   ;;  %v7586_v61 = vld [vmem:[%s10726_s9 + $0x628] ss:$28 sps:$4 sm:$0xff]  }
 0x302   :  { %5678 = vmatprep.mubr.bf16.mxu1 %v9481_v8  ;;  %5850 = vmatprep.mubr.bf16.mxu0 %v9481_v8  ;;  %v7588_v58 = vld [vmem:[%s10726_s9 + $0x62c] ss:$28 sps:$4 sm:$0xff]   ;;  %v7591_v62 = vld [vmem:[%s10726_s9 + $0x65c] ss:$28 sps:$4 sm:$0xff]   ;;  %v7594_v0 = vld [vmem:[%s10726_s9 + $0x664] ss:$28 sps:$4 sm:$0xff]  }
 0x303   :  { %5648 = vmatprep.subr.bf16.mxu1 %v7519_v12  ;;  %5820 = vmatprep.subr.bf16.mxu0 %v7522_v13  ;;  %v7589_v1 = vld [vmem:[%s10726_s9 + $0x658] ss:$28 sps:$4 sm:$0xff]   ;;  %v7592_v2 = vld [vmem:[%s10726_s9 + $0x660] ss:$28 sps:$4 sm:$0xff]   ;;  %v7595_v12 = vld [vmem:[%s10726_s9 + $0x690] ss:$28 sps:$4 sm:$0xff]  }
 0x304   :  { %v7597_v10 = vld [vmem:[%s10726_s9 + $0x694] ss:$28 sps:$4 sm:$0xff]   ;;  %v7600_v11 = vld [vmem:[%s10726_s9 + $0x69c] ss:$28 sps:$4 sm:$0xff]  }
 0x305   :  { %5649 = vmatpush1.bf16.msra.mxu1 %v7517_v14  ;;  %5821 = vmatpush1.bf16.msra.mxu0 %v7520_v15  ;;  %v7598_v13 = vld [vmem:[%s10726_s9 + $0x698] ss:$28 sps:$4 sm:$0xff]   ;;  %v7603_v14 = vld [vmem:[%s10726_s9 + $0x6cc] ss:$28 sps:$4 sm:$0xff]  }
 0x306   :  { %5650 = vmatprep.subr.bf16.mxu1 %v7525_v16  ;;  %5822 = vmatprep.subr.bf16.mxu0 %v7528_v17  ;;  %v7606_v15 = vld [vmem:[%s10726_s9 + $0x6d4] ss:$28 sps:$4 sm:$0xff]   ;;  %v7601_v16 = vld [vmem:[%s10726_s9 + $0x6c8] ss:$28 sps:$4 sm:$0xff]  }
 0x307   :  { %v7604_v17 = vld [vmem:[%s10726_s9 + $0x6d0] ss:$28 sps:$4 sm:$0xff]  }
 0x309   :  { %5651 = vmatpush1.bf16.msra.mxu1 %v7523_v29  ;;  %5823 = vmatpush1.bf16.msra.mxu0 %v7526_v18  ;;  %v7609_v29 = vld [vmem:[%s10726_s9 + $0x704] ss:$28 sps:$4 sm:$0xff]   ;;  %v7612_v18 = vld [vmem:[%s10726_s9 + $0x70c] ss:$28 sps:$4 sm:$0xff]  }
 0x30a   :  { %5652 = vmatprep.subr.bf16.mxu1 %v7531_v19  ;;  %5824 = vmatprep.subr.bf16.mxu0 %v7534_v20  ;;  %v7607_v19 = vld [vmem:[%s10726_s9 + $0x700] ss:$28 sps:$4 sm:$0xff]   ;;  %v7610_v20 = vld [vmem:[%s10726_s9 + $0x708] ss:$28 sps:$4 sm:$0xff]  }
 0x30d   :  { %5653 = vmatpush1.bf16.msra.mxu1 %v7529_v21  ;;  %5825 = vmatpush1.bf16.msra.mxu0 %v7532_v22  ;;  %v7615_v21 = vld [vmem:[%s10726_s9 + $0x73c] ss:$28 sps:$4 sm:$0xff]   ;;  %v7618_v22 = vld [vmem:[%s10726_s9 + $0x744] ss:$28 sps:$4 sm:$0xff]  }
 0x30e   :  { %5654 = vmatprep.subr.bf16.mxu1 %v7537_v23  ;;  %5826 = vmatprep.subr.bf16.mxu0 %v7540_v24  ;;  %v7613_v23 = vld [vmem:[%s10726_s9 + $0x738] ss:$28 sps:$4 sm:$0xff]   ;;  %v7616_v24 = vld [vmem:[%s10726_s9 + $0x740] ss:$28 sps:$4 sm:$0xff]  }
 0x311   :  { %5655 = vmatpush1.bf16.msra.mxu1 %v7535_v25  ;;  %5827 = vmatpush1.bf16.msra.mxu0 %v7538_v5  ;;  %v7621_v25 = vld [vmem:[%s10726_s9 + $0x774] ss:$28 sps:$4 sm:$0xff]   ;;  %v7624_v5 = vld [vmem:[%s10726_s9 + $0x77c] ss:$28 sps:$4 sm:$0xff]  }
 0x312   :  { %5656 = vmatprep.subr.bf16.mxu1 %v7543_v27  ;;  %5828 = vmatprep.subr.bf16.mxu0 %v7546_v59  ;;  %v7619_v27 = vld [vmem:[%s10726_s9 + $0x770] ss:$28 sps:$4 sm:$0xff]   ;;  %v7622_v59 = vld [vmem:[%s10726_s9 + $0x778] ss:$28 sps:$4 sm:$0xff]  }
 0x315   :  { %5657 = vmatpush1.bf16.msra.mxu1 %v7541_v30  ;;  %5829 = vmatpush1.bf16.msra.mxu0 %v7544_v31  ;;  %v7627_v30 = vld [vmem:[%s10726_s9 + $0x7ac] ss:$28 sps:$4 sm:$0xff]   ;;  %v7630_v31 = vld [vmem:[%s10726_s9 + $0x7b4] ss:$28 sps:$4 sm:$0xff]  }
 0x316   :  { %5658 = vmatprep.subr.bf16.mxu1 %v7549_v35  ;;  %5830 = vmatprep.subr.bf16.mxu0 %v7552_v28  ;;  %v7625_v35 = vld [vmem:[%s10726_s9 + $0x7a8] ss:$28 sps:$4 sm:$0xff]   ;;  %v7628_v28 = vld [vmem:[%s10726_s9 + $0x7b0] ss:$28 sps:$4 sm:$0xff]  }
 0x319   :  { %5659 = vmatpush1.bf16.msra.mxu1 %v7547_v36  ;;  %5831 = vmatpush1.bf16.msra.mxu0 %v7550_v63  ;;  %v7633_v36 = vld [vmem:[%s10726_s9 + $0x7e4] ss:$28 sps:$4 sm:$0xff]   ;;  %v7636_v63 = vld [vmem:[%s10726_s9 + $0x7ec] ss:$28 sps:$4 sm:$0xff]  }
 0x31a   :  { %5660 = vmatprep.subr.bf16.mxu1 %v7555_v38  ;;  %5832 = vmatprep.subr.bf16.mxu0 %v7558_v40  ;;  %v7631_v38 = vld [vmem:[%s10726_s9 + $0x7e0] ss:$28 sps:$4 sm:$0xff]   ;;  %v7634_v40 = vld [vmem:[%s10726_s9 + $0x7e8] ss:$28 sps:$4 sm:$0xff]  }
 0x31d   :  { %5661 = vmatpush1.bf16.msra.mxu1 %v7553_v43  ;;  %5833 = vmatpush1.bf16.msra.mxu0 %v7556_v45  ;;  %v7639_v43 = vld [vmem:[%s10726_s9 + $0x81c] ss:$28 sps:$4 sm:$0xff]   ;;  %v7642_v45 = vld [vmem:[%s10726_s9 + $0x824] ss:$28 sps:$4 sm:$0xff]  }
 0x31e   :  { %5662 = vmatprep.subr.bf16.mxu1 %v7561_v46  ;;  %5834 = vmatprep.subr.bf16.mxu0 %v7564_v48  ;;  %v7637_v46 = vld [vmem:[%s10726_s9 + $0x818] ss:$28 sps:$4 sm:$0xff]   ;;  %v7640_v48 = vld [vmem:[%s10726_s9 + $0x820] ss:$28 sps:$4 sm:$0xff]  }
 0x321   :  { %5663 = vmatpush1.bf16.msra.mxu1 %v7559_v49  ;;  %5835 = vmatpush1.bf16.msra.mxu0 %v7562_v50  ;;  %v7645_v49 = vld [vmem:[%s10726_s9 + $0x854] ss:$28 sps:$4 sm:$0xff]   ;;  %v7648_v50 = vld [vmem:[%s10726_s9 + $0x85c] ss:$28 sps:$4 sm:$0xff]  }
 0x322   :  { %5664 = vmatprep.subr.bf16.mxu1 %v7567_v32  ;;  %5836 = vmatprep.subr.bf16.mxu0 %v7570_v33  ;;  %v7643_v32 = vld [vmem:[%s10726_s9 + $0x850] ss:$28 sps:$4 sm:$0xff]   ;;  %v7646_v33 = vld [vmem:[%s10726_s9 + $0x858] ss:$28 sps:$4 sm:$0xff]  }
 0x325   :  { %5665 = vmatpush1.bf16.msra.mxu1 %v7565_v34  ;;  %5837 = vmatpush1.bf16.msra.mxu0 %v7568_v37  ;;  %v7651_v34 = vld [vmem:[%s10726_s9 + $0x88c] ss:$28 sps:$4 sm:$0xff]   ;;  %v7654_v37 = vld [vmem:[%s10726_s9 + $0x894] ss:$28 sps:$4 sm:$0xff]  }
 0x326   :  { %5666 = vmatprep.subr.bf16.mxu1 %v7573_v41  ;;  %5838 = vmatprep.subr.bf16.mxu0 %v7576_v42  ;;  %v7649_v41 = vld [vmem:[%s10726_s9 + $0x888] ss:$28 sps:$4 sm:$0xff]   ;;  %v7652_v42 = vld [vmem:[%s10726_s9 + $0x890] ss:$28 sps:$4 sm:$0xff]  }
 0x329   :  { %5667 = vmatpush1.bf16.msra.mxu1 %v7571_v51  ;;  %5839 = vmatpush1.bf16.msra.mxu0 %v7574_v52  ;;  %v7657_v51 = vld [vmem:[%s10726_s9 + $0x8c4] ss:$28 sps:$4 sm:$0xff]   ;;  %v7660_v52 = vld [vmem:[%s10726_s9 + $0x8cc] ss:$28 sps:$4 sm:$0xff]  }
 0x32a   :  { %5668 = vmatprep.subr.bf16.mxu1 %v7579_v53  ;;  %5840 = vmatprep.subr.bf16.mxu0 %v7582_v54  ;;  %v7655_v53 = vld [vmem:[%s10726_s9 + $0x8c0] ss:$28 sps:$4 sm:$0xff]   ;;  %v7658_v54 = vld [vmem:[%s10726_s9 + $0x8c8] ss:$28 sps:$4 sm:$0xff]  }
 0x32d   :  { %5669 = vmatpush1.bf16.msra.mxu1 %v7577_v55  ;;  %5841 = vmatpush1.bf16.msra.mxu0 %v7580_v56  ;;  %v7663_v55 = vld [vmem:[%s10726_s9 + $0x8fc] ss:$28 sps:$4 sm:$0xff]   ;;  %v7666_v56 = vld [vmem:[%s10726_s9 + $0x904] ss:$28 sps:$4 sm:$0xff]  }
 0x32e   :  { %5670 = vmatprep.subr.bf16.mxu1 %v7585_v57  ;;  %5842 = vmatprep.subr.bf16.mxu0 %v7588_v58  ;;  %v7661_v57 = vld [vmem:[%s10726_s9 + $0x8f8] ss:$28 sps:$4 sm:$0xff]   ;;  %v7664_v58 = vld [vmem:[%s10726_s9 + $0x900] ss:$28 sps:$4 sm:$0xff]  }
 0x331   :  { %5671 = vmatpush1.bf16.msra.mxu1 %v7583_v60  ;;  %5843 = vmatpush1.bf16.msra.mxu0 %v7586_v61  ;;  %v7669_v60 = vld [vmem:[%s10726_s9 + $0x934] ss:$28 sps:$4 sm:$0xff]   ;;  %v7672_v61 = vld [vmem:[%s10726_s9 + $0x93c] ss:$28 sps:$4 sm:$0xff]  }
 0x332   :  { %5672 = vmatprep.subr.bf16.mxu1 %v7591_v62  ;;  %5844 = vmatprep.subr.bf16.mxu0 %v7594_v0  ;;  %v7667_v62 = vld [vmem:[%s10726_s9 + $0x930] ss:$28 sps:$4 sm:$0xff]   ;;  %v7670_v0 = vld [vmem:[%s10726_s9 + $0x938] ss:$28 sps:$4 sm:$0xff]  }
 0x335   :  { %5673 = vmatpush1.bf16.msra.mxu1 %v7589_v1  ;;  %5845 = vmatpush1.bf16.msra.mxu0 %v7592_v2  ;;  %v7675_v1 = vld [vmem:[%s10726_s9 + $0x96c] ss:$28 sps:$4 sm:$0xff]   ;;  %v7678_v2 = vld [vmem:[%s10726_s9 + $0x974] ss:$28 sps:$4 sm:$0xff]  }
 0x336   :  { %5674 = vmatprep.subr.bf16.mxu1 %v7597_v10  ;;  %5846 = vmatprep.subr.bf16.mxu0 %v7600_v11  ;;  %v7673_v10 = vld [vmem:[%s10726_s9 + $0x968] ss:$28 sps:$4 sm:$0xff]   ;;  %v7676_v11 = vld [vmem:[%s10726_s9 + $0x970] ss:$28 sps:$4 sm:$0xff]  }
 0x339   :  { %5675 = vmatpush1.bf16.msra.mxu1 %v7595_v12  ;;  %5847 = vmatpush1.bf16.msra.mxu0 %v7598_v13  ;;  %v7681_v12 = vld [vmem:[%s10726_s9 + $0x9a4] ss:$28 sps:$4 sm:$0xff]   ;;  %v7684_v13 = vld [vmem:[%s10726_s9 + $0x9ac] ss:$28 sps:$4 sm:$0xff]  }
 0x33a   :  { %5676 = vmatprep.subr.bf16.mxu1 %v7603_v14  ;;  %5848 = vmatprep.subr.bf16.mxu0 %v7606_v15  ;;  %v1064_v14 = vsub.s32 4, %v8387_v39  ;;  %v7679_v15 = vld [vmem:[%s10726_s9 + $0x9a0] ss:$28 sps:$4 sm:$0xff]  }
 0x33d   :  { %5677 = vmatpush1.bf16.msra.mxu1 %v7601_v16  ;;  %5849 = vmatpush1.bf16.msra.mxu0 %v7604_v17  ;;  %v7682_v16 = vld [vmem:[%s10726_s9 + $0x9a8] ss:$28 sps:$4 sm:$0xff]   ;;  %v1072_v17 = vsub.s32 6, %v8387_v39 }
 0x33e   :  { %5689 = vmatprep.subr.bf16.mxu1 %v7609_v29  ;;  %5861 = vmatprep.subr.bf16.mxu0 %v7612_v18  ;;  %v1068_v29 = vsub.s32 5, %v8387_v39  ;;  %v7687_v18 = vld [vmem:[%s10726_s9 + $0x9dc] ss:$28 sps:$4 sm:$0xff]  }
 0x340   :  { %5679 = vmatmul.mubr.bf16.vlgmr.msra.gmra.mrb[12].mxu1 %v9477_v4  ;;  %5851 = vmatmul.mubr.bf16.vlgmr.msra.gmra.mrb[20].mxu0 %v9477_v4 }
 0x341   :  { %5690 = vmatpush1.bf16.msra.mxu1 %v7607_v19  ;;  %5862 = vmatpush1.bf16.msra.mxu0 %v7610_v20  ;;  %v7690_v19 = vld [vmem:[%s10726_s9 + $0x9e4] ss:$28 sps:$4 sm:$0xff]   ;;  %v1076_v20 = vsub.s32 7, %v8387_v39 }
 0x342   :  { %5691 = vmatprep.subr.bf16.mxu1 %v7615_v21  ;;  %5863 = vmatprep.subr.bf16.mxu0 %v7618_v22  ;;  %v1065_v21 = vrot.slane %v9465_v26, %v1064_v14  ;;  %v1073_v22 = vrot.slane %v9465_v26, %v1072_v17 }
 0x345   :  { %5692 = vmatpush1.bf16.msra.mxu1 %v7613_v23  ;;  %5864 = vmatpush1.bf16.msra.mxu0 %v7616_v24  ;;  %v7685_v23 = vld [vmem:[%s10726_s9 + $0x9d8] ss:$28 sps:$4 sm:$0xff]   ;;  %v7688_v24 = vld [vmem:[%s10726_s9 + $0x9e0] ss:$28 sps:$4 sm:$0xff]  }
 0x346   :  { %5693 = vmatprep.subr.bf16.mxu1 %v7621_v25  ;;  %5865 = vmatprep.subr.bf16.mxu0 %v7624_v5  ;;  %v1069_v25 = vrot.slane %v9465_v26, %v1068_v29  ;;  %v1077_v5 = vrot.slane %v9465_v26, %v1076_v20  ;;  %v7703_v20 = vld [vmem:[%s10726_s9 + $0xa80] ss:$28 sps:$4 sm:$0xff]  }
 0x349   :  { %5694 = vmatpush1.bf16.msra.mxu1 %v7619_v27  ;;  %5866 = vmatpush1.bf16.msra.mxu0 %v7622_v59  ;;  %v7693_v27 = vld [vmem:[%s10726_s9 + $0xa14] ss:$28 sps:$4 sm:$0xff]   ;;  %v7696_v59 = vld [vmem:[%s10726_s9 + $0xa1c] ss:$28 sps:$4 sm:$0xff]  }
 0x34a   :  { %5695 = vmatprep.subr.bf16.mxu1 %v7627_v30  ;;  %5867 = vmatprep.subr.bf16.mxu0 %v7630_v31 }
 0x34d   :  { %5696 = vmatpush1.bf16.msra.mxu1 %v7625_v35  ;;  %5868 = vmatpush1.bf16.msra.mxu0 %v7628_v28 }
 0x34e   :  { %5697 = vmatprep.subr.bf16.mxu1 %v7633_v36  ;;  %5869 = vmatprep.subr.bf16.mxu0 %v7636_v63  ;;  %v7691_v36 = vld [vmem:[%s10726_s9 + $0xa10] ss:$28 sps:$4 sm:$0xff]  }
 0x351   :  { %5698 = vmatpush1.bf16.msra.mxu1 %v7631_v38  ;;  %5870 = vmatpush1.bf16.msra.mxu0 %v7634_v40 }
 0x352   :  { %5699 = vmatprep.subr.bf16.mxu1 %v7639_v43  ;;  %5871 = vmatprep.subr.bf16.mxu0 %v7642_v45  ;;  %v7694_v43 = vld [vmem:[%s10726_s9 + $0xa18] ss:$28 sps:$4 sm:$0xff]   ;;  %v7699_v45 = vld [vmem:[%s10726_s9 + $0xa4c] ss:$28 sps:$4 sm:$0xff]  }
 0x355   :  { %5700 = vmatpush1.bf16.msra.mxu1 %v7637_v46  ;;  %5872 = vmatpush1.bf16.msra.mxu0 %v7640_v48 }
 0x356   :  { %5701 = vmatprep.subr.bf16.mxu1 %v7645_v49  ;;  %5873 = vmatprep.subr.bf16.mxu0 %v7648_v50 }
 0x359   :  { %5702 = vmatpush1.bf16.msra.mxu1 %v7643_v32  ;;  %5874 = vmatpush1.bf16.msra.mxu0 %v7646_v33  ;;  %v7702_v33 = vld [vmem:[%s10726_s9 + $0xa54] ss:$28 sps:$4 sm:$0xff]  }
 0x35a   :  { %5703 = vmatprep.subr.bf16.mxu1 %v7651_v34  ;;  %5875 = vmatprep.subr.bf16.mxu0 %v7654_v37 }
 0x35d   :  { %5704 = vmatpush1.bf16.msra.mxu1 %v7649_v41  ;;  %5876 = vmatpush1.bf16.msra.mxu0 %v7652_v42 }
 0x35e   :  { %5705 = vmatprep.subr.bf16.mxu1 %v7657_v51  ;;  %5877 = vmatprep.subr.bf16.mxu0 %v7660_v52 }
 0x361   :  { %5706 = vmatpush1.bf16.msra.mxu1 %v7655_v53  ;;  %5878 = vmatpush1.bf16.msra.mxu0 %v7658_v54 }
 0x362   :  { %5707 = vmatprep.subr.bf16.mxu1 %v7663_v55  ;;  %5879 = vmatprep.subr.bf16.mxu0 %v7666_v56  ;;  %v7697_v55 = vld [vmem:[%s10726_s9 + $0xa48] ss:$28 sps:$4 sm:$0xff]  }
 0x365   :  { %5708 = vmatpush1.bf16.msra.mxu1 %v7661_v57  ;;  %5880 = vmatpush1.bf16.msra.mxu0 %v7664_v58  ;;  %v7700_v58 = vld [vmem:[%s10726_s9 + $0xa50] ss:$28 sps:$4 sm:$0xff]  }
 0x366   :  { %5709 = vmatprep.subr.bf16.mxu1 %v7669_v60  ;;  %5881 = vmatprep.subr.bf16.mxu0 %v7672_v61 }
 0x369   :  { %5710 = vmatpush1.bf16.msra.mxu1 %v7667_v62  ;;  %5882 = vmatpush1.bf16.msra.mxu0 %v7670_v0  ;;  %v7705_v0 = vld [vmem:[%s10726_s9 + $0xa84] ss:$28 sps:$4 sm:$0xff]  }
 0x36a   :  { %5711 = vmatprep.subr.bf16.mxu1 %v7675_v1  ;;  %5883 = vmatprep.subr.bf16.mxu0 %v7678_v2  ;;  %v7708_v1 = vld [vmem:[%s10726_s9 + $0xa8c] ss:$28 sps:$4 sm:$0xff]  }
 0x36d   :  { %5712 = vmatpush1.bf16.msra.mxu1 %v7673_v10  ;;  %5884 = vmatpush1.bf16.msra.mxu0 %v7676_v11 }
 0x36e   :  { %5713 = vmatprep.subr.bf16.mxu1 %v7681_v12  ;;  %5885 = vmatprep.subr.bf16.mxu0 %v7684_v13 }
 0x371   :  { %5714 = vmatpush1.bf16.msra.mxu1 %v7679_v15  ;;  %5886 = vmatpush1.bf16.msra.mxu0 %v7682_v16 }
 0x372   :  { %5715 = vmatprep.subr.bf16.mxu1 %v7687_v18  ;;  %5887 = vmatprep.subr.bf16.mxu0 %v7690_v19 }
 0x373   :  { %v2615_v30 = vpop.f32.mrb[8].mxu1 }
 0x374   :  { %v7218_v31 = vadd.f32 %v2615_v30, %v1065_v21  ;;  %v2701_v35 = vpop.f32.mrb[16].mxu0  ;;  %v2617_v28 = vpop.f32.mrb[9].mxu1  ;;  %v7715_v30 = vld [vmem:[%s10726_s9 + $0xaf0] ss:$28 sps:$4 sm:$0xff]  }
 0x375   :  { %v7222_v63 = vadd.f32 %v2701_v35, %v1073_v22  ;;  %v7219_v38 = vadd.f32 %v2617_v28, %v1069_v25  ;;  %v2703_v40 = vpop.f32.mrb[17].mxu0  ;;  %5716 = vmatpush1.bf16.msra.mxu1 %v7685_v23  ;;  %5888 = vmatpush1.bf16.msra.mxu0 %v7688_v24  ;;  %v2619_v26 = vpop.f32.mrb[10].mxu1  ;;  %v7711_v23 = vld [vmem:[%s10726_s9 + $0xabc] ss:$28 sps:$4 sm:$0xff]   ;;  %v7714_v24 = vld [vmem:[%s10726_s9 + $0xac4] ss:$28 sps:$4 sm:$0xff]  }
 0x376   :  { %v2714_v46 = vmul.f32 0.2, %v7218_v31  ;;  %v7223_v48 = vadd.f32 %v2703_v40, %v1077_v5  ;;  %v7220_v49 = vadd.f32 %v2619_v26, %v1065_v21  ;;  %v2705_v50 = vpop.f32.mrb[18].mxu0  ;;  %v2621_v32 = vpop.f32.mrb[11].mxu1  ;;  %5717 = vmatprep.subr.bf16.mxu1 %v7693_v27  ;;  %5889 = vmatprep.subr.bf16.mxu0 %v7696_v59  ;;  %v7706_v21 = vld [vmem:[%s10726_s9 + $0xa88] ss:$28 sps:$4 sm:$0xff]  }
 0x377   :  { %v2716_v34 = vmul.f32 0.2, %v7222_v63  ;;  %v2715_v37 = vmul.f32 0.2, %v7219_v38  ;;  %v7224_v41 = vadd.f32 %v2705_v50, %v1073_v22  ;;  %v7221_v42 = vadd.f32 %v2621_v32, %v1069_v25  ;;  %v2707_v51 = vpop.f32.mrb[19].mxu0 }
 0x378   :  { %v2717_v52 = vmul.f32 0.2, %v7223_v48  ;;  %v2722_v53 = vmul.f32 0.2, %v7220_v49  ;;  %v7225_v54 = vadd.f32 %v2707_v51, %v1077_v5  ;;  %v2730_v60 = vmax.f32 %v7218_v31, %v2714_v46  ;;  %v7709_v25 = vld [vmem:[%s10726_s9 + $0xab8] ss:$28 sps:$4 sm:$0xff]  }
 0x379   :  { %v2724_v56 = vmul.f32 0.2, %v7224_v41  ;;  %v2723_v57 = vmul.f32 0.2, %v7221_v42  ;;  %5718 = vmatpush1.bf16.msra.mxu1 %v7691_v36  ;;  %5890 = vmatpush1.bf16.msra.mxu0 %v7694_v43  ;;  %v2732_v2 = vmax.f32 %v7222_v63, %v2716_v34  ;;  %v2731_v10 = vmax.f32 %v7219_v38, %v2715_v37  ;;  %v7712_v5 = vld [vmem:[%s10726_s9 + $0xac0] ss:$28 sps:$4 sm:$0xff]  }
 0x37a   :  { %v2738_v61 = vmax.f32 %v7220_v49, %v2722_v53  ;;  %v2725_v62 = vmul.f32 0.2, %v7225_v54  ;;  %5719 = vmatprep.subr.bf16.mxu1 %v7699_v45  ;;  %5891 = vmatprep.subr.bf16.mxu0 %v7702_v33  ;;  %v2733_v13 = vmax.f32 %v7223_v48, %v2717_v52  ;;  %v7717_v27 = vld [vmem:[%s10726_s9 + $0xaf4] ss:$28 sps:$4 sm:$0xff]   ;;  %v7720_v59 = vld [vmem:[%s10726_s9 + $0xafc] ss:$28 sps:$4 sm:$0xff]  }
 0x37b   :  { %v2740_v11 = vmax.f32 %v7224_v41, %v2724_v56  ;;  %v2739_v12 = vmax.f32 %v7221_v42, %v2723_v57  ;;  %v7718_v31 = vld [vmem:[%s10726_s9 + $0xaf8] ss:$28 sps:$4 sm:$0xff]   ;;  %v7723_v35 = vld [vmem:[%s10726_s9 + $0xb2c] ss:$28 sps:$4 sm:$0xff]   ;;  %v7729_v38 = vld [vmem:[%s10726_s9 + $0xb64] ss:$28 sps:$4 sm:$0xff]  }
 0x37c   :  { %v9889_v15 = vpack.c.bf16 %v2738_v61, %v2730_v60  ;;  %v2741_v16 = vmax.f32 %v7225_v54, %v2725_v62  ;;  %v7726_v28 = vld [vmem:[%s10726_s9 + $0xb34] ss:$28 sps:$4 sm:$0xff]   ;;  %v7721_v36 = vld [vmem:[%s10726_s9 + $0xb28] ss:$28 sps:$4 sm:$0xff]   ;;  %v7727_v26 = vld [vmem:[%s10726_s9 + $0xb60] ss:$28 sps:$4 sm:$0xff]  }
 0x37d   :  { %v9891_v18 = vpack.c.bf16 %v2740_v11, %v2732_v2  ;;  %v9893_v19 = vpack.c.bf16 %v2739_v12, %v2731_v10  ;;  %5720 = vmatpush1.bf16.msra.mxu1 %v7697_v55  ;;  %5892 = vmatpush1.bf16.msra.mxu0 %v7700_v58  ;;  %v7724_v63 = vld [vmem:[%s10726_s9 + $0xb30] ss:$28 sps:$4 sm:$0xff]   ;;  %v7730_v43 = vld [vmem:[%s10726_s9 + $0xb68] ss:$28 sps:$4 sm:$0xff]   ;;  %v7735_v45 = vld [vmem:[%s10726_s9 + $0xb9c] ss:$28 sps:$4 sm:$0xff]  }
 0x37e   :  { %v9901_v22 = vpack.c.bf16 %v2741_v16, %v2733_v13  ;;  %5732 = vmatprep.subr.bf16.mxu1 %v7705_v0  ;;  %5904 = vmatprep.subr.bf16.mxu0 %v7708_v1  ;;  %v7732_v40 = vld [vmem:[%s10726_s9 + $0xb6c] ss:$28 sps:$4 sm:$0xff]   ;;  %v7738_v46 = vld [vmem:[%s10726_s9 + $0xba4] ss:$28 sps:$4 sm:$0xff]   ;;  %v7733_v48 = vld [vmem:[%s10726_s9 + $0xb98] ss:$28 sps:$4 sm:$0xff]  }
 0x37f   :  { %5721 = vmatprep.mubr.bf16.mxu1 %v9893_v19  ;;  %5893 = vmatprep.mubr.bf16.mxu0 %v9893_v19  ;;  %v7736_v49 = vld [vmem:[%s10726_s9 + $0xba0] ss:$28 sps:$4 sm:$0xff]   ;;  %v7741_v50 = vld [vmem:[%s10726_s9 + $0xbd4] ss:$28 sps:$4 sm:$0xff]   ;;  %v7747_v37 = vld [vmem:[%s10726_s9 + $0xc0c] ss:$28 sps:$4 sm:$0xff]  }
 0x380   :  { %5722 = vmatmul.mubr.bf16.vlgmr.msra.gmra.mrb[12].mxu1 %v9889_v15  ;;  %5894 = vmatmul.mubr.bf16.vlgmr.msra.gmra.mrb[20].mxu0 %v9889_v15  ;;  %v7744_v32 = vld [vmem:[%s10726_s9 + $0xbdc] ss:$28 sps:$4 sm:$0xff]   ;;  %v7739_v33 = vld [vmem:[%s10726_s9 + $0xbd0] ss:$28 sps:$4 sm:$0xff]   ;;  %v7745_v42 = vld [vmem:[%s10726_s9 + $0xc08] ss:$28 sps:$4 sm:$0xff]  }
 0x381   :  { %5733 = vmatpush1.bf16.msra.mxu1 %v7703_v20  ;;  %5905 = vmatpush1.bf16.msra.mxu0 %v7706_v21  ;;  %v7742_v34 = vld [vmem:[%s10726_s9 + $0xbd8] ss:$28 sps:$4 sm:$0xff]   ;;  %v7748_v51 = vld [vmem:[%s10726_s9 + $0xc10] ss:$28 sps:$4 sm:$0xff]   ;;  %v7753_v52 = vld [vmem:[%s10726_s9 + $0xc44] ss:$28 sps:$4 sm:$0xff]  }
 0x382   :  { %5764 = vmatprep.mubr.bf16.mxu1 %v9901_v22  ;;  %5936 = vmatprep.mubr.bf16.mxu0 %v9901_v22  ;;  %v7750_v41 = vld [vmem:[%s10726_s9 + $0xc14] ss:$28 sps:$4 sm:$0xff]   ;;  %v7756_v53 = vld [vmem:[%s10726_s9 + $0xc4c] ss:$28 sps:$4 sm:$0xff]   ;;  %v7751_v54 = vld [vmem:[%s10726_s9 + $0xc40] ss:$28 sps:$4 sm:$0xff]  }
 0x383   :  { %5734 = vmatprep.subr.bf16.mxu1 %v7711_v23  ;;  %5906 = vmatprep.subr.bf16.mxu0 %v7714_v24  ;;  %v7754_v55 = vld [vmem:[%s10726_s9 + $0xc48] ss:$28 sps:$4 sm:$0xff]   ;;  %v7759_v56 = vld [vmem:[%s10726_s9 + $0xc7c] ss:$28 sps:$4 sm:$0xff]   ;;  %v7765_v61 = vld [vmem:[%s10726_s9 + $0xcb4] ss:$28 sps:$4 sm:$0xff]  }
 0x384   :  { %v7762_v57 = vld [vmem:[%s10726_s9 + $0xc84] ss:$28 sps:$4 sm:$0xff]   ;;  %v7757_v58 = vld [vmem:[%s10726_s9 + $0xc78] ss:$28 sps:$4 sm:$0xff]   ;;  %v7763_v0 = vld [vmem:[%s10726_s9 + $0xcb0] ss:$28 sps:$4 sm:$0xff]  }
 0x385   :  { %5735 = vmatpush1.bf16.msra.mxu1 %v7709_v25  ;;  %5907 = vmatpush1.bf16.msra.mxu0 %v7712_v5  ;;  %v7760_v60 = vld [vmem:[%s10726_s9 + $0xc80] ss:$28 sps:$4 sm:$0xff]   ;;  %v7766_v1 = vld [vmem:[%s10726_s9 + $0xcb8] ss:$28 sps:$4 sm:$0xff]   ;;  %v7771_v2 = vld [vmem:[%s10726_s9 + $0xcec] ss:$28 sps:$4 sm:$0xff]  }
 0x386   :  { %5736 = vmatprep.subr.bf16.mxu1 %v7717_v27  ;;  %5908 = vmatprep.subr.bf16.mxu0 %v7720_v59  ;;  %v7768_v62 = vld [vmem:[%s10726_s9 + $0xcbc] ss:$28 sps:$4 sm:$0xff]   ;;  %v7774_v10 = vld [vmem:[%s10726_s9 + $0xcf4] ss:$28 sps:$4 sm:$0xff]   ;;  %v7769_v11 = vld [vmem:[%s10726_s9 + $0xce8] ss:$28 sps:$4 sm:$0xff]  }
 0x387   :  { %v7772_v12 = vld [vmem:[%s10726_s9 + $0xcf0] ss:$28 sps:$4 sm:$0xff]   ;;  %v7777_v13 = vld [vmem:[%s10726_s9 + $0xd24] ss:$28 sps:$4 sm:$0xff]   ;;  %v7783_v23 = vld [vmem:[%s10726_s9 + $0xd5c] ss:$28 sps:$4 sm:$0xff]  }
 0x388   :  { %v7780_v16 = vld [vmem:[%s10726_s9 + $0xd2c] ss:$28 sps:$4 sm:$0xff]   ;;  %v7775_v20 = vld [vmem:[%s10726_s9 + $0xd20] ss:$28 sps:$4 sm:$0xff]   ;;  %v7781_v25 = vld [vmem:[%s10726_s9 + $0xd58] ss:$28 sps:$4 sm:$0xff]  }
 0x389   :  { %5737 = vmatpush1.bf16.msra.mxu1 %v7715_v30  ;;  %5909 = vmatpush1.bf16.msra.mxu0 %v7718_v31  ;;  %v7778_v21 = vld [vmem:[%s10726_s9 + $0xd28] ss:$28 sps:$4 sm:$0xff]   ;;  %v7784_v5 = vld [vmem:[%s10726_s9 + $0xd60] ss:$28 sps:$4 sm:$0xff]   ;;  %v7789_v27 = vld [vmem:[%s10726_s9 + $0xd94] ss:$28 sps:$4 sm:$0xff]  }
 0x38a   :  { %5738 = vmatprep.subr.bf16.mxu1 %v7723_v35  ;;  %5910 = vmatprep.subr.bf16.mxu0 %v7726_v28  ;;  %v7786_v24 = vld [vmem:[%s10726_s9 + $0xd64] ss:$28 sps:$4 sm:$0xff]   ;;  %v7792_v59 = vld [vmem:[%s10726_s9 + $0xd9c] ss:$28 sps:$4 sm:$0xff]   ;;  %v7787_v30 = vld [vmem:[%s10726_s9 + $0xd90] ss:$28 sps:$4 sm:$0xff]  }
 0x38b   :  { %v7790_v31 = vld [vmem:[%s10726_s9 + $0xd98] ss:$28 sps:$4 sm:$0xff]   ;;  %v7795_v35 = vld [vmem:[%s10726_s9 + $0xdcc] ss:$28 sps:$4 sm:$0xff]  }
 0x38c   :  { %v7798_v28 = vld [vmem:[%s10726_s9 + $0xdd4] ss:$28 sps:$4 sm:$0xff]  }
 0x38d   :  { %5739 = vmatpush1.bf16.msra.mxu1 %v7721_v36  ;;  %5911 = vmatpush1.bf16.msra.mxu0 %v7724_v63  ;;  %v7793_v36 = vld [vmem:[%s10726_s9 + $0xdc8] ss:$28 sps:$4 sm:$0xff]   ;;  %v7796_v63 = vld [vmem:[%s10726_s9 + $0xdd0] ss:$28 sps:$4 sm:$0xff]  }
 0x38e   :  { %5740 = vmatprep.subr.bf16.mxu1 %v7729_v38  ;;  %5912 = vmatprep.subr.bf16.mxu0 %v7732_v40  ;;  %v7801_v38 = vld [vmem:[%s10726_s9 + $0x14] ss:$28 sps:$4 sm:$0xff]  }
 0x38f   :  { %v7802_v40 = vld [vmem:[%s10726_s9 + $0x1d8] ss:$28 sps:$4 sm:$0xff]  }
 0x391   :  { %5741 = vmatpush1.bf16.msra.mxu1 %v7727_v26  ;;  %5913 = vmatpush1.bf16.msra.mxu0 %v7730_v43  ;;  %v7799_v26 = vld [vmem:[%s10726_s9 + $0x10] ss:$28 sps:$4 sm:$0xff]   ;;  %v7803_v43 = vld [vmem:[%s10726_s9 + $0x18] ss:$28 sps:$4 sm:$0xff]  }
 0x392   :  { %5742 = vmatprep.subr.bf16.mxu1 %v7735_v45  ;;  %5914 = vmatprep.subr.bf16.mxu0 %v7738_v46  ;;  %v7806_v45 = vld [vmem:[%s10726_s9 + $0x4c] ss:$28 sps:$4 sm:$0xff]  }
 0x393   :  { %v7807_v46 = vld [vmem:[%s10726_s9 + $0x210] ss:$28 sps:$4 sm:$0xff]  }
 0x395   :  { %5743 = vmatpush1.bf16.msra.mxu1 %v7733_v48  ;;  %5915 = vmatpush1.bf16.msra.mxu0 %v7736_v49  ;;  %v7804_v48 = vld [vmem:[%s10726_s9 + $0x48] ss:$28 sps:$4 sm:$0xff]   ;;  %v7808_v49 = vld [vmem:[%s10726_s9 + $0x50] ss:$28 sps:$4 sm:$0xff]  }
 0x396   :  { %5744 = vmatprep.subr.bf16.mxu1 %v7741_v50  ;;  %5916 = vmatprep.subr.bf16.mxu0 %v7744_v32  ;;  %v7811_v50 = vld [vmem:[%s10726_s9 + $0x84] ss:$28 sps:$4 sm:$0xff]  }
 0x397   :  { %v7812_v32 = vld [vmem:[%s10726_s9 + $0x248] ss:$28 sps:$4 sm:$0xff]  }
 0x399   :  { %5745 = vmatpush1.bf16.msra.mxu1 %v7739_v33  ;;  %5917 = vmatpush1.bf16.msra.mxu0 %v7742_v34  ;;  %v7809_v33 = vld [vmem:[%s10726_s9 + $0x80] ss:$28 sps:$4 sm:$0xff]  }
 0x39a   :  { %5746 = vmatprep.subr.bf16.mxu1 %v7747_v37  ;;  %5918 = vmatprep.subr.bf16.mxu0 %v7750_v41  ;;  %v7816_v34 = vld [vmem:[%s10726_s9 + $0xbc] ss:$28 sps:$4 sm:$0xff]  }
 0x39b   :  { %v7817_v37 = vld [vmem:[%s10726_s9 + $0x280] ss:$28 sps:$4 sm:$0xff]   ;;  %v7814_v41 = vld [vmem:[%s10726_s9 + $0xb8] ss:$28 sps:$4 sm:$0xff]  }
 0x39d   :  { %5747 = vmatpush1.bf16.msra.mxu1 %v7745_v42  ;;  %5919 = vmatpush1.bf16.msra.mxu0 %v7748_v51  ;;  %v7818_v42 = vld [vmem:[%s10726_s9 + $0xc0] ss:$28 sps:$4 sm:$0xff]   ;;  %v7821_v51 = vld [vmem:[%s10726_s9 + $0xf4] ss:$28 sps:$4 sm:$0xff]  }
 0x39e   :  { %5748 = vmatprep.subr.bf16.mxu1 %v7753_v52  ;;  %5920 = vmatprep.subr.bf16.mxu0 %v7756_v53  ;;  %v7822_v52 = vld [vmem:[%s10726_s9 + $0x2b8] ss:$28 sps:$4 sm:$0xff]   ;;  %v7819_v53 = vld [vmem:[%s10726_s9 + $0xf0] ss:$28 sps:$4 sm:$0xff]  }
 0x3a1   :  { %5749 = vmatpush1.bf16.msra.mxu1 %v7751_v54  ;;  %5921 = vmatpush1.bf16.msra.mxu0 %v7754_v55  ;;  %v7823_v54 = vld [vmem:[%s10726_s9 + $0xf8] ss:$28 sps:$4 sm:$0xff]   ;;  %v7826_v55 = vld [vmem:[%s10726_s9 + $0x12c] ss:$28 sps:$4 sm:$0xff]  }
 0x3a2   :  { %5750 = vmatprep.subr.bf16.mxu1 %v7759_v56  ;;  %5922 = vmatprep.subr.bf16.mxu0 %v7762_v57  ;;  %v7827_v56 = vld [vmem:[%s10726_s9 + $0x2f0] ss:$28 sps:$4 sm:$0xff]   ;;  %v7824_v57 = vld [vmem:[%s10726_s9 + $0x128] ss:$28 sps:$4 sm:$0xff]  }
 0x3a5   :  { %5751 = vmatpush1.bf16.msra.mxu1 %v7757_v58  ;;  %5923 = vmatpush1.bf16.msra.mxu0 %v7760_v60  ;;  %v7828_v58 = vld [vmem:[%s10726_s9 + $0x130] ss:$28 sps:$4 sm:$0xff]   ;;  %v7831_v60 = vld [vmem:[%s10726_s9 + $0x164] ss:$28 sps:$4 sm:$0xff]  }
 0x3a6   :  { %5752 = vmatprep.subr.bf16.mxu1 %v7765_v61  ;;  %5924 = vmatprep.subr.bf16.mxu0 %v7768_v62  ;;  %v7832_v61 = vld [vmem:[%s10726_s9 + $0x328] ss:$28 sps:$4 sm:$0xff]   ;;  %v7829_v62 = vld [vmem:[%s10726_s9 + $0x160] ss:$28 sps:$4 sm:$0xff]  }
 0x3a9   :  { %5753 = vmatpush1.bf16.msra.mxu1 %v7763_v0  ;;  %5925 = vmatpush1.bf16.msra.mxu0 %v7766_v1  ;;  %v7833_v0 = vld [vmem:[%s10726_s9 + $0x168] ss:$28 sps:$4 sm:$0xff]   ;;  %v7836_v1 = vld [vmem:[%s10726_s9 + $0x19c] ss:$28 sps:$4 sm:$0xff]  }
 0x3aa   :  { %5754 = vmatprep.subr.bf16.mxu1 %v7771_v2  ;;  %5926 = vmatprep.subr.bf16.mxu0 %v7774_v10  ;;  %v7837_v2 = vld [vmem:[%s10726_s9 + $0x360] ss:$28 sps:$4 sm:$0xff]   ;;  %v7834_v10 = vld [vmem:[%s10726_s9 + $0x198] ss:$28 sps:$4 sm:$0xff]  }
 0x3ad   :  { %5755 = vmatpush1.bf16.msra.mxu1 %v7769_v11  ;;  %5927 = vmatpush1.bf16.msra.mxu0 %v7772_v12  ;;  %v7838_v11 = vld [vmem:[%s10726_s9 + $0x1a0] ss:$28 sps:$4 sm:$0xff]   ;;  %v7841_v12 = vld [vmem:[%s10726_s9 + $0x1d4] ss:$28 sps:$4 sm:$0xff]  }
 0x3ae   :  { %5756 = vmatprep.subr.bf16.mxu1 %v7777_v13  ;;  %5928 = vmatprep.subr.bf16.mxu0 %v7780_v16  ;;  %v7842_v13 = vld [vmem:[%s10726_s9 + $0x558] ss:$28 sps:$4 sm:$0xff]   ;;  %v7839_v16 = vld [vmem:[%s10726_s9 + $0x1d0] ss:$28 sps:$4 sm:$0xff]  }
 0x3b1   :  { %5757 = vmatpush1.bf16.msra.mxu1 %v7775_v20  ;;  %5929 = vmatpush1.bf16.msra.mxu0 %v7778_v21  ;;  %v7843_v20 = vld [vmem:[%s10726_s9 + $0x398] ss:$28 sps:$4 sm:$0xff]   ;;  %v7846_v21 = vld [vmem:[%s10726_s9 + $0x20c] ss:$28 sps:$4 sm:$0xff]  }
 0x3b2   :  { %5758 = vmatprep.subr.bf16.mxu1 %v7783_v23  ;;  %5930 = vmatprep.subr.bf16.mxu0 %v7786_v24  ;;  %v7847_v23 = vld [vmem:[%s10726_s9 + $0x590] ss:$28 sps:$4 sm:$0xff]   ;;  %v7844_v24 = vld [vmem:[%s10726_s9 + $0x208] ss:$28 sps:$4 sm:$0xff]  }
 0x3b5   :  { %5759 = vmatpush1.bf16.msra.mxu1 %v7781_v25  ;;  %5931 = vmatpush1.bf16.msra.mxu0 %v7784_v5  ;;  %v7848_v25 = vld [vmem:[%s10726_s9 + $0x3d0] ss:$28 sps:$4 sm:$0xff]   ;;  %v7851_v5 = vld [vmem:[%s10726_s9 + $0x244] ss:$28 sps:$4 sm:$0xff]  }
 0x3b6   :  { %5760 = vmatprep.subr.bf16.mxu1 %v7789_v27  ;;  %5932 = vmatprep.subr.bf16.mxu0 %v7792_v59  ;;  %v7852_v27 = vld [vmem:[%s10726_s9 + $0x5c8] ss:$28 sps:$4 sm:$0xff]   ;;  %v7849_v59 = vld [vmem:[%s10726_s9 + $0x240] ss:$28 sps:$4 sm:$0xff]  }
 0x3b9   :  { %5761 = vmatpush1.bf16.msra.mxu1 %v7787_v30  ;;  %5933 = vmatpush1.bf16.msra.mxu0 %v7790_v31  ;;  %v7853_v30 = vld [vmem:[%s10726_s9 + $0x408] ss:$28 sps:$4 sm:$0xff]   ;;  %v7856_v31 = vld [vmem:[%s10726_s9 + $0x27c] ss:$28 sps:$4 sm:$0xff]  }
 0x3ba   :  { %5762 = vmatprep.subr.bf16.mxu1 %v7795_v35  ;;  %5934 = vmatprep.subr.bf16.mxu0 %v7798_v28  ;;  %v7857_v35 = vld [vmem:[%s10726_s9 + $0x600] ss:$28 sps:$4 sm:$0xff]   ;;  %v7854_v28 = vld [vmem:[%s10726_s9 + $0x278] ss:$28 sps:$4 sm:$0xff]  }
 0x3bd   :  { %5763 = vmatpush1.bf16.msra.mxu1 %v7793_v36  ;;  %5935 = vmatpush1.bf16.msra.mxu0 %v7796_v63  ;;  %v7858_v36 = vld [vmem:[%s10726_s9 + $0x440] ss:$28 sps:$4 sm:$0xff]   ;;  %v7861_v63 = vld [vmem:[%s10726_s9 + $0x2b4] ss:$28 sps:$4 sm:$0xff]  }
 0x3be   :  { %5947 = vmatprep.subr.bf16.mxu1 %v7801_v38  ;;  %7118 = vmatprep.subr.bf16.mxu0 %v7802_v40  ;;  %v7862_v38 = vld [vmem:[%s10726_s9 + $0x638] ss:$28 sps:$4 sm:$0xff]   ;;  %v7859_v40 = vld [vmem:[%s10726_s9 + $0x2b0] ss:$28 sps:$4 sm:$0xff]  }
 0x3c0   :  { %5765 = vmatmul.mubr.bf16.vlgmr.msra.gmra.mrb[12].mxu1 %v9891_v18  ;;  %5937 = vmatmul.mubr.bf16.vlgmr.msra.gmra.mrb[20].mxu0 %v9891_v18 }
 0x3c1   :  { %5948 = vmatpush1.bf16.msra.mxu1 %v7799_v26  ;;  %5979 = vmatprep.mubr.bf16.mxu1 %v9479_v7  ;;  %v7863_v26 = vld [vmem:[%s10726_s9 + $0x478] ss:$28 sps:$4 sm:$0xff]  }
 0x3c2   :  { %7119 = vmatpush3.bf16.msra.mxu0 %v7803_v43  ;;  %6151 = vmatprep.mubr.bf16.mxu0 %v9479_v7  ;;  %v7813_v7 = vld [vmem:[%s10726_s9 + $0x88] ss:$28 sps:$4 sm:$0xff]  }
 0x3c3   :  { %5949 = vmatprep.subr.bf16.mxu1 %v7806_v45  ;;  %7120 = vmatprep.subr.bf16.mxu0 %v7807_v46  ;;  %v7866_v43 = vld [vmem:[%s10726_s9 + $0x2ec] ss:$28 sps:$4 sm:$0xff]  }
 0x3c4   :  { %v7867_v45 = vld [vmem:[%s10726_s9 + $0x670] ss:$28 sps:$4 sm:$0xff]   ;;  %v7864_v46 = vld [vmem:[%s10726_s9 + $0x2e8] ss:$28 sps:$4 sm:$0xff]  }
 0x3c5   :  { %5950 = vmatpush1.bf16.msra.mxu1 %v7804_v48  ;;  %v7868_v48 = vld [vmem:[%s10726_s9 + $0x4b0] ss:$28 sps:$4 sm:$0xff]  }
 0x3c6   :  { %7121 = vmatpush3.bf16.msra.mxu0 %v7808_v49  ;;  %5951 = vmatprep.subr.bf16.mxu1 %v7811_v50  ;;  %v7871_v49 = vld [vmem:[%s10726_s9 + $0x324] ss:$28 sps:$4 sm:$0xff]  }
 0x3c7   :  { %7122 = vmatprep.subr.bf16.mxu0 %v7812_v32  ;;  %v7872_v50 = vld [vmem:[%s10726_s9 + $0x6a8] ss:$28 sps:$4 sm:$0xff]   ;;  %v7869_v32 = vld [vmem:[%s10726_s9 + $0x320] ss:$28 sps:$4 sm:$0xff]  }
 0x3c9   :  { %5952 = vmatpush1.bf16.msra.mxu1 %v7809_v33  ;;  %v7873_v33 = vld [vmem:[%s10726_s9 + $0x4e8] ss:$28 sps:$4 sm:$0xff]  }
 0x3ca   :  { %7123 = vmatpush3.bf16.msra.mxu0 %v7813_v7  ;;  %5953 = vmatprep.subr.bf16.mxu1 %v7816_v34  ;;  %v7876_v7 = vld [vmem:[%s10726_s9 + $0x35c] ss:$28 sps:$4 sm:$0xff]  }
 0x3cb   :  { %7124 = vmatprep.subr.bf16.mxu0 %v7817_v37  ;;  %v7877_v34 = vld [vmem:[%s10726_s9 + $0x6e0] ss:$28 sps:$4 sm:$0xff]   ;;  %v7874_v37 = vld [vmem:[%s10726_s9 + $0x358] ss:$28 sps:$4 sm:$0xff]  }
 0x3cd   :  { %5954 = vmatpush1.bf16.msra.mxu1 %v7814_v41  ;;  %v7878_v41 = vld [vmem:[%s10726_s9 + $0x520] ss:$28 sps:$4 sm:$0xff]  }
 0x3ce   :  { %7125 = vmatpush3.bf16.msra.mxu0 %v7818_v42  ;;  %5955 = vmatprep.subr.bf16.mxu1 %v7821_v51  ;;  %v7881_v42 = vld [vmem:[%s10726_s9 + $0x394] ss:$28 sps:$4 sm:$0xff]  }
 0x3cf   :  { %7126 = vmatprep.subr.bf16.mxu0 %v7822_v52  ;;  %v7882_v51 = vld [vmem:[%s10726_s9 + $0x8d8] ss:$28 sps:$4 sm:$0xff]   ;;  %v7879_v52 = vld [vmem:[%s10726_s9 + $0x390] ss:$28 sps:$4 sm:$0xff]  }
 0x3d1   :  { %5956 = vmatpush1.bf16.msra.mxu1 %v7819_v53  ;;  %v7883_v53 = vld [vmem:[%s10726_s9 + $0x718] ss:$28 sps:$4 sm:$0xff]  }
 0x3d2   :  { %7127 = vmatpush3.bf16.msra.mxu0 %v7823_v54  ;;  %5957 = vmatprep.subr.bf16.mxu1 %v7826_v55  ;;  %v7886_v54 = vld [vmem:[%s10726_s9 + $0x3cc] ss:$28 sps:$4 sm:$0xff]  }
 0x3d3   :  { %7128 = vmatprep.subr.bf16.mxu0 %v7827_v56  ;;  %v7887_v55 = vld [vmem:[%s10726_s9 + $0x910] ss:$28 sps:$4 sm:$0xff]   ;;  %v7884_v56 = vld [vmem:[%s10726_s9 + $0x3c8] ss:$28 sps:$4 sm:$0xff]  }
 0x3d5   :  { %5958 = vmatpush1.bf16.msra.mxu1 %v7824_v57  ;;  %v7888_v57 = vld [vmem:[%s10726_s9 + $0x750] ss:$28 sps:$4 sm:$0xff]  }
 0x3d6   :  { %7129 = vmatpush3.bf16.msra.mxu0 %v7828_v58  ;;  %5959 = vmatprep.subr.bf16.mxu1 %v7831_v60  ;;  %v7892_v58 = vld [vmem:[%s10726_s9 + $0x948] ss:$28 sps:$4 sm:$0xff]  }
 0x3d7   :  { %7130 = vmatprep.subr.bf16.mxu0 %v7832_v61  ;;  %v7893_v60 = vld [vmem:[%s10726_s9 + $0x788] ss:$28 sps:$4 sm:$0xff]   ;;  %v7896_v61 = vld [vmem:[%s10726_s9 + $0x43c] ss:$28 sps:$4 sm:$0xff]  }
 0x3d9   :  { %5960 = vmatpush1.bf16.msra.mxu1 %v7829_v62  ;;  %v7897_v62 = vld [vmem:[%s10726_s9 + $0x980] ss:$28 sps:$4 sm:$0xff]  }
 0x3da   :  { %7131 = vmatpush3.bf16.msra.mxu0 %v7833_v0  ;;  %5961 = vmatprep.subr.bf16.mxu1 %v7836_v1  ;;  %v7894_v0 = vld [vmem:[%s10726_s9 + $0x438] ss:$28 sps:$4 sm:$0xff]   ;;  %v7898_v1 = vld [vmem:[%s10726_s9 + $0x7c0] ss:$28 sps:$4 sm:$0xff]  }
 0x3db   :  { %7132 = vmatprep.subr.bf16.mxu0 %v7837_v2  ;;  %v7901_v2 = vld [vmem:[%s10726_s9 + $0x474] ss:$28 sps:$4 sm:$0xff]  }
 0x3dd   :  { %5962 = vmatpush1.bf16.msra.mxu1 %v7834_v10  ;;  %v7902_v10 = vld [vmem:[%s10726_s9 + $0x9b8] ss:$28 sps:$4 sm:$0xff]  }
 0x3de   :  { %7133 = vmatpush3.bf16.msra.mxu0 %v7838_v11  ;;  %5963 = vmatprep.subr.bf16.mxu1 %v7841_v12  ;;  %v7899_v11 = vld [vmem:[%s10726_s9 + $0x470] ss:$28 sps:$4 sm:$0xff]   ;;  %v7903_v12 = vld [vmem:[%s10726_s9 + $0x7f8] ss:$28 sps:$4 sm:$0xff]  }
 0x3df   :  { %7140 = vmatprep.subr.bf16.mxu0 %v7842_v13  ;;  %v7906_v13 = vld [vmem:[%s10726_s9 + $0x4ac] ss:$28 sps:$4 sm:$0xff]  }
 0x3e1   :  { %6152 = vmatmul.mubr.bf16.vlgmr.msra.gmra.mrb[24].mxu0 %v9475_v3  ;;  %5964 = vmatpush1.bf16.msra.mxu1 %v7839_v16  ;;  %v7907_v16 = vld [vmem:[%s10726_s9 + $0x9f0] ss:$28 sps:$4 sm:$0xff]  }
 0x3e2   :  { %7141 = vmatpush3.bf16.msra.mxu0 %v7843_v20  ;;  %6192 = vmatprep.mubr.bf16.mxu0 %v9481_v8  ;;  %v7904_v20 = vld [vmem:[%s10726_s9 + $0x4a8] ss:$28 sps:$4 sm:$0xff]  }
 0x3e3   :  { %5965 = vmatprep.subr.bf16.mxu1 %v7846_v21  ;;  %7142 = vmatprep.subr.bf16.mxu0 %v7847_v23  ;;  %v7908_v21 = vld [vmem:[%s10726_s9 + $0x830] ss:$28 sps:$4 sm:$0xff]   ;;  %v7911_v23 = vld [vmem:[%s10726_s9 + $0x4e4] ss:$28 sps:$4 sm:$0xff]  }
 0x3e5   :  { %5966 = vmatpush1.bf16.msra.mxu1 %v7844_v24  ;;  %v7912_v24 = vld [vmem:[%s10726_s9 + $0xa28] ss:$28 sps:$4 sm:$0xff]  }
 0x3e6   :  { %7143 = vmatpush3.bf16.msra.mxu0 %v7848_v25  ;;  %5967 = vmatprep.subr.bf16.mxu1 %v7851_v5  ;;  %v7909_v25 = vld [vmem:[%s10726_s9 + $0x4e0] ss:$28 sps:$4 sm:$0xff]   ;;  %v7913_v5 = vld [vmem:[%s10726_s9 + $0x868] ss:$28 sps:$4 sm:$0xff]  }
 0x3e7   :  { %7144 = vmatprep.subr.bf16.mxu0 %v7852_v27  ;;  %v7916_v27 = vld [vmem:[%s10726_s9 + $0x51c] ss:$28 sps:$4 sm:$0xff]  }
 0x3e9   :  { %5968 = vmatpush1.bf16.msra.mxu1 %v7849_v59  ;;  %v7917_v59 = vld [vmem:[%s10726_s9 + $0xa60] ss:$28 sps:$4 sm:$0xff]  }
 0x3ea   :  { %7145 = vmatpush3.bf16.msra.mxu0 %v7853_v30  ;;  %5969 = vmatprep.subr.bf16.mxu1 %v7856_v31  ;;  %v7914_v30 = vld [vmem:[%s10726_s9 + $0x518] ss:$28 sps:$4 sm:$0xff]   ;;  %v7918_v31 = vld [vmem:[%s10726_s9 + $0x8a0] ss:$28 sps:$4 sm:$0xff]  }
 0x3eb   :  { %7146 = vmatprep.subr.bf16.mxu0 %v7857_v35  ;;  %v7921_v35 = vld [vmem:[%s10726_s9 + $0x554] ss:$28 sps:$4 sm:$0xff]  }
 0x3ed   :  { %5970 = vmatpush1.bf16.msra.mxu1 %v7854_v28  ;;  %v7922_v28 = vld [vmem:[%s10726_s9 + $0xc58] ss:$28 sps:$4 sm:$0xff]  }
 0x3ee   :  { %7147 = vmatpush3.bf16.msra.mxu0 %v7858_v36  ;;  %5971 = vmatprep.subr.bf16.mxu1 %v7861_v63  ;;  %v7919_v36 = vld [vmem:[%s10726_s9 + $0x550] ss:$28 sps:$4 sm:$0xff]   ;;  %v7923_v63 = vld [vmem:[%s10726_s9 + $0xa98] ss:$28 sps:$4 sm:$0xff]  }
 0x3ef   :  { %7148 = vmatprep.subr.bf16.mxu0 %v7862_v38  ;;  %v7926_v38 = vld [vmem:[%s10726_s9 + $0x58c] ss:$28 sps:$4 sm:$0xff]  }
 0x3f1   :  { %5972 = vmatpush1.bf16.msra.mxu1 %v7859_v40  ;;  %v7927_v40 = vld [vmem:[%s10726_s9 + $0xc90] ss:$28 sps:$4 sm:$0xff]  }
 0x3f2   :  { %7149 = vmatpush3.bf16.msra.mxu0 %v7863_v26  ;;  %5973 = vmatprep.subr.bf16.mxu1 %v7866_v43  ;;  %v7924_v26 = vld [vmem:[%s10726_s9 + $0x588] ss:$28 sps:$4 sm:$0xff]   ;;  %v7928_v43 = vld [vmem:[%s10726_s9 + $0xad0] ss:$28 sps:$4 sm:$0xff]  }
 0x3f3   :  { %7150 = vmatprep.subr.bf16.mxu0 %v7867_v45  ;;  %v7931_v45 = vld [vmem:[%s10726_s9 + $0x5c4] ss:$28 sps:$4 sm:$0xff]  }
 0x3f5   :  { %5974 = vmatpush1.bf16.msra.mxu1 %v7864_v46  ;;  %v7932_v46 = vld [vmem:[%s10726_s9 + $0xcc8] ss:$28 sps:$4 sm:$0xff]  }
 0x3f6   :  { %7151 = vmatpush3.bf16.msra.mxu0 %v7868_v48  ;;  %5975 = vmatprep.subr.bf16.mxu1 %v7871_v49  ;;  %v7929_v48 = vld [vmem:[%s10726_s9 + $0x5c0] ss:$28 sps:$4 sm:$0xff]   ;;  %v7933_v49 = vld [vmem:[%s10726_s9 + $0xb08] ss:$28 sps:$4 sm:$0xff]  }
 0x3f7   :  { %7152 = vmatprep.subr.bf16.mxu0 %v7872_v50  ;;  %v7936_v50 = vld [vmem:[%s10726_s9 + $0x5fc] ss:$28 sps:$4 sm:$0xff]  }
 0x3f9   :  { %5976 = vmatpush1.bf16.msra.mxu1 %v7869_v32  ;;  %v7937_v32 = vld [vmem:[%s10726_s9 + $0xd00] ss:$28 sps:$4 sm:$0xff]  }
 0x3fa   :  { %7153 = vmatpush3.bf16.msra.mxu0 %v7873_v33  ;;  %5977 = vmatprep.subr.bf16.mxu1 %v7876_v7  ;;  %v7934_v33 = vld [vmem:[%s10726_s9 + $0x5f8] ss:$28 sps:$4 sm:$0xff]   ;;  %v7938_v7 = vld [vmem:[%s10726_s9 + $0xb40] ss:$28 sps:$4 sm:$0xff]  }
 0x3fb   :  { %7154 = vmatprep.subr.bf16.mxu0 %v7877_v34  ;;  %v7941_v34 = vld [vmem:[%s10726_s9 + $0x634] ss:$28 sps:$4 sm:$0xff]  }
 0x3fd   :  { %5978 = vmatpush1.bf16.msra.mxu1 %v7874_v37  ;;  %v7942_v37 = vld [vmem:[%s10726_s9 + $0xd38] ss:$28 sps:$4 sm:$0xff]  }
 0x3fe   :  { %7155 = vmatpush3.bf16.msra.mxu0 %v7878_v41  ;;  %5990 = vmatprep.subr.bf16.mxu1 %v7881_v42  ;;  %v7939_v41 = vld [vmem:[%s10726_s9 + $0x630] ss:$28 sps:$4 sm:$0xff]   ;;  %v7943_v42 = vld [vmem:[%s10726_s9 + $0xb78] ss:$28 sps:$4 sm:$0xff]  }
 0x3ff   :  { %7162 = vmatprep.subr.bf16.mxu0 %v7882_v51  ;;  %v7946_v51 = vld [vmem:[%s10726_s9 + $0x66c] ss:$28 sps:$4 sm:$0xff]  }
 0x400   :  { %5980 = vmatmul.mubr.bf16.vlgmr.msra.gmra.mrb[16].mxu1 %v9475_v3  ;;  %v7891_v3 = vld [vmem:[%s10726_s9 + $0x404] ss:$28 sps:$4 sm:$0xff]  }
 0x401   :  { %6193 = vmatmul.mubr.bf16.vlgmr.msra.gmra.mrb[28].mxu0 %v9477_v4  ;;  %5991 = vmatpush1.bf16.msra.mxu1 %v7879_v52  ;;  %v7947_v52 = vld [vmem:[%s10726_s9 + $0xd70] ss:$28 sps:$4 sm:$0xff]  }
 0x402   :  { %6022 = vmatprep.mubr.bf16.mxu1 %v9481_v8  ;;  %7163 = vmatpush3.bf16.msra.mxu0 %v7883_v53  ;;  %v7889_v8 = vld [vmem:[%s10726_s9 + $0x400] ss:$28 sps:$4 sm:$0xff]   ;;  %v7944_v53 = vld [vmem:[%s10726_s9 + $0x668] ss:$28 sps:$4 sm:$0xff]  }
 0x403   :  { %6233 = vmatprep.mubr.bf16.mxu0 %v9893_v19  ;;  %5992 = vmatprep.subr.bf16.mxu1 %v7886_v54  ;;  %v7948_v54 = vld [vmem:[%s10726_s9 + $0xbb0] ss:$28 sps:$4 sm:$0xff]  }
 0x404   :  { %7164 = vmatprep.subr.bf16.mxu0 %v7887_v55  ;;  %v7951_v55 = vld [vmem:[%s10726_s9 + $0x6a4] ss:$28 sps:$4 sm:$0xff]  }
 0x405   :  { %5993 = vmatpush1.bf16.msra.mxu1 %v7884_v56  ;;  %v7952_v56 = vld [vmem:[%s10726_s9 + $0xda8] ss:$28 sps:$4 sm:$0xff]  }
 0x406   :  { %7165 = vmatpush3.bf16.msra.mxu0 %v7888_v57  ;;  %5994 = vmatprep.subr.bf16.mxu1 %v7891_v3  ;;  %v7949_v57 = vld [vmem:[%s10726_s9 + $0x6a0] ss:$28 sps:$4 sm:$0xff]   ;;  %v7953_v3 = vld [vmem:[%s10726_s9 + $0xbe8] ss:$28 sps:$4 sm:$0xff]  }
 0x407   :  { %7166 = vmatprep.subr.bf16.mxu0 %v7892_v58  ;;  %v7956_v58 = vld [vmem:[%s10726_s9 + $0x6dc] ss:$28 sps:$4 sm:$0xff]  }
 0x409   :  { %5995 = vmatpush1.bf16.msra.mxu1 %v7889_v8  ;;  %v7957_v8 = vld [vmem:[%s10726_s9 + $0xde0] ss:$28 sps:$4 sm:$0xff]  }
 0x40a   :  { %7167 = vmatpush3.bf16.msra.mxu0 %v7893_v60  ;;  %5996 = vmatprep.subr.bf16.mxu1 %v7896_v61  ;;  %v7954_v60 = vld [vmem:[%s10726_s9 + $0x6d8] ss:$28 sps:$4 sm:$0xff]   ;;  %v7958_v61 = vld [vmem:[%s10726_s9 + $0xc20] ss:$28 sps:$4 sm:$0xff]  }
 0x40b   :  { %7168 = vmatprep.subr.bf16.mxu0 %v7897_v62  ;;  %v7961_v62 = vld [vmem:[%s10726_s9 + $0x714] ss:$28 sps:$4 sm:$0xff]  }
 0x40d   :  { %5997 = vmatpush1.bf16.msra.mxu1 %v7894_v0  ;;  %v7959_v0 = vld [vmem:[%s10726_s9 + $0x710] ss:$28 sps:$4 sm:$0xff]  }
 0x40e   :  { %7169 = vmatpush3.bf16.msra.mxu0 %v7898_v1  ;;  %5998 = vmatprep.subr.bf16.mxu1 %v7901_v2  ;;  %v7964_v1 = vld [vmem:[%s10726_s9 + $0x74c] ss:$28 sps:$4 sm:$0xff]  }
 0x40f   :  { %7170 = vmatprep.subr.bf16.mxu0 %v7902_v10  ;;  %v7962_v2 = vld [vmem:[%s10726_s9 + $0x748] ss:$28 sps:$4 sm:$0xff]  }
 0x410   :  { %v7967_v10 = vld [vmem:[%s10726_s9 + $0x784] ss:$28 sps:$4 sm:$0xff]  }
 0x411   :  { %5999 = vmatpush1.bf16.msra.mxu1 %v7899_v11  ;;  %v7965_v11 = vld [vmem:[%s10726_s9 + $0x780] ss:$28 sps:$4 sm:$0xff]  }
 0x412   :  { %7171 = vmatpush3.bf16.msra.mxu0 %v7903_v12  ;;  %6000 = vmatprep.subr.bf16.mxu1 %v7906_v13  ;;  %v7973_v12 = vld [vmem:[%s10726_s9 + $0x7f4] ss:$28 sps:$4 sm:$0xff]  }
 0x413   :  { %7172 = vmatprep.subr.bf16.mxu0 %v7907_v16  ;;  %v7971_v13 = vld [vmem:[%s10726_s9 + $0x7f0] ss:$28 sps:$4 sm:$0xff]  }
 0x414   :  { %v7976_v16 = vld [vmem:[%s10726_s9 + $0x82c] ss:$28 sps:$4 sm:$0xff]  }
 0x415   :  { %6001 = vmatpush1.bf16.msra.mxu1 %v7904_v20  ;;  %v7974_v20 = vld [vmem:[%s10726_s9 + $0x828] ss:$28 sps:$4 sm:$0xff]  }
 0x416   :  { %7173 = vmatpush3.bf16.msra.mxu0 %v7908_v21  ;;  %6002 = vmatprep.subr.bf16.mxu1 %v7911_v23  ;;  %v7979_v21 = vld [vmem:[%s10726_s9 + $0x864] ss:$28 sps:$4 sm:$0xff]  }
 0x417   :  { %7174 = vmatprep.subr.bf16.mxu0 %v7912_v24  ;;  %v7977_v23 = vld [vmem:[%s10726_s9 + $0x860] ss:$28 sps:$4 sm:$0xff]  }
 0x418   :  { %v7982_v24 = vld [vmem:[%s10726_s9 + $0x89c] ss:$28 sps:$4 sm:$0xff]  }
 0x419   :  { %6003 = vmatpush1.bf16.msra.mxu1 %v7909_v25  ;;  %v7980_v25 = vld [vmem:[%s10726_s9 + $0x898] ss:$28 sps:$4 sm:$0xff]  }
 0x41a   :  { %7175 = vmatpush3.bf16.msra.mxu0 %v7913_v5  ;;  %6004 = vmatprep.subr.bf16.mxu1 %v7916_v27  ;;  %v7985_v5 = vld [vmem:[%s10726_s9 + $0x8d4] ss:$28 sps:$4 sm:$0xff]  }
 0x41b   :  { %7176 = vmatprep.subr.bf16.mxu0 %v7917_v59  ;;  %v7983_v27 = vld [vmem:[%s10726_s9 + $0x8d0] ss:$28 sps:$4 sm:$0xff]  }
 0x41c   :  { %v7988_v59 = vld [vmem:[%s10726_s9 + $0x90c] ss:$28 sps:$4 sm:$0xff]  }
 0x41d   :  { %6005 = vmatpush1.bf16.msra.mxu1 %v7914_v30  ;;  %v7986_v30 = vld [vmem:[%s10726_s9 + $0x908] ss:$28 sps:$4 sm:$0xff]  }
 0x41e   :  { %7177 = vmatpush3.bf16.msra.mxu0 %v7918_v31  ;;  %6006 = vmatprep.subr.bf16.mxu1 %v7921_v35  ;;  %v7991_v31 = vld [vmem:[%s10726_s9 + $0x944] ss:$28 sps:$4 sm:$0xff]  }
 0x41f   :  { %7184 = vmatprep.subr.bf16.mxu0 %v7922_v28  ;;  %v7989_v35 = vld [vmem:[%s10726_s9 + $0x940] ss:$28 sps:$4 sm:$0xff]  }
 0x420   :  { %v7994_v28 = vld [vmem:[%s10726_s9 + $0x97c] ss:$28 sps:$4 sm:$0xff]  }
 0x421   :  { %6234 = vmatmul.mubr.bf16.vlgmr.msra.gmra.mrb[32].mxu0 %v9889_v15  ;;  %6007 = vmatpush1.bf16.msra.mxu1 %v7919_v36  ;;  %v7992_v36 = vld [vmem:[%s10726_s9 + $0x978] ss:$28 sps:$4 sm:$0xff]  }
 0x422   :  { %7185 = vmatpush3.bf16.msra.mxu0 %v7923_v63  ;;  %6274 = vmatprep.mubr.bf16.mxu0 %v9901_v22  ;;  %v7997_v63 = vld [vmem:[%s10726_s9 + $0x9b4] ss:$28 sps:$4 sm:$0xff]  }
 0x423   :  { %6008 = vmatprep.subr.bf16.mxu1 %v7926_v38  ;;  %7186 = vmatprep.subr.bf16.mxu0 %v7927_v40  ;;  %v7995_v38 = vld [vmem:[%s10726_s9 + $0x9b0] ss:$28 sps:$4 sm:$0xff]  }
 0x424   :  { %v8000_v40 = vld [vmem:[%s10726_s9 + $0x9ec] ss:$28 sps:$4 sm:$0xff]  }
 0x425   :  { %6009 = vmatpush1.bf16.msra.mxu1 %v7924_v26  ;;  %v7998_v26 = vld [vmem:[%s10726_s9 + $0x9e8] ss:$28 sps:$4 sm:$0xff]  }
 0x426   :  { %7187 = vmatpush3.bf16.msra.mxu0 %v7928_v43  ;;  %6010 = vmatprep.subr.bf16.mxu1 %v7931_v45  ;;  %v8003_v43 = vld [vmem:[%s10726_s9 + $0xa24] ss:$28 sps:$4 sm:$0xff]  }
 0x427   :  { %7188 = vmatprep.subr.bf16.mxu0 %v7932_v46  ;;  %v8001_v45 = vld [vmem:[%s10726_s9 + $0xa20] ss:$28 sps:$4 sm:$0xff]  }
 0x428   :  { %v8006_v46 = vld [vmem:[%s10726_s9 + $0xa5c] ss:$28 sps:$4 sm:$0xff]  }
 0x429   :  { %6011 = vmatpush1.bf16.msra.mxu1 %v7929_v48  ;;  %v8004_v48 = vld [vmem:[%s10726_s9 + $0xa58] ss:$28 sps:$4 sm:$0xff]  }
 0x42a   :  { %7189 = vmatpush3.bf16.msra.mxu0 %v7933_v49  ;;  %6012 = vmatprep.subr.bf16.mxu1 %v7936_v50  ;;  %v8009_v49 = vld [vmem:[%s10726_s9 + $0xa94] ss:$28 sps:$4 sm:$0xff]  }
 0x42b   :  { %7190 = vmatprep.subr.bf16.mxu0 %v7937_v32  ;;  %v8007_v50 = vld [vmem:[%s10726_s9 + $0xa90] ss:$28 sps:$4 sm:$0xff]  }
 0x42c   :  { %v8012_v32 = vld [vmem:[%s10726_s9 + $0xacc] ss:$28 sps:$4 sm:$0xff]  }
 0x42d   :  { %6013 = vmatpush1.bf16.msra.mxu1 %v7934_v33  ;;  %v8010_v33 = vld [vmem:[%s10726_s9 + $0xac8] ss:$28 sps:$4 sm:$0xff]  }
 0x42e   :  { %7191 = vmatpush3.bf16.msra.mxu0 %v7938_v7  ;;  %6014 = vmatprep.subr.bf16.mxu1 %v7941_v34  ;;  %v8015_v7 = vld [vmem:[%s10726_s9 + $0xb04] ss:$28 sps:$4 sm:$0xff]  }
 0x42f   :  { %7192 = vmatprep.subr.bf16.mxu0 %v7942_v37  ;;  %v8013_v34 = vld [vmem:[%s10726_s9 + $0xb00] ss:$28 sps:$4 sm:$0xff]   ;;  %v8021_v37 = vld [vmem:[%s10726_s9 + $0xb74] ss:$28 sps:$4 sm:$0xff]  }
 0x431   :  { %6015 = vmatpush1.bf16.msra.mxu1 %v7939_v41  ;;  %v8019_v41 = vld [vmem:[%s10726_s9 + $0xb70] ss:$28 sps:$4 sm:$0xff]  }
 0x432   :  { %7193 = vmatpush3.bf16.msra.mxu0 %v7943_v42  ;;  %6016 = vmatprep.subr.bf16.mxu1 %v7946_v51  ;;  %v10619_v42 = vld [vmem:[%s10727_s10] sm:$0x7f]  ;;  %v8024_v51 = vld [vmem:[%s10726_s9 + $0xbac] ss:$28 sps:$4 sm:$0xff]  }
 0x433   :  { %7194 = vmatprep.subr.bf16.mxu0 %v7947_v52  ;;  %v3267_v52 = vrot.slane %v10619_v42, %v8396_v44 }
 0x435   :  { %6017 = vmatpush1.bf16.msra.mxu1 %v7944_v53  ;;  %v3275_v53 = vrot.slane %v10619_v42, %v8831_v6 }
 0x436   :  { %7195 = vmatpush3.bf16.msra.mxu0 %v7948_v54  ;;  %6018 = vmatprep.subr.bf16.mxu1 %v7951_v55  ;;  %v3271_v54 = vrot.slane %v10619_v42, %v8402_v47  ;;  %v3279_v55 = vrot.slane %v10619_v42, %v8834_v9  ;;  %v8025_v9 = vld [vmem:[%s10726_s9 + $0xbe0] ss:$28 sps:$4 sm:$0xff]  }
 0x437   :  { %7196 = vmatprep.subr.bf16.mxu0 %v7952_v56  ;;  %v8022_v56 = vld [vmem:[%s10726_s9 + $0xba8] ss:$28 sps:$4 sm:$0xff]  }
 0x439   :  { %6019 = vmatpush1.bf16.msra.mxu1 %v7949_v57  ;;  %v8027_v57 = vld [vmem:[%s10726_s9 + $0xbe4] ss:$28 sps:$4 sm:$0xff]  }
 0x43a   :  { %7197 = vmatpush3.bf16.msra.mxu0 %v7953_v3  ;;  %6020 = vmatprep.subr.bf16.mxu1 %v7956_v58 }
 0x43b   :  { %7198 = vmatprep.subr.bf16.mxu0 %v7957_v8 }
 0x43d   :  { %6021 = vmatpush1.bf16.msra.mxu1 %v7954_v60 }
 0x43e   :  { %7199 = vmatpush3.bf16.msra.mxu0 %v7958_v61  ;;  %6033 = vmatprep.subr.bf16.mxu1 %v7961_v62 }
 0x440   :  { %6023 = vmatmul.mubr.bf16.vlgmr.msra.gmra.mrb[16].mxu1 %v9477_v4  ;;  %v7970_v4 = vld [vmem:[%s10726_s9 + $0x7bc] ss:$28 sps:$4 sm:$0xff]  }
 0x441   :  { %6275 = vmatmul.mubr.bf16.vlgmr.msra.gmra.mrb[36].mxu0 %v9891_v18  ;;  %6034 = vmatpush1.bf16.msra.mxu1 %v7959_v0 }
 0x442   :  { %6065 = vmatprep.mubr.bf16.mxu1 %v9893_v19  ;;  %6035 = vmatprep.subr.bf16.mxu1 %v7964_v1  ;;  %v7968_v19 = vld [vmem:[%s10726_s9 + $0x7b8] ss:$28 sps:$4 sm:$0xff]  }
 0x445   :  { %6036 = vmatpush1.bf16.msra.mxu1 %v7962_v2 }
 0x446   :  { %6037 = vmatprep.subr.bf16.mxu1 %v7967_v10 }
 0x449   :  { %6038 = vmatpush1.bf16.msra.mxu1 %v7965_v11  ;;  %v8030_v11 = vld [vmem:[%s10726_s9 + $0xc1c] ss:$28 sps:$4 sm:$0xff]  }
 0x44a   :  { %6039 = vmatprep.subr.bf16.mxu1 %v7970_v4 }
 0x44d   :  { %6040 = vmatpush1.bf16.msra.mxu1 %v7968_v19 }
 0x44e   :  { %6041 = vmatprep.subr.bf16.mxu1 %v7973_v12 }
 0x451   :  { %6042 = vmatpush1.bf16.msra.mxu1 %v7971_v13  ;;  %v8028_v13 = vld [vmem:[%s10726_s9 + $0xc18] ss:$28 sps:$4 sm:$0xff]  }
 0x452   :  { %6043 = vmatprep.subr.bf16.mxu1 %v7976_v16  ;;  %v8033_v16 = vld [vmem:[%s10726_s9 + $0xc54] ss:$28 sps:$4 sm:$0xff]  }
 0x455   :  { %6044 = vmatpush1.bf16.msra.mxu1 %v7974_v20  ;;  %v8031_v20 = vld [vmem:[%s10726_s9 + $0xc50] ss:$28 sps:$4 sm:$0xff]  }
 0x456   :  { %6045 = vmatprep.subr.bf16.mxu1 %v7979_v21  ;;  %v8036_v21 = vld [vmem:[%s10726_s9 + $0xc8c] ss:$28 sps:$4 sm:$0xff]  }
 0x459   :  { %6046 = vmatpush1.bf16.msra.mxu1 %v7977_v23 }
 0x45a   :  { %6047 = vmatprep.subr.bf16.mxu1 %v7982_v24 }
 0x45d   :  { %6048 = vmatpush1.bf16.msra.mxu1 %v7980_v25  ;;  %v8034_v25 = vld [vmem:[%s10726_s9 + $0xc88] ss:$28 sps:$4 sm:$0xff]  }
 0x45e   :  { %6049 = vmatprep.subr.bf16.mxu1 %v7985_v5 }
 0x461   :  { %6050 = vmatpush1.bf16.msra.mxu1 %v7983_v27  ;;  %v8039_v27 = vld [vmem:[%s10726_s9 + $0xcc4] ss:$28 sps:$4 sm:$0xff]  }
 0x462   :  { %6051 = vmatprep.subr.bf16.mxu1 %v7988_v59 }
 0x465   :  { %6052 = vmatpush1.bf16.msra.mxu1 %v7986_v30 }
 0x466   :  { %6053 = vmatprep.subr.bf16.mxu1 %v7991_v31 }
 0x469   :  { %6054 = vmatpush1.bf16.msra.mxu1 %v7989_v35  ;;  %v8037_v35 = vld [vmem:[%s10726_s9 + $0xcc0] ss:$28 sps:$4 sm:$0xff]  }
 0x46a   :  { %6055 = vmatprep.subr.bf16.mxu1 %v7994_v28 }
 0x46d   :  { %6056 = vmatpush1.bf16.msra.mxu1 %v7992_v36  ;;  %v8042_v36 = vld [vmem:[%s10726_s9 + $0xcfc] ss:$28 sps:$4 sm:$0xff]  }
 0x46e   :  { %6057 = vmatprep.subr.bf16.mxu1 %v7997_v63 }
 0x471   :  { %6058 = vmatpush1.bf16.msra.mxu1 %v7995_v38  ;;  %v8040_v38 = vld [vmem:[%s10726_s9 + $0xcf8] ss:$28 sps:$4 sm:$0xff]  }
 0x472   :  { %6059 = vmatprep.subr.bf16.mxu1 %v8000_v40  ;;  %v8045_v40 = vld [vmem:[%s10726_s9 + $0xd34] ss:$28 sps:$4 sm:$0xff]  }
 0x475   :  { %6060 = vmatpush1.bf16.msra.mxu1 %v7998_v26  ;;  %v8043_v26 = vld [vmem:[%s10726_s9 + $0xd30] ss:$28 sps:$4 sm:$0xff]  }
 0x476   :  { %6061 = vmatprep.subr.bf16.mxu1 %v8003_v43  ;;  %v8048_v43 = vld [vmem:[%s10726_s9 + $0xd6c] ss:$28 sps:$4 sm:$0xff]  }
 0x479   :  { %6062 = vmatpush1.bf16.msra.mxu1 %v8001_v45  ;;  %v8046_v45 = vld [vmem:[%s10726_s9 + $0xd68] ss:$28 sps:$4 sm:$0xff]  }
 0x47a   :  { %6063 = vmatprep.subr.bf16.mxu1 %v8006_v46  ;;  %v8051_v46 = vld [vmem:[%s10726_s9 + $0xda4] ss:$28 sps:$4 sm:$0xff]  }
 0x47d   :  { %6064 = vmatpush1.bf16.msra.mxu1 %v8004_v48 }
 0x47e   :  { %6076 = vmatprep.subr.bf16.mxu1 %v8009_v49 }
 0x480   :  { %6066 = vmatmul.mubr.bf16.vlgmr.msra.gmra.mrb[16].mxu1 %v9889_v15  ;;  %v8018_v15 = vld [vmem:[%s10726_s9 + $0xb3c] ss:$28 sps:$4 sm:$0xff]  }
 0x481   :  { %6077 = vmatpush1.bf16.msra.mxu1 %v8007_v50  ;;  %6108 = vmatprep.mubr.bf16.mxu1 %v9901_v22  ;;  %v8016_v22 = vld [vmem:[%s10726_s9 + $0xb38] ss:$28 sps:$4 sm:$0xff]   ;;  %v8049_v50 = vld [vmem:[%s10726_s9 + $0xda0] ss:$28 sps:$4 sm:$0xff]  }
 0x482   :  { %6078 = vmatprep.subr.bf16.mxu1 %v8012_v32 }
 0x485   :  { %6079 = vmatpush1.bf16.msra.mxu1 %v8010_v33 }
 0x486   :  { %6080 = vmatprep.subr.bf16.mxu1 %v8015_v7  ;;  %v8054_v7 = vld [vmem:[%s10726_s9 + $0xddc] ss:$28 sps:$4 sm:$0xff]  }
 0x489   :  { %6081 = vmatpush1.bf16.msra.mxu1 %v8013_v34 }
 0x48a   :  { %6082 = vmatprep.subr.bf16.mxu1 %v8018_v15 }
 0x48d   :  { %6083 = vmatpush1.bf16.msra.mxu1 %v8016_v22  ;;  %v8052_v22 = vld [vmem:[%s10726_s9 + $0xdd8] ss:$28 sps:$4 sm:$0xff]   ;;  %s8108_s9 = smov [#allocation2]  }
 0x48e   :  { %6084 = vmatprep.subr.bf16.mxu1 %v8021_v37  ;;  %v3291_v37 = vrot.slane %v10619_v42, %v1072_v17  ;;  %s6317_s27 = sshll.u32 %s8108_s9, 4  ;;  %s6318_s27 = int_to_ptr.vmem [resolvable:$true] %s6317_s27 }
 0x48f   :  { %s8083_s28 = scalar_lea.vmem %s6318_s27, 1792  ;;  %p8088_p1 = scmp.lt.s32.totalorder %s6318_s27, %s6318_s27 }
 0x490   :  { %p8084_p0 = scmp.ne.s32.totalorder %s6318_s27, %s8083_s28  ;;  %p8089_p2 = scmp.lt.s32.totalorder %s8083_s28, %s8083_s28 }
 0x491   :  { %6085 = vmatpush1.bf16.msra.mxu1 %v8019_v41 }
 0x492   :  { %6086 = vmatprep.subr.bf16.mxu1 %v8024_v51  ;;  %p8090_p3 = por %p8089_p2, %p8088_p1 }
 0x493   :  { %v5766_v44 = vpop.f32.mrb[12].mxu1  ;;  %v5938_v3 = vpop.f32.mrb[20].mxu0 }
 0x494   :  { %v7226_v58 = vadd.f32 %v5766_v44, %v3267_v52  ;;  %v7230_v6 = vadd.f32 %v5938_v3, %v3275_v53  ;;  %v5768_v8 = vpop.f32.mrb[13].mxu1  ;;  %v5940_v60 = vpop.f32.mrb[21].mxu0  ;;  %p8091_p4 = pnand %p8090_p3, %p8084_p0 }
 0x495   :  { %v7227_v61 = vadd.f32 %v5768_v8, %v3271_v54  ;;  %v7231_v47 = vadd.f32 %v5940_v60, %v3279_v55  ;;  %v5770_v62 = vpop.f32.mrb[14].mxu1  ;;  %v5942_v0 = vpop.f32.mrb[22].mxu0  ;;  %6087 = vmatpush1.bf16.msra.mxu1 %v8022_v56 }
 0x496   :  { %8055 = vtanh.f32 %v7226_v58  ;;  %v7228_v1 = vadd.f32 %v5770_v62, %v3267_v52  ;;  %v5772_v2 = vpop.f32.mrb[15].mxu1  ;;  %v5944_v10 = vpop.f32.mrb[23].mxu0  ;;  %6088 = vmatprep.subr.bf16.mxu1 %v8027_v57  ;;  %v7232_v4 = vadd.f32 %v5942_v0, %v3275_v53 }
 0x497   :  { %8057 = vtanh.f32 %v7230_v6  ;;  %v7229_v19 = vadd.f32 %v5772_v2, %v3271_v54  ;;  %v7233_v12 = vadd.f32 %v5944_v10, %v3279_v55 }
 0x498   :  { %8059 = vtanh.f32 %v7227_v61 }
 0x499   :  { %8061 = vtanh.f32 %v7231_v47  ;;  %6089 = vmatpush1.bf16.msra.mxu1 %v8025_v9 }
 0x49a   :  { %8063 = vtanh.f32 %v7228_v1  ;;  %6090 = vmatprep.subr.bf16.mxu1 %v8030_v11 }
 0x49b   :  { %8065 = vtanh.f32 %v7232_v4 }
 0x49c   :  { %8067 = vtanh.f32 %v7229_v19 }
 0x49d   :  { %8069 = vtanh.f32 %v7233_v12  ;;  %6091 = vmatpush1.bf16.msra.mxu1 %v8028_v13  ;;  %v3283_v13 = vrot.slane %v10619_v42, %v1064_v14 }
 0x49e   :  { %6092 = vmatprep.subr.bf16.mxu1 %v8033_v16  ;;  %v3287_v16 = vrot.slane %v10619_v42, %v1068_v29 }
 0x4a0   :  { %v8056_v23 = vpop.eup %8055 }
 0x4a1   :  { %v8058_v24 = vpop.eup %8057  ;;  %6297 = vst [vmem:[#allocation2] sm:$0xff] %v8056_v23  ;;  %6093 = vmatpush1.bf16.msra.mxu1 %v8031_v20 }
 0x4a2   :  { %v8060_v5 = vpop.eup %8059  ;;  %6299 = vst [vmem:[#allocation2 + $0x10] sm:$0xff] %v8058_v24  ;;  %6094 = vmatprep.subr.bf16.mxu1 %v8036_v21 }
 0x4a3   :  { %v8062_v59 = vpop.eup %8061  ;;  %6298 = vst [vmem:[#allocation2 + $0x8] sm:$0xff] %v8060_v5 }
 0x4a4   :  { %v8064_v30 = vpop.eup %8063  ;;  %6300 = vst [vmem:[#allocation2 + $0x18] sm:$0xff] %v8062_v59 }
 0x4a5   :  { %v8066_v31 = vpop.eup %8065  ;;  %6305 = vst [vmem:[#allocation2 + $0x38] sm:$0xff] %v8064_v30  ;;  %6095 = vmatpush1.bf16.msra.mxu1 %v8034_v25 }
 0x4a6   :  { %v8068_v28 = vpop.eup %8067  ;;  %6307 = vst [vmem:[#allocation2 + $0x48] sm:$0xff] %v8066_v31  ;;  %6096 = vmatprep.subr.bf16.mxu1 %v8039_v27 }
 0x4a7   :  { %v8070_v63 = vpop.eup %8069  ;;  %6306 = vst [vmem:[#allocation2 + $0x40] sm:$0xff] %v8068_v28 }
 0x4a8   :  { %6308 = vst [vmem:[#allocation2 + $0x50] sm:$0xff] %v8070_v63 }
 0x4a9   :  { %6097 = vmatpush1.bf16.msra.mxu1 %v8037_v35 }
 0x4aa   :  { %6098 = vmatprep.subr.bf16.mxu1 %v8042_v36 }
 0x4ad   :  { %6099 = vmatpush1.bf16.msra.mxu1 %v8040_v38 }
 0x4ae   :  { %6100 = vmatprep.subr.bf16.mxu1 %v8045_v40 }
 0x4b1   :  { %6101 = vmatpush1.bf16.msra.mxu1 %v8043_v26 }
 0x4b2   :  { %6102 = vmatprep.subr.bf16.mxu1 %v8048_v43 }
 0x4b4   :  { %v7134_v48 = vpop.f32.mrb[24].mxu0 }
 0x4b5   :  { %v7135_v49 = vpop.f32.mrb[25].mxu0  ;;  %6103 = vmatpush1.bf16.msra.mxu1 %v8046_v45 }
 0x4b6   :  { %v7136_v32 = vadd.f32 %v7135_v49, %v7134_v48  ;;  %v7137_v33 = vpop.f32.mrb[26].mxu0  ;;  %6104 = vmatprep.subr.bf16.mxu1 %v8051_v46 }
 0x4b7   :  { %v7138_v34 = vpop.f32.mrb[27].mxu0 }
 0x4b8   :  { %v7139_v15 = vadd.f32 %v7138_v34, %v7137_v33  ;;  %v6154_v52 = vadd.f32 %v7136_v32, %v3291_v37 }
 0x4b9   :  { %6105 = vmatpush1.bf16.msra.mxu1 %v8049_v50 }
 0x4ba   :  { %6106 = vmatprep.subr.bf16.mxu1 %v8054_v7  ;;  %v6157_v56 = vadd.f32 %v7139_v15, %v3291_v37 }
 0x4bd   :  { %6107 = vmatpush1.bf16.msra.mxu1 %v8052_v22 }
 0x4c0   :  { %6109 = vmatmul.mubr.bf16.vlgmr.msra.gmra.mrb[16].mxu1 %v9891_v18 }
 0x4d4   :  { %v7156_v41 = vpop.f32.mrb[28].mxu0 }
 0x4d5   :  { %v7157_v51 = vpop.f32.mrb[29].mxu0 }
 0x4d6   :  { %v7158_v53 = vadd.f32 %v7157_v51, %v7156_v41  ;;  %v7159_v54 = vpop.f32.mrb[30].mxu0 }
 0x4d7   :  { %v7160_v55 = vpop.f32.mrb[31].mxu0 }
 0x4d8   :  { %v6195_v57 = vadd.f32 %v7158_v53, %v6154_v52  ;;  %v7161_v44 = vadd.f32 %v7160_v55, %v7159_v54 }
 0x4da   :  { %v6198_v3 = vadd.f32 %v7161_v44, %v6157_v56 }
 0x4f4   :  { %v7178_v58 = vpop.f32.mrb[32].mxu0 }
 0x4f5   :  { %v7179_v6 = vpop.f32.mrb[33].mxu0 }
 0x4f6   :  { %v7180_v8 = vadd.f32 %v7179_v6, %v7178_v58  ;;  %v7181_v60 = vpop.f32.mrb[34].mxu0 }
 0x4f7   :  { %v7182_v61 = vpop.f32.mrb[35].mxu0 }
 0x4f8   :  { %v6236_v18 = vadd.f32 %v7180_v8, %v6195_v57  ;;  %v7183_v47 = vadd.f32 %v7182_v61, %v7181_v60 }
 0x4fa   :  { %v6239_v62 = vadd.f32 %v7183_v47, %v6198_v3 }
 0x514   :  { %v7200_v0 = vpop.f32.mrb[36].mxu0 }
 0x515   :  { %v7201_v17 = vpop.f32.mrb[37].mxu0 }
 0x516   :  { %v7202_v9 = vadd.f32 %v7201_v17, %v7200_v0  ;;  %v7203_v1 = vpop.f32.mrb[38].mxu0 }
 0x517   :  { %v7204_v2 = vpop.f32.mrb[39].mxu0 }
 0x518   :  { %v6277_v10 = vadd.f32 %v7202_v9, %v6236_v18  ;;  %v7205_v11 = vadd.f32 %v7204_v2, %v7203_v1 }
 0x51a   :  { %8071 = vtanh.f32 %v6277_v10  ;;  %v6280_v4 = vadd.f32 %v7205_v11, %v6239_v62 }
 0x51c   :  { %8073 = vtanh.f32 %v6280_v4 }
 0x524   :  { %v8072_v19 = vpop.eup %8071 }
 0x525   :  { %6304 = vst.msk [vmem:[#allocation2 + $0x30] sm:$0xff] %vm6303_vm4, %v8072_v19 }
 0x526   :  { %v8074_v12 = vpop.eup %8073 }
 0x527   :  { %6311 = vst.msk [vmem:[#allocation2 + $0x68] sm:$0xff] %vm6303_vm4, %v8074_v12 }
 0x593   :  { %v6110_v20 = vpop.f32.mrb[16].mxu1 }
 0x594   :  { %v7234_v21 = vadd.f32 %v6110_v20, %v3283_v13  ;;  %v6112_v23 = vpop.f32.mrb[17].mxu1 }
 0x595   :  { %v7235_v24 = vadd.f32 %v6112_v23, %v3287_v16  ;;  %v6114_v25 = vpop.f32.mrb[18].mxu1 }
 0x596   :  { %8075 = vtanh.f32 %v7234_v21  ;;  %v7236_v5 = vadd.f32 %v6114_v25, %v3283_v13  ;;  %v6116_v27 = vpop.f32.mrb[19].mxu1 }
 0x597   :  { %8077 = vtanh.f32 %v7235_v24  ;;  %v7237_v59 = vadd.f32 %v6116_v27, %v3287_v16 }
 0x598   :  { %8079 = vtanh.f32 %v7236_v5 }
 0x599   :  { %8081 = vtanh.f32 %v7237_v59 }
 0x5a0   :  { %v8076_v30 = vpop.eup %8075 }
 0x5a1   :  { %v8078_v14 = vpop.eup %8077  ;;  %6301 = vst [vmem:[#allocation2 + $0x20] sm:$0xff] %v8076_v30 }
 0x5a2   :  { %v8080_v39 = vpop.eup %8079  ;;  %6302 = vst [vmem:[#allocation2 + $0x28] sm:$0xff] %v8078_v14 }
 0x5a3   :  { %v8082_v29 = vpop.eup %8081  ;;  %6309 = vst [vmem:[#allocation2 + $0x58] sm:$0xff] %v8080_v39 }
 0x5a4   :  { %6310 = vst [vmem:[#allocation2 + $0x60] sm:$0xff] %v8082_v29 }
 0x5a5   :  { %8094 = shalt.err (!%p8091_p4)
}
 0x5a6   :  { %s8095_s12 = scalar_lea.hbm %s10728_s11, 1792 }
 0x5a7   :  { %p8096_p5 = scmp.ne.s32.totalorder %s10728_s11, %s8095_s12  ;;  %p8099_p6 = scmp.lt.u32.totalorder %s8095_s12, %s10728_s11 }
 0x5a9   :  { %p8101_p7 = pnand %p8099_p6, %p8096_p5 }
 0x5ab   :  { %8104 = shalt.err (!%p8101_p7)
}
 0x5ac   :  { %s8109_s6 = smov 896   ;;  %s8110_s5 = smov 56  }
 0x5ad   :  { %6323 = dma.vmem_to_hbm [thread:$0]  %s6318_s27, 1792, %s10728_s11, [#allocation3], %s8109_s6, %s8109_s6, %s8110_s5  }
 0x5ae   :  { %8105 = dma.done.wait [#allocation3], 1792  }
 0x5af   :  { %8106 = vsyncadd [#allocation3], 4294965504 }
 0x5b0   :  { %6327 = vsyncpa [#allocation3], 1 }

</bundles_post_ra>
